<compile_context>
chip_gen: v6e
topology: v6e:2x2x1
jax: 0.10.0
libtpu: 0.0.40
codegen_flags: <defaults>
</compile_context>

<pallas_src>
import jax
import jax.numpy as jnp
from jax.experimental import pallas as pl
from jax.experimental.pallas import tpu as pltpu


# ----------------------------------------------------------------------------
# Fused LSTM + actor/critic decoder kernel.
#   grid = (S // T_BLK,)  over time blocks (sequential recurrence).
#   h/c state is carried in the VMEM-resident hN/cN output blocks.
#   Per time block: T_BLK * L fused-gate dots + one (T_BLK*B, H)x(H, VP) dot.
# ----------------------------------------------------------------------------
def _lstm_decoder_kernel(x_ref, h0_ref, c0_ref, w_cat_ref, b_ref,
                         w_out_ref, b_out_ref,
                         logits_ref, hN_ref, cN_ref, hblk_ref):
    @pl.when(pl.program_id(0) == 0)
    def _():
        hN_ref[...] = h0_ref[...]
        cN_ref[...] = c0_ref[...]

    L, B, H = h0_ref.shape
    t_blk = x_ref.shape[0]
    cdt = w_cat_ref.dtype                     # compute dtype for MXU operands

    for t in range(t_blk):                    # static unroll over the time block
        x = x_ref[t]                          # (B, H), time-major input block
        for l in range(L):                    # static layer loop
            # Fused gate matmul: one dot over concat([x, h]) with (2H, 4H) weight.
            xh = jnp.concatenate(
                [x.astype(cdt), hN_ref[l].astype(cdt)], axis=-1)   # (B, 2H)
            gates = jnp.dot(xh, w_cat_ref[l],
                            preferred_element_type=jnp.float32) + b_ref[l]
            # PyTorch gate order: i, f, g, o
            i = jax.nn.sigmoid(gates[:, 0 * H:1 * H])
            f = jax.nn.sigmoid(gates[:, 1 * H:2 * H])
            g = jnp.tanh(gates[:, 2 * H:3 * H])
            o = jax.nn.sigmoid(gates[:, 3 * H:4 * H])
            c_new = f * cN_ref[l] + i * g                    # f32 state
            h_new = o * jnp.tanh(c_new)
            cN_ref[l] = c_new
            hN_ref[l] = h_new
            x = h_new
        # Collect top-layer h for this step (row layout: t*B + b).
        hblk_ref[t * B:(t + 1) * B, :] = x.astype(cdt)

    # Fused actor+critic decoder over the whole time block (lane-dense VP cols).
    logits_ref[...] = (
        jnp.dot(hblk_ref[...], w_out_ref[...],
                preferred_element_type=jnp.float32) + b_out_ref[...])


def _pick_time_block(S, B, target=8):
    """Largest T_BLK <= target with S % T_BLK == 0 and (T_BLK*B) % 8 == 0;
    falls back to T_BLK = S (single block, always layout-legal)."""
    for tb in range(min(target, S), 0, -1):
        if S % tb == 0 and (tb * B) % 8 == 0:
            return tb
    return S


def _fused_lstm_decoder_call(embeds_tm, h0, c0, w_cat, b_gates, w_out, b_out,
                             t_blk):
    S, B, H = embeds_tm.shape
    L = h0.shape[0]
    VP = w_out.shape[1]
    n_blk = S // t_blk

    grid_spec = pltpu.PrefetchScalarGridSpec(
        num_scalar_prefetch=0,
        grid=(n_blk,),
        in_specs=[
            pl.BlockSpec((t_blk, B, H), lambda tb: (tb, 0, 0)),       # x block
            pl.BlockSpec((L, B, H), lambda tb: (0, 0, 0)),            # h0
            pl.BlockSpec((L, B, H), lambda tb: (0, 0, 0)),            # c0
            pl.BlockSpec((L, 2 * H, 4 * H), lambda tb: (0, 0, 0)),    # [Wih;Whh]^T
            pl.BlockSpec((L, 1, 4 * H), lambda tb: (0, 0, 0)),        # b_ih + b_hh
            pl.BlockSpec((H, VP), lambda tb: (0, 0)),                 # actor|critic W
            pl.BlockSpec((1, VP), lambda tb: (0, 0)),                 # actor|critic b
        ],
        out_specs=[
            pl.BlockSpec((t_blk * B, VP), lambda tb: (tb, 0)),        # logits slab
            pl.BlockSpec((L, B, H), lambda tb: (0, 0, 0)),            # h_N (resident)
            pl.BlockSpec((L, B, H), lambda tb: (0, 0, 0)),            # c_N (resident)
        ],
        scratch_shapes=[pltpu.VMEM((t_blk * B, H), w_cat.dtype)],     # h per block
    )
    return pl.pallas_call(
        _lstm_decoder_kernel,
        out_shape=(
            jax.ShapeDtypeStruct((S * B, VP), jnp.float32),   # logits, row = t*B+b
            jax.ShapeDtypeStruct((L, B, H), jnp.float32),     # h_N
            jax.ShapeDtypeStruct((L, B, H), jnp.float32),     # c_N
        ),
        grid_spec=grid_spec,
        compiler_params=pltpu.CompilerParams(
            dimension_semantics=("arbitrary",),               # sequential recurrence
            vmem_limit_bytes=64 * 1024 * 1024,
        ),
    )(embeds_tm, h0, c0, w_cat, b_gates, w_out, b_out)


# ----------------------------------------------------------------------------
# Full module forward
# ----------------------------------------------------------------------------
def smiles_rnn_actor_critic_forward(kparams, x_tokens, hidden, vocab_size,
                                    time_block_target=8):
    h0, c0 = hidden
    B, S = x_tokens.shape
    # Embedding gather (glue), laid out time-major (S, B, H) for the kernel.
    embeds_tm = kparams["emb"][jnp.swapaxes(x_tokens, 0, 1)]
    t_blk = _pick_time_block(S, B, time_block_target)
    logits_flat, hN, cN = _fused_lstm_decoder_call(
        embeds_tm, h0, c0, kparams["w_cat"], kparams["b_gates"],
        kparams["w_out"], kparams["b_out"], t_blk)
    VP = kparams["w_out"].shape[1]
    logits = logits_flat.reshape(S, B, VP)                    # rows were t*B + b
    actor = jnp.transpose(logits[:, :, :vocab_size], (1, 0, 2))            # (B,S,V)
    critic = jnp.transpose(logits[:, :, vocab_size:vocab_size + 1], (1, 0, 2))
    return actor, critic, (hN, cN)


# ----------------------------------------------------------------------------
# Parameter construction / preparation
# ----------------------------------------------------------------------------
def make_params(key, vocab, hidden, n_layers):
    """PyTorch-layout parameters (all f32)."""
    ks = jax.random.split(key, 8)
    H, V, L = hidden, vocab, n_layers
    bound = 1.0 / jnp.sqrt(H)                      # PyTorch LSTM/Linear default init
    u = lambda k, s: jax.random.uniform(k, s, jnp.float32, -bound, bound)

    xav = jnp.sqrt(6.0 / (H + 1))                  # xavier_uniform_ for critic W
    return {
        "emb": jax.random.normal(ks[0], (V, H), jnp.float32),
        "w_ih": u(ks[1], (L, 4 * H, H)),
        "w_hh": u(ks[2], (L, 4 * H, H)),
        "b_ih": u(ks[3], (L, 4 * H)),
        "b_hh": u(ks[4], (L, 4 * H)),
        "w_dec": u(ks[5], (V, H)),                 # actor decoder Linear(H, V)
        "b_dec": u(ks[6], (V,)),
        "w_cri": jax.random.uniform(ks[7], (1, H), jnp.float32, -xav, xav),
        "b_cri": jnp.zeros((1,), jnp.float32),     # constant_(bias, 0)
    }


def prep_kernel_params(p, compute_dtype=jnp.float32):
    """Kernel-ready parameters: fused/transposed weights, critic folded into the
    actor matmul, output columns zero-padded to a multiple of 128 (lane-dense)."""
    L = p["w_ih"].shape[0]
    H = p["w_ih"].shape[2]
    V = p["w_dec"].shape[0]
    # Fused gate weights: concat(W_ih^T, W_hh^T) along the contraction dim.
    w_cat = jnp.concatenate([jnp.swapaxes(p["w_ih"], 1, 2),
                             jnp.swapaxes(p["w_hh"], 1, 2)], axis=1)   # (L, 2H, 4H)
    b_gates = (p["b_ih"] + p["b_hh"]).reshape(L, 1, 4 * H)             # f32
    # Actor + critic folded into one matmul, padded to 128-lane-dense columns.
    VP = ((V + 1 + 127) // 128) * 128
    w_out = jnp.zeros((H, VP), jnp.float32)
    w_out = w_out.at[:, :V].set(p["w_dec"].T).at[:, V].set(p["w_cri"][0])
    b_out = jnp.zeros((VP,), jnp.float32).at[:V].set(p["b_dec"]).at[V].set(p["b_cri"][0])
    return {
        "emb": p["emb"].astype(compute_dtype),
        "w_cat": w_cat.astype(compute_dtype),
        "b_gates": b_gates,                        # f32 (post-matmul add)
        "w_out": w_out.astype(compute_dtype),
        "b_out": b_out.reshape(1, VP),             # f32
    }


# ----------------------------------------------------------------------------
# Pure-JAX reference (PyTorch LSTM / Linear semantics) for validation
# ----------------------------------------------------------------------------
def reference_forward(p, x_tokens, hidden):
    embeds = p["emb"][x_tokens]                    # (B, S, H)
    h0, c0 = hidden
    L, B, H = h0.shape
    h = [h0[l] for l in range(L)]
    c = [c0[l] for l in range(L)]
    outs = []
    for t in range(embeds.shape[1]):
        x = embeds[:, t, :]
        for l in range(L):
            gates = (x @ p["w_ih"][l].T + h[l] @ p["w_hh"][l].T
                     + p["b_ih"][l] + p["b_hh"][l])
            i, f, g, o = jnp.split(gates, 4, axis=-1)
            i, f, o = jax.nn.sigmoid(i), jax.nn.sigmoid(f), jax.nn.sigmoid(o)
            g = jnp.tanh(g)
            c[l] = f * c[l] + i * g
            h[l] = o * jnp.tanh(c[l])
            x = h[l]
        outs.append(x)
    out = jnp.stack(outs, axis=1)
    actor = out @ p["w_dec"].T + p["b_dec"]
    critic = out @ p["w_cri"].T + p["b_cri"]
    return actor, critic, (jnp.stack(h), jnp.stack(c))


if __name__ == "__main__":
    B, S, H, L, V = 2, 16, 32, 2, 16
    key = jax.random.PRNGKey(0)
    kp, kx, kh, kc = jax.random.split(key, 4)

    params = make_params(kp, vocab=V, hidden=H, n_layers=L)
    x_tokens = jax.random.randint(kx, (B, S), 0, V, dtype=jnp.int32)
    h0 = jax.random.normal(kh, (L, B, H), jnp.float32)
    c0 = jax.random.normal(kc, (L, B, H), jnp.float32)

    actor_r, critic_r, (hN_r, cN_r) = reference_forward(params, x_tokens, (h0, c0))

    # --- f32 compute path (faithful to the PyTorch module numerics) ----------
    kp32 = prep_kernel_params(params, jnp.float32)
    actor, critic, (hN, cN) = jax.block_until_ready(
        smiles_rnn_actor_critic_forward(kp32, x_tokens, (h0, c0), V))
    assert actor.shape == (B, S, V) and critic.shape == (B, S, 1)
    assert hN.shape == (L, B, H) and cN.shape == (L, B, H)
    for got, ref in ((actor, actor_r), (critic, critic_r), (hN, hN_r), (cN, cN_r)):
        assert jnp.allclose(got, ref, atol=1e-3, rtol=1e-3)

    # --- bf16 MXU operands, f32 accumulation/state (performance path) --------
    kpbf = prep_kernel_params(params, jnp.bfloat16)
    actor_b, critic_b, (hN_b, cN_b) = jax.block_until_ready(
        smiles_rnn_actor_critic_forward(kpbf, x_tokens, (h0, c0), V))
    for got, ref in ((actor_b, actor_r), (critic_b, critic_r),
                     (hN_b, hN_r), (cN_b, cN_r)):
        assert jnp.allclose(got, ref, atol=7e-2, rtol=7e-2)

    print("KERNEL_OK")
</pallas_src>

<mosaic_0001>
module attributes {stable_mosaic.version = 11 : i64} {
  func.func @_lstm_decoder_kernel(%arg0: i32, %arg1: memref<8x2x32xf32, #tpu.memory_space<vmem>>, %arg2: memref<2x2x32xf32, #tpu.memory_space<vmem>>, %arg3: memref<2x2x32xf32, #tpu.memory_space<vmem>>, %arg4: memref<2x64x128xf32, #tpu.memory_space<vmem>>, %arg5: memref<2x1x128xf32, #tpu.memory_space<vmem>>, %arg6: memref<32x128xf32, #tpu.memory_space<vmem>>, %arg7: memref<1x128xf32, #tpu.memory_space<vmem>>, %arg8: memref<16x128xf32, #tpu.memory_space<vmem>>, %arg9: memref<2x2x32xf32, #tpu.memory_space<vmem>>, %arg10: memref<2x2x32xf32, #tpu.memory_space<vmem>>, %arg11: memref<16x32xf32, #tpu.memory_space<vmem>>) attributes {dimension_semantics = [#tpu.dimension_semantics<arbitrary>], iteration_bounds = array<i64: 2>, scalar_prefetch = 0 : i64, scratch_operands = 1 : i64, tpu.core_type = #tpu.core_type<tc>, window_params = [{transform_indices = @transform_0, window_bounds = array<i64: 8, 2, 32>}, {pipeline_mode = #tpu.pipeline_mode<synchronous>, transform_indices = @transform_1, window_bounds = array<i64: 2, 2, 32>}, {pipeline_mode = #tpu.pipeline_mode<synchronous>, transform_indices = @transform_2, window_bounds = array<i64: 2, 2, 32>}, {pipeline_mode = #tpu.pipeline_mode<synchronous>, transform_indices = @transform_3, window_bounds = array<i64: 2, 64, 128>}, {pipeline_mode = #tpu.pipeline_mode<synchronous>, transform_indices = @transform_4, window_bounds = array<i64: 2, 1, 128>}, {pipeline_mode = #tpu.pipeline_mode<synchronous>, transform_indices = @transform_5, window_bounds = array<i64: 32, 128>}, {pipeline_mode = #tpu.pipeline_mode<synchronous>, transform_indices = @transform_6, window_bounds = array<i64: 1, 128>}, {transform_indices = @transform_7, window_bounds = array<i64: 16, 128>}, {pipeline_mode = #tpu.pipeline_mode<synchronous>, transform_indices = @transform_8, window_bounds = array<i64: 2, 2, 32>}, {pipeline_mode = #tpu.pipeline_mode<synchronous>, transform_indices = @transform_9, window_bounds = array<i64: 2, 2, 32>}]} {
    %c0_i32 = arith.constant 0 : i32
    %0 = arith.cmpi eq, %arg0, %c0_i32 : i32
    %1 = arith.extui %0 : i1 to i32
    %c0_i32_0 = arith.constant 0 : i32
    %2 = arith.cmpi ne, %1, %c0_i32_0 : i32
    scf.if %2 {
      %c0_389 = arith.constant 0 : index
      %c0_390 = arith.constant 0 : index
      %c0_391 = arith.constant 0 : index
      %722 = vector.load %arg2[%c0_389, %c0_390, %c0_391] : memref<2x2x32xf32, #tpu.memory_space<vmem>>, vector<2x2x32xf32>
      %c0_392 = arith.constant 0 : index
      %c0_393 = arith.constant 0 : index
      %c0_394 = arith.constant 0 : index
      %723 = vector.load %arg9[%c0_392, %c0_393, %c0_394] : memref<2x2x32xf32, #tpu.memory_space<vmem>>, vector<2x2x32xf32>
      tpu.vector_store %arg9[%c0_392, %c0_393, %c0_394], %722 {strides = array<i32>} : memref<2x2x32xf32, #tpu.memory_space<vmem>>, vector<2x2x32xf32>,
      %c0_395 = arith.constant 0 : index
      %c0_396 = arith.constant 0 : index
      %c0_397 = arith.constant 0 : index
      %724 = vector.load %arg3[%c0_395, %c0_396, %c0_397] : memref<2x2x32xf32, #tpu.memory_space<vmem>>, vector<2x2x32xf32>
      %c0_398 = arith.constant 0 : index
      %c0_399 = arith.constant 0 : index
      %c0_400 = arith.constant 0 : index
      %725 = vector.load %arg10[%c0_398, %c0_399, %c0_400] : memref<2x2x32xf32, #tpu.memory_space<vmem>>, vector<2x2x32xf32>
      tpu.vector_store %arg10[%c0_398, %c0_399, %c0_400], %724 {strides = array<i32>} : memref<2x2x32xf32, #tpu.memory_space<vmem>>, vector<2x2x32xf32>,
    } else {
    }
    %c0 = arith.constant 0 : index
    %c0_1 = arith.constant 0 : index
    %c0_2 = arith.constant 0 : index
    %3 = vector.load %arg1[%c0, %c0_1, %c0_2] : memref<8x2x32xf32, #tpu.memory_space<vmem>>, vector<1x2x32xf32>
    %4 = vector.shape_cast %3 : vector<1x2x32xf32> to vector<2x32xf32>
    %c0_3 = arith.constant 0 : index
    %c0_4 = arith.constant 0 : index
    %c0_5 = arith.constant 0 : index
    %5 = vector.load %arg9[%c0_3, %c0_4, %c0_5] : memref<2x2x32xf32, #tpu.memory_space<vmem>>, vector<1x2x32xf32>
    %6 = vector.shape_cast %5 : vector<1x2x32xf32> to vector<2x32xf32>
    %7 = tpu.concatenate %4, %6 in 1 : vector<2x32xf32>, vector<2x32xf32> -> vector<2x64xf32>
    %c0_6 = arith.constant 0 : index
    %c0_7 = arith.constant 0 : index
    %c0_8 = arith.constant 0 : index
    %8 = vector.load %arg4[%c0_6, %c0_7, %c0_8] : memref<2x64x128xf32, #tpu.memory_space<vmem>>, vector<1x64x128xf32>
    %9 = vector.shape_cast %8 : vector<1x64x128xf32> to vector<64x128xf32>
    %cst = arith.constant dense<0.000000e+00> : vector<2x128xf32>
    %10 = tpu.matmul %7, %9, %cst {dimension_numbers = #tpu.dot_dimension_numbers<[1], [0], [0], [1], [0, 0, 1, 1], [], []>} : vector<2x64xf32>, vector<64x128xf32>, vector<2x128xf32> -> vector<2x128xf32>
    %c0_9 = arith.constant 0 : index
    %c0_10 = arith.constant 0 : index
    %c0_11 = arith.constant 0 : index
    %11 = vector.load %arg5[%c0_9, %c0_10, %c0_11] : memref<2x1x128xf32, #tpu.memory_space<vmem>>, vector<1x1x128xf32>
    %12 = vector.shape_cast %11 : vector<1x1x128xf32> to vector<1x128xf32>
    %13 = vector.broadcast %12 : vector<1x128xf32> to vector<2x128xf32>
    %14 = arith.addf %10, %13 : vector<2x128xf32>
    %15 = vector.extract_strided_slice %14 {offsets = [0, 0], sizes = [2, 32], strides = [1, 1]} : vector<2x128xf32> to vector<2x32xf32>
    %16 = arith.negf %15 : vector<2x32xf32>
    %17 = math.exp %16 : vector<2x32xf32>
    %cst_12 = arith.constant 1.000000e+00 : f32
    %18 = vector.broadcast %cst_12 : f32 to vector<2x32xf32>
    %19 = arith.addf %18, %17 : vector<2x32xf32>
    %20 = arith.divf %18, %19 : vector<2x32xf32>
    %21 = vector.extract_strided_slice %14 {offsets = [0, 32], sizes = [2, 32], strides = [1, 1]} : vector<2x128xf32> to vector<2x32xf32>
    %22 = arith.negf %21 : vector<2x32xf32>
    %23 = math.exp %22 : vector<2x32xf32>
    %cst_13 = arith.constant 1.000000e+00 : f32
    %24 = vector.broadcast %cst_13 : f32 to vector<2x32xf32>
    %25 = arith.addf %24, %23 : vector<2x32xf32>
    %26 = arith.divf %24, %25 : vector<2x32xf32>
    %27 = vector.extract_strided_slice %14 {offsets = [0, 64], sizes = [2, 32], strides = [1, 1]} : vector<2x128xf32> to vector<2x32xf32>
    %28 = math.tanh %27 : vector<2x32xf32>
    %29 = vector.extract_strided_slice %14 {offsets = [0, 96], sizes = [2, 32], strides = [1, 1]} : vector<2x128xf32> to vector<2x32xf32>
    %30 = arith.negf %29 : vector<2x32xf32>
    %31 = math.exp %30 : vector<2x32xf32>
    %cst_14 = arith.constant 1.000000e+00 : f32
    %32 = vector.broadcast %cst_14 : f32 to vector<2x32xf32>
    %33 = arith.addf %32, %31 : vector<2x32xf32>
    %34 = arith.divf %32, %33 : vector<2x32xf32>
    %c0_15 = arith.constant 0 : index
    %c0_16 = arith.constant 0 : index
    %c0_17 = arith.constant 0 : index
    %35 = vector.load %arg10[%c0_15, %c0_16, %c0_17] : memref<2x2x32xf32, #tpu.memory_space<vmem>>, vector<1x2x32xf32>
    %36 = vector.shape_cast %35 : vector<1x2x32xf32> to vector<2x32xf32>
    %37 = arith.mulf %26, %36 : vector<2x32xf32>
    %38 = arith.mulf %20, %28 : vector<2x32xf32>
    %39 = arith.addf %37, %38 : vector<2x32xf32>
    %40 = math.tanh %39 : vector<2x32xf32>
    %41 = arith.mulf %34, %40 : vector<2x32xf32>
    %c0_18 = arith.constant 0 : index
    %c0_19 = arith.constant 0 : index
    %c0_20 = arith.constant 0 : index
    %42 = vector.load %arg10[%c0_18, %c0_19, %c0_20] : memref<2x2x32xf32, #tpu.memory_space<vmem>>, vector<1x2x32xf32>
    %43 = vector.shape_cast %42 : vector<1x2x32xf32> to vector<2x32xf32>
    %44 = vector.shape_cast %39 : vector<2x32xf32> to vector<1x2x32xf32>
    tpu.vector_store %arg10[%c0_18, %c0_19, %c0_20], %44 {strides = array<i32>} : memref<2x2x32xf32, #tpu.memory_space<vmem>>, vector<1x2x32xf32>,
    %c0_21 = arith.constant 0 : index
    %c0_22 = arith.constant 0 : index
    %c0_23 = arith.constant 0 : index
    %45 = vector.load %arg9[%c0_21, %c0_22, %c0_23] : memref<2x2x32xf32, #tpu.memory_space<vmem>>, vector<1x2x32xf32>
    %46 = vector.shape_cast %45 : vector<1x2x32xf32> to vector<2x32xf32>
    %47 = vector.shape_cast %41 : vector<2x32xf32> to vector<1x2x32xf32>
    tpu.vector_store %arg9[%c0_21, %c0_22, %c0_23], %47 {strides = array<i32>} : memref<2x2x32xf32, #tpu.memory_space<vmem>>, vector<1x2x32xf32>,
    %c1 = arith.constant 1 : index
    %c0_24 = arith.constant 0 : index
    %c0_25 = arith.constant 0 : index
    %48 = vector.load %arg9[%c1, %c0_24, %c0_25] : memref<2x2x32xf32, #tpu.memory_space<vmem>>, vector<1x2x32xf32>
    %49 = vector.shape_cast %48 : vector<1x2x32xf32> to vector<2x32xf32>
    %50 = tpu.concatenate %41, %49 in 1 : vector<2x32xf32>, vector<2x32xf32> -> vector<2x64xf32>
    %c1_26 = arith.constant 1 : index
    %c0_27 = arith.constant 0 : index
    %c0_28 = arith.constant 0 : index
    %51 = vector.load %arg4[%c1_26, %c0_27, %c0_28] : memref<2x64x128xf32, #tpu.memory_space<vmem>>, vector<1x64x128xf32>
    %52 = vector.shape_cast %51 : vector<1x64x128xf32> to vector<64x128xf32>
    %cst_29 = arith.constant dense<0.000000e+00> : vector<2x128xf32>
    %53 = tpu.matmul %50, %52, %cst_29 {dimension_numbers = #tpu.dot_dimension_numbers<[1], [0], [0], [1], [0, 0, 1, 1], [], []>} : vector<2x64xf32>, vector<64x128xf32>, vector<2x128xf32> -> vector<2x128xf32>
    %c1_30 = arith.constant 1 : index
    %c0_31 = arith.constant 0 : index
    %c0_32 = arith.constant 0 : index
    %54 = vector.load %arg5[%c1_30, %c0_31, %c0_32] : memref<2x1x128xf32, #tpu.memory_space<vmem>>, vector<1x1x128xf32>
    %55 = vector.shape_cast %54 : vector<1x1x128xf32> to vector<1x128xf32>
    %56 = vector.broadcast %55 : vector<1x128xf32> to vector<2x128xf32>
    %57 = arith.addf %53, %56 : vector<2x128xf32>
    %58 = vector.extract_strided_slice %57 {offsets = [0, 0], sizes = [2, 32], strides = [1, 1]} : vector<2x128xf32> to vector<2x32xf32>
    %59 = arith.negf %58 : vector<2x32xf32>
    %60 = math.exp %59 : vector<2x32xf32>
    %cst_33 = arith.constant 1.000000e+00 : f32
    %61 = vector.broadcast %cst_33 : f32 to vector<2x32xf32>
    %62 = arith.addf %61, %60 : vector<2x32xf32>
    %63 = arith.divf %61, %62 : vector<2x32xf32>
    %64 = vector.extract_strided_slice %57 {offsets = [0, 32], sizes = [2, 32], strides = [1, 1]} : vector<2x128xf32> to vector<2x32xf32>
    %65 = arith.negf %64 : vector<2x32xf32>
    %66 = math.exp %65 : vector<2x32xf32>
    %cst_34 = arith.constant 1.000000e+00 : f32
    %67 = vector.broadcast %cst_34 : f32 to vector<2x32xf32>
    %68 = arith.addf %67, %66 : vector<2x32xf32>
    %69 = arith.divf %67, %68 : vector<2x32xf32>
    %70 = vector.extract_strided_slice %57 {offsets = [0, 64], sizes = [2, 32], strides = [1, 1]} : vector<2x128xf32> to vector<2x32xf32>
    %71 = math.tanh %70 : vector<2x32xf32>
    %72 = vector.extract_strided_slice %57 {offsets = [0, 96], sizes = [2, 32], strides = [1, 1]} : vector<2x128xf32> to vector<2x32xf32>
    %73 = arith.negf %72 : vector<2x32xf32>
    %74 = math.exp %73 : vector<2x32xf32>
    %cst_35 = arith.constant 1.000000e+00 : f32
    %75 = vector.broadcast %cst_35 : f32 to vector<2x32xf32>
    %76 = arith.addf %75, %74 : vector<2x32xf32>
    %77 = arith.divf %75, %76 : vector<2x32xf32>
    %c1_36 = arith.constant 1 : index
    %c0_37 = arith.constant 0 : index
    %c0_38 = arith.constant 0 : index
    %78 = vector.load %arg10[%c1_36, %c0_37, %c0_38] : memref<2x2x32xf32, #tpu.memory_space<vmem>>, vector<1x2x32xf32>
    %79 = vector.shape_cast %78 : vector<1x2x32xf32> to vector<2x32xf32>
    %80 = arith.mulf %69, %79 : vector<2x32xf32>
    %81 = arith.mulf %63, %71 : vector<2x32xf32>
    %82 = arith.addf %80, %81 : vector<2x32xf32>
    %83 = math.tanh %82 : vector<2x32xf32>
    %84 = arith.mulf %77, %83 : vector<2x32xf32>
    %c1_39 = arith.constant 1 : index
    %c0_40 = arith.constant 0 : index
    %c0_41 = arith.constant 0 : index
    %85 = vector.load %arg10[%c1_39, %c0_40, %c0_41] : memref<2x2x32xf32, #tpu.memory_space<vmem>>, vector<1x2x32xf32>
    %86 = vector.shape_cast %85 : vector<1x2x32xf32> to vector<2x32xf32>
    %87 = vector.shape_cast %82 : vector<2x32xf32> to vector<1x2x32xf32>
    tpu.vector_store %arg10[%c1_39, %c0_40, %c0_41], %87 {strides = array<i32>} : memref<2x2x32xf32, #tpu.memory_space<vmem>>, vector<1x2x32xf32>,
    %c1_42 = arith.constant 1 : index
    %c0_43 = arith.constant 0 : index
    %c0_44 = arith.constant 0 : index
    %88 = vector.load %arg9[%c1_42, %c0_43, %c0_44] : memref<2x2x32xf32, #tpu.memory_space<vmem>>, vector<1x2x32xf32>
    %89 = vector.shape_cast %88 : vector<1x2x32xf32> to vector<2x32xf32>
    %90 = vector.shape_cast %84 : vector<2x32xf32> to vector<1x2x32xf32>
    tpu.vector_store %arg9[%c1_42, %c0_43, %c0_44], %90 {strides = array<i32>} : memref<2x2x32xf32, #tpu.memory_space<vmem>>, vector<1x2x32xf32>,
    %c0_45 = arith.constant 0 : index
    %c0_46 = arith.constant 0 : index
    %91 = vector.load %arg11[%c0_45, %c0_46] : memref<16x32xf32, #tpu.memory_space<vmem>>, vector<2x32xf32>
    tpu.vector_store %arg11[%c0_45, %c0_46], %84 {strides = array<i32>} : memref<16x32xf32, #tpu.memory_space<vmem>>, vector<2x32xf32>,
    %c1_47 = arith.constant 1 : index
    %c0_48 = arith.constant 0 : index
    %c0_49 = arith.constant 0 : index
    %92 = vector.load %arg1[%c1_47, %c0_48, %c0_49] : memref<8x2x32xf32, #tpu.memory_space<vmem>>, vector<1x2x32xf32>
    %93 = vector.shape_cast %92 : vector<1x2x32xf32> to vector<2x32xf32>
    %c0_50 = arith.constant 0 : index
    %c0_51 = arith.constant 0 : index
    %c0_52 = arith.constant 0 : index
    %94 = vector.load %arg9[%c0_50, %c0_51, %c0_52] : memref<2x2x32xf32, #tpu.memory_space<vmem>>, vector<1x2x32xf32>
    %95 = vector.shape_cast %94 : vector<1x2x32xf32> to vector<2x32xf32>
    %96 = tpu.concatenate %93, %95 in 1 : vector<2x32xf32>, vector<2x32xf32> -> vector<2x64xf32>
    %c0_53 = arith.constant 0 : index
    %c0_54 = arith.constant 0 : index
    %c0_55 = arith.constant 0 : index
    %97 = vector.load %arg4[%c0_53, %c0_54, %c0_55] : memref<2x64x128xf32, #tpu.memory_space<vmem>>, vector<1x64x128xf32>
    %98 = vector.shape_cast %97 : vector<1x64x128xf32> to vector<64x128xf32>
    %cst_56 = arith.constant dense<0.000000e+00> : vector<2x128xf32>
    %99 = tpu.matmul %96, %98, %cst_56 {dimension_numbers = #tpu.dot_dimension_numbers<[1], [0], [0], [1], [0, 0, 1, 1], [], []>} : vector<2x64xf32>, vector<64x128xf32>, vector<2x128xf32> -> vector<2x128xf32>
    %c0_57 = arith.constant 0 : index
    %c0_58 = arith.constant 0 : index
    %c0_59 = arith.constant 0 : index
    %100 = vector.load %arg5[%c0_57, %c0_58, %c0_59] : memref<2x1x128xf32, #tpu.memory_space<vmem>>, vector<1x1x128xf32>
    %101 = vector.shape_cast %100 : vector<1x1x128xf32> to vector<1x128xf32>
    %102 = vector.broadcast %101 : vector<1x128xf32> to vector<2x128xf32>
    %103 = arith.addf %99, %102 : vector<2x128xf32>
    %104 = vector.extract_strided_slice %103 {offsets = [0, 0], sizes = [2, 32], strides = [1, 1]} : vector<2x128xf32> to vector<2x32xf32>
    %105 = arith.negf %104 : vector<2x32xf32>
    %106 = math.exp %105 : vector<2x32xf32>
    %cst_60 = arith.constant 1.000000e+00 : f32
    %107 = vector.broadcast %cst_60 : f32 to vector<2x32xf32>
    %108 = arith.addf %107, %106 : vector<2x32xf32>
    %109 = arith.divf %107, %108 : vector<2x32xf32>
    %110 = vector.extract_strided_slice %103 {offsets = [0, 32], sizes = [2, 32], strides = [1, 1]} : vector<2x128xf32> to vector<2x32xf32>
    %111 = arith.negf %110 : vector<2x32xf32>
    %112 = math.exp %111 : vector<2x32xf32>
    %cst_61 = arith.constant 1.000000e+00 : f32
    %113 = vector.broadcast %cst_61 : f32 to vector<2x32xf32>
    %114 = arith.addf %113, %112 : vector<2x32xf32>
    %115 = arith.divf %113, %114 : vector<2x32xf32>
    %116 = vector.extract_strided_slice %103 {offsets = [0, 64], sizes = [2, 32], strides = [1, 1]} : vector<2x128xf32> to vector<2x32xf32>
    %117 = math.tanh %116 : vector<2x32xf32>
    %118 = vector.extract_strided_slice %103 {offsets = [0, 96], sizes = [2, 32], strides = [1, 1]} : vector<2x128xf32> to vector<2x32xf32>
    %119 = arith.negf %118 : vector<2x32xf32>
    %120 = math.exp %119 : vector<2x32xf32>
    %cst_62 = arith.constant 1.000000e+00 : f32
    %121 = vector.broadcast %cst_62 : f32 to vector<2x32xf32>
    %122 = arith.addf %121, %120 : vector<2x32xf32>
    %123 = arith.divf %121, %122 : vector<2x32xf32>
    %c0_63 = arith.constant 0 : index
    %c0_64 = arith.constant 0 : index
    %c0_65 = arith.constant 0 : index
    %124 = vector.load %arg10[%c0_63, %c0_64, %c0_65] : memref<2x2x32xf32, #tpu.memory_space<vmem>>, vector<1x2x32xf32>
    %125 = vector.shape_cast %124 : vector<1x2x32xf32> to vector<2x32xf32>
    %126 = arith.mulf %115, %125 : vector<2x32xf32>
    %127 = arith.mulf %109, %117 : vector<2x32xf32>
    %128 = arith.addf %126, %127 : vector<2x32xf32>
    %129 = math.tanh %128 : vector<2x32xf32>
    %130 = arith.mulf %123, %129 : vector<2x32xf32>
    %c0_66 = arith.constant 0 : index
    %c0_67 = arith.constant 0 : index
    %c0_68 = arith.constant 0 : index
    %131 = vector.load %arg10[%c0_66, %c0_67, %c0_68] : memref<2x2x32xf32, #tpu.memory_space<vmem>>, vector<1x2x32xf32>
    %132 = vector.shape_cast %131 : vector<1x2x32xf32> to vector<2x32xf32>
    %133 = vector.shape_cast %128 : vector<2x32xf32> to vector<1x2x32xf32>
    tpu.vector_store %arg10[%c0_66, %c0_67, %c0_68], %133 {strides = array<i32>} : memref<2x2x32xf32, #tpu.memory_space<vmem>>, vector<1x2x32xf32>,
    %c0_69 = arith.constant 0 : index
    %c0_70 = arith.constant 0 : index
    %c0_71 = arith.constant 0 : index
    %134 = vector.load %arg9[%c0_69, %c0_70, %c0_71] : memref<2x2x32xf32, #tpu.memory_space<vmem>>, vector<1x2x32xf32>
    %135 = vector.shape_cast %134 : vector<1x2x32xf32> to vector<2x32xf32>
    %136 = vector.shape_cast %130 : vector<2x32xf32> to vector<1x2x32xf32>
    tpu.vector_store %arg9[%c0_69, %c0_70, %c0_71], %136 {strides = array<i32>} : memref<2x2x32xf32, #tpu.memory_space<vmem>>, vector<1x2x32xf32>,
    %c1_72 = arith.constant 1 : index
    %c0_73 = arith.constant 0 : index
    %c0_74 = arith.constant 0 : index
    %137 = vector.load %arg9[%c1_72, %c0_73, %c0_74] : memref<2x2x32xf32, #tpu.memory_space<vmem>>, vector<1x2x32xf32>
    %138 = vector.shape_cast %137 : vector<1x2x32xf32> to vector<2x32xf32>
    %139 = tpu.concatenate %130, %138 in 1 : vector<2x32xf32>, vector<2x32xf32> -> vector<2x64xf32>
    %c1_75 = arith.constant 1 : index
    %c0_76 = arith.constant 0 : index
    %c0_77 = arith.constant 0 : index
    %140 = vector.load %arg4[%c1_75, %c0_76, %c0_77] : memref<2x64x128xf32, #tpu.memory_space<vmem>>, vector<1x64x128xf32>
    %141 = vector.shape_cast %140 : vector<1x64x128xf32> to vector<64x128xf32>
    %cst_78 = arith.constant dense<0.000000e+00> : vector<2x128xf32>
    %142 = tpu.matmul %139, %141, %cst_78 {dimension_numbers = #tpu.dot_dimension_numbers<[1], [0], [0], [1], [0, 0, 1, 1], [], []>} : vector<2x64xf32>, vector<64x128xf32>, vector<2x128xf32> -> vector<2x128xf32>
    %c1_79 = arith.constant 1 : index
    %c0_80 = arith.constant 0 : index
    %c0_81 = arith.constant 0 : index
    %143 = vector.load %arg5[%c1_79, %c0_80, %c0_81] : memref<2x1x128xf32, #tpu.memory_space<vmem>>, vector<1x1x128xf32>
    %144 = vector.shape_cast %143 : vector<1x1x128xf32> to vector<1x128xf32>
    %145 = vector.broadcast %144 : vector<1x128xf32> to vector<2x128xf32>
    %146 = arith.addf %142, %145 : vector<2x128xf32>
    %147 = vector.extract_strided_slice %146 {offsets = [0, 0], sizes = [2, 32], strides = [1, 1]} : vector<2x128xf32> to vector<2x32xf32>
    %148 = arith.negf %147 : vector<2x32xf32>
    %149 = math.exp %148 : vector<2x32xf32>
    %cst_82 = arith.constant 1.000000e+00 : f32
    %150 = vector.broadcast %cst_82 : f32 to vector<2x32xf32>
    %151 = arith.addf %150, %149 : vector<2x32xf32>
    %152 = arith.divf %150, %151 : vector<2x32xf32>
    %153 = vector.extract_strided_slice %146 {offsets = [0, 32], sizes = [2, 32], strides = [1, 1]} : vector<2x128xf32> to vector<2x32xf32>
    %154 = arith.negf %153 : vector<2x32xf32>
    %155 = math.exp %154 : vector<2x32xf32>
    %cst_83 = arith.constant 1.000000e+00 : f32
    %156 = vector.broadcast %cst_83 : f32 to vector<2x32xf32>
    %157 = arith.addf %156, %155 : vector<2x32xf32>
    %158 = arith.divf %156, %157 : vector<2x32xf32>
    %159 = vector.extract_strided_slice %146 {offsets = [0, 64], sizes = [2, 32], strides = [1, 1]} : vector<2x128xf32> to vector<2x32xf32>
    %160 = math.tanh %159 : vector<2x32xf32>
    %161 = vector.extract_strided_slice %146 {offsets = [0, 96], sizes = [2, 32], strides = [1, 1]} : vector<2x128xf32> to vector<2x32xf32>
    %162 = arith.negf %161 : vector<2x32xf32>
    %163 = math.exp %162 : vector<2x32xf32>
    %cst_84 = arith.constant 1.000000e+00 : f32
    %164 = vector.broadcast %cst_84 : f32 to vector<2x32xf32>
    %165 = arith.addf %164, %163 : vector<2x32xf32>
    %166 = arith.divf %164, %165 : vector<2x32xf32>
    %c1_85 = arith.constant 1 : index
    %c0_86 = arith.constant 0 : index
    %c0_87 = arith.constant 0 : index
    %167 = vector.load %arg10[%c1_85, %c0_86, %c0_87] : memref<2x2x32xf32, #tpu.memory_space<vmem>>, vector<1x2x32xf32>
    %168 = vector.shape_cast %167 : vector<1x2x32xf32> to vector<2x32xf32>
    %169 = arith.mulf %158, %168 : vector<2x32xf32>
    %170 = arith.mulf %152, %160 : vector<2x32xf32>
    %171 = arith.addf %169, %170 : vector<2x32xf32>
    %172 = math.tanh %171 : vector<2x32xf32>
    %173 = arith.mulf %166, %172 : vector<2x32xf32>
    %c1_88 = arith.constant 1 : index
    %c0_89 = arith.constant 0 : index
    %c0_90 = arith.constant 0 : index
    %174 = vector.load %arg10[%c1_88, %c0_89, %c0_90] : memref<2x2x32xf32, #tpu.memory_space<vmem>>, vector<1x2x32xf32>
    %175 = vector.shape_cast %174 : vector<1x2x32xf32> to vector<2x32xf32>
    %176 = vector.shape_cast %171 : vector<2x32xf32> to vector<1x2x32xf32>
    tpu.vector_store %arg10[%c1_88, %c0_89, %c0_90], %176 {strides = array<i32>} : memref<2x2x32xf32, #tpu.memory_space<vmem>>, vector<1x2x32xf32>,
    %c1_91 = arith.constant 1 : index
    %c0_92 = arith.constant 0 : index
    %c0_93 = arith.constant 0 : index
    %177 = vector.load %arg9[%c1_91, %c0_92, %c0_93] : memref<2x2x32xf32, #tpu.memory_space<vmem>>, vector<1x2x32xf32>
    %178 = vector.shape_cast %177 : vector<1x2x32xf32> to vector<2x32xf32>
    %179 = vector.shape_cast %173 : vector<2x32xf32> to vector<1x2x32xf32>
    tpu.vector_store %arg9[%c1_91, %c0_92, %c0_93], %179 {strides = array<i32>} : memref<2x2x32xf32, #tpu.memory_space<vmem>>, vector<1x2x32xf32>,
    %c2 = arith.constant 2 : index
    %c0_94 = arith.constant 0 : index
    %180 = vector.load %arg11[%c2, %c0_94] : memref<16x32xf32, #tpu.memory_space<vmem>>, vector<2x32xf32>
    tpu.vector_store %arg11[%c2, %c0_94], %173 {strides = array<i32>} : memref<16x32xf32, #tpu.memory_space<vmem>>, vector<2x32xf32>,
    %c2_95 = arith.constant 2 : index
    %c0_96 = arith.constant 0 : index
    %c0_97 = arith.constant 0 : index
    %181 = vector.load %arg1[%c2_95, %c0_96, %c0_97] : memref<8x2x32xf32, #tpu.memory_space<vmem>>, vector<1x2x32xf32>
    %182 = vector.shape_cast %181 : vector<1x2x32xf32> to vector<2x32xf32>
    %c0_98 = arith.constant 0 : index
    %c0_99 = arith.constant 0 : index
    %c0_100 = arith.constant 0 : index
    %183 = vector.load %arg9[%c0_98, %c0_99, %c0_100] : memref<2x2x32xf32, #tpu.memory_space<vmem>>, vector<1x2x32xf32>
    %184 = vector.shape_cast %183 : vector<1x2x32xf32> to vector<2x32xf32>
    %185 = tpu.concatenate %182, %184 in 1 : vector<2x32xf32>, vector<2x32xf32> -> vector<2x64xf32>
    %c0_101 = arith.constant 0 : index
    %c0_102 = arith.constant 0 : index
    %c0_103 = arith.constant 0 : index
    %186 = vector.load %arg4[%c0_101, %c0_102, %c0_103] : memref<2x64x128xf32, #tpu.memory_space<vmem>>, vector<1x64x128xf32>
    %187 = vector.shape_cast %186 : vector<1x64x128xf32> to vector<64x128xf32>
    %cst_104 = arith.constant dense<0.000000e+00> : vector<2x128xf32>
    %188 = tpu.matmul %185, %187, %cst_104 {dimension_numbers = #tpu.dot_dimension_numbers<[1], [0], [0], [1], [0, 0, 1, 1], [], []>} : vector<2x64xf32>, vector<64x128xf32>, vector<2x128xf32> -> vector<2x128xf32>
    %c0_105 = arith.constant 0 : index
    %c0_106 = arith.constant 0 : index
    %c0_107 = arith.constant 0 : index
    %189 = vector.load %arg5[%c0_105, %c0_106, %c0_107] : memref<2x1x128xf32, #tpu.memory_space<vmem>>, vector<1x1x128xf32>
    %190 = vector.shape_cast %189 : vector<1x1x128xf32> to vector<1x128xf32>
    %191 = vector.broadcast %190 : vector<1x128xf32> to vector<2x128xf32>
    %192 = arith.addf %188, %191 : vector<2x128xf32>
    %193 = vector.extract_strided_slice %192 {offsets = [0, 0], sizes = [2, 32], strides = [1, 1]} : vector<2x128xf32> to vector<2x32xf32>
    %194 = arith.negf %193 : vector<2x32xf32>
    %195 = math.exp %194 : vector<2x32xf32>
    %cst_108 = arith.constant 1.000000e+00 : f32
    %196 = vector.broadcast %cst_108 : f32 to vector<2x32xf32>
    %197 = arith.addf %196, %195 : vector<2x32xf32>
    %198 = arith.divf %196, %197 : vector<2x32xf32>
    %199 = vector.extract_strided_slice %192 {offsets = [0, 32], sizes = [2, 32], strides = [1, 1]} : vector<2x128xf32> to vector<2x32xf32>
    %200 = arith.negf %199 : vector<2x32xf32>
    %201 = math.exp %200 : vector<2x32xf32>
    %cst_109 = arith.constant 1.000000e+00 : f32
    %202 = vector.broadcast %cst_109 : f32 to vector<2x32xf32>
    %203 = arith.addf %202, %201 : vector<2x32xf32>
    %204 = arith.divf %202, %203 : vector<2x32xf32>
    %205 = vector.extract_strided_slice %192 {offsets = [0, 64], sizes = [2, 32], strides = [1, 1]} : vector<2x128xf32> to vector<2x32xf32>
    %206 = math.tanh %205 : vector<2x32xf32>
    %207 = vector.extract_strided_slice %192 {offsets = [0, 96], sizes = [2, 32], strides = [1, 1]} : vector<2x128xf32> to vector<2x32xf32>
    %208 = arith.negf %207 : vector<2x32xf32>
    %209 = math.exp %208 : vector<2x32xf32>
    %cst_110 = arith.constant 1.000000e+00 : f32
    %210 = vector.broadcast %cst_110 : f32 to vector<2x32xf32>
    %211 = arith.addf %210, %209 : vector<2x32xf32>
    %212 = arith.divf %210, %211 : vector<2x32xf32>
    %c0_111 = arith.constant 0 : index
    %c0_112 = arith.constant 0 : index
    %c0_113 = arith.constant 0 : index
    %213 = vector.load %arg10[%c0_111, %c0_112, %c0_113] : memref<2x2x32xf32, #tpu.memory_space<vmem>>, vector<1x2x32xf32>
    %214 = vector.shape_cast %213 : vector<1x2x32xf32> to vector<2x32xf32>
    %215 = arith.mulf %204, %214 : vector<2x32xf32>
    %216 = arith.mulf %198, %206 : vector<2x32xf32>
    %217 = arith.addf %215, %216 : vector<2x32xf32>
    %218 = math.tanh %217 : vector<2x32xf32>
    %219 = arith.mulf %212, %218 : vector<2x32xf32>
    %c0_114 = arith.constant 0 : index
    %c0_115 = arith.constant 0 : index
    %c0_116 = arith.constant 0 : index
    %220 = vector.load %arg10[%c0_114, %c0_115, %c0_116] : memref<2x2x32xf32, #tpu.memory_space<vmem>>, vector<1x2x32xf32>
    %221 = vector.shape_cast %220 : vector<1x2x32xf32> to vector<2x32xf32>
    %222 = vector.shape_cast %217 : vector<2x32xf32> to vector<1x2x32xf32>
    tpu.vector_store %arg10[%c0_114, %c0_115, %c0_116], %222 {strides = array<i32>} : memref<2x2x32xf32, #tpu.memory_space<vmem>>, vector<1x2x32xf32>,
    %c0_117 = arith.constant 0 : index
    %c0_118 = arith.constant 0 : index
    %c0_119 = arith.constant 0 : index
    %223 = vector.load %arg9[%c0_117, %c0_118, %c0_119] : memref<2x2x32xf32, #tpu.memory_space<vmem>>, vector<1x2x32xf32>
    %224 = vector.shape_cast %223 : vector<1x2x32xf32> to vector<2x32xf32>
    %225 = vector.shape_cast %219 : vector<2x32xf32> to vector<1x2x32xf32>
    tpu.vector_store %arg9[%c0_117, %c0_118, %c0_119], %225 {strides = array<i32>} : memref<2x2x32xf32, #tpu.memory_space<vmem>>, vector<1x2x32xf32>,
    %c1_120 = arith.constant 1 : index
    %c0_121 = arith.constant 0 : index
    %c0_122 = arith.constant 0 : index
    %226 = vector.load %arg9[%c1_120, %c0_121, %c0_122] : memref<2x2x32xf32, #tpu.memory_space<vmem>>, vector<1x2x32xf32>
    %227 = vector.shape_cast %226 : vector<1x2x32xf32> to vector<2x32xf32>
    %228 = tpu.concatenate %219, %227 in 1 : vector<2x32xf32>, vector<2x32xf32> -> vector<2x64xf32>
    %c1_123 = arith.constant 1 : index
    %c0_124 = arith.constant 0 : index
    %c0_125 = arith.constant 0 : index
    %229 = vector.load %arg4[%c1_123, %c0_124, %c0_125] : memref<2x64x128xf32, #tpu.memory_space<vmem>>, vector<1x64x128xf32>
    %230 = vector.shape_cast %229 : vector<1x64x128xf32> to vector<64x128xf32>
    %cst_126 = arith.constant dense<0.000000e+00> : vector<2x128xf32>
    %231 = tpu.matmul %228, %230, %cst_126 {dimension_numbers = #tpu.dot_dimension_numbers<[1], [0], [0], [1], [0, 0, 1, 1], [], []>} : vector<2x64xf32>, vector<64x128xf32>, vector<2x128xf32> -> vector<2x128xf32>
    %c1_127 = arith.constant 1 : index
    %c0_128 = arith.constant 0 : index
    %c0_129 = arith.constant 0 : index
    %232 = vector.load %arg5[%c1_127, %c0_128, %c0_129] : memref<2x1x128xf32, #tpu.memory_space<vmem>>, vector<1x1x128xf32>
    %233 = vector.shape_cast %232 : vector<1x1x128xf32> to vector<1x128xf32>
    %234 = vector.broadcast %233 : vector<1x128xf32> to vector<2x128xf32>
    %235 = arith.addf %231, %234 : vector<2x128xf32>
    %236 = vector.extract_strided_slice %235 {offsets = [0, 0], sizes = [2, 32], strides = [1, 1]} : vector<2x128xf32> to vector<2x32xf32>
    %237 = arith.negf %236 : vector<2x32xf32>
    %238 = math.exp %237 : vector<2x32xf32>
    %cst_130 = arith.constant 1.000000e+00 : f32
    %239 = vector.broadcast %cst_130 : f32 to vector<2x32xf32>
    %240 = arith.addf %239, %238 : vector<2x32xf32>
    %241 = arith.divf %239, %240 : vector<2x32xf32>
    %242 = vector.extract_strided_slice %235 {offsets = [0, 32], sizes = [2, 32], strides = [1, 1]} : vector<2x128xf32> to vector<2x32xf32>
    %243 = arith.negf %242 : vector<2x32xf32>
    %244 = math.exp %243 : vector<2x32xf32>
    %cst_131 = arith.constant 1.000000e+00 : f32
    %245 = vector.broadcast %cst_131 : f32 to vector<2x32xf32>
    %246 = arith.addf %245, %244 : vector<2x32xf32>
    %247 = arith.divf %245, %246 : vector<2x32xf32>
    %248 = vector.extract_strided_slice %235 {offsets = [0, 64], sizes = [2, 32], strides = [1, 1]} : vector<2x128xf32> to vector<2x32xf32>
    %249 = math.tanh %248 : vector<2x32xf32>
    %250 = vector.extract_strided_slice %235 {offsets = [0, 96], sizes = [2, 32], strides = [1, 1]} : vector<2x128xf32> to vector<2x32xf32>
    %251 = arith.negf %250 : vector<2x32xf32>
    %252 = math.exp %251 : vector<2x32xf32>
    %cst_132 = arith.constant 1.000000e+00 : f32
    %253 = vector.broadcast %cst_132 : f32 to vector<2x32xf32>
    %254 = arith.addf %253, %252 : vector<2x32xf32>
    %255 = arith.divf %253, %254 : vector<2x32xf32>
    %c1_133 = arith.constant 1 : index
    %c0_134 = arith.constant 0 : index
    %c0_135 = arith.constant 0 : index
    %256 = vector.load %arg10[%c1_133, %c0_134, %c0_135] : memref<2x2x32xf32, #tpu.memory_space<vmem>>, vector<1x2x32xf32>
    %257 = vector.shape_cast %256 : vector<1x2x32xf32> to vector<2x32xf32>
    %258 = arith.mulf %247, %257 : vector<2x32xf32>
    %259 = arith.mulf %241, %249 : vector<2x32xf32>
    %260 = arith.addf %258, %259 : vector<2x32xf32>
    %261 = math.tanh %260 : vector<2x32xf32>
    %262 = arith.mulf %255, %261 : vector<2x32xf32>
    %c1_136 = arith.constant 1 : index
    %c0_137 = arith.constant 0 : index
    %c0_138 = arith.constant 0 : index
    %263 = vector.load %arg10[%c1_136, %c0_137, %c0_138] : memref<2x2x32xf32, #tpu.memory_space<vmem>>, vector<1x2x32xf32>
    %264 = vector.shape_cast %263 : vector<1x2x32xf32> to vector<2x32xf32>
    %265 = vector.shape_cast %260 : vector<2x32xf32> to vector<1x2x32xf32>
    tpu.vector_store %arg10[%c1_136, %c0_137, %c0_138], %265 {strides = array<i32>} : memref<2x2x32xf32, #tpu.memory_space<vmem>>, vector<1x2x32xf32>,
    %c1_139 = arith.constant 1 : index
    %c0_140 = arith.constant 0 : index
    %c0_141 = arith.constant 0 : index
    %266 = vector.load %arg9[%c1_139, %c0_140, %c0_141] : memref<2x2x32xf32, #tpu.memory_space<vmem>>, vector<1x2x32xf32>
    %267 = vector.shape_cast %266 : vector<1x2x32xf32> to vector<2x32xf32>
    %268 = vector.shape_cast %262 : vector<2x32xf32> to vector<1x2x32xf32>
    tpu.vector_store %arg9[%c1_139, %c0_140, %c0_141], %268 {strides = array<i32>} : memref<2x2x32xf32, #tpu.memory_space<vmem>>, vector<1x2x32xf32>,
    %c4 = arith.constant 4 : index
    %c0_142 = arith.constant 0 : index
    %269 = vector.load %arg11[%c4, %c0_142] : memref<16x32xf32, #tpu.memory_space<vmem>>, vector<2x32xf32>
    tpu.vector_store %arg11[%c4, %c0_142], %262 {strides = array<i32>} : memref<16x32xf32, #tpu.memory_space<vmem>>, vector<2x32xf32>,
    %c3 = arith.constant 3 : index
    %c0_143 = arith.constant 0 : index
    %c0_144 = arith.constant 0 : index
    %270 = vector.load %arg1[%c3, %c0_143, %c0_144] : memref<8x2x32xf32, #tpu.memory_space<vmem>>, vector<1x2x32xf32>
    %271 = vector.shape_cast %270 : vector<1x2x32xf32> to vector<2x32xf32>
    %c0_145 = arith.constant 0 : index
    %c0_146 = arith.constant 0 : index
    %c0_147 = arith.constant 0 : index
    %272 = vector.load %arg9[%c0_145, %c0_146, %c0_147] : memref<2x2x32xf32, #tpu.memory_space<vmem>>, vector<1x2x32xf32>
    %273 = vector.shape_cast %272 : vector<1x2x32xf32> to vector<2x32xf32>
    %274 = tpu.concatenate %271, %273 in 1 : vector<2x32xf32>, vector<2x32xf32> -> vector<2x64xf32>
    %c0_148 = arith.constant 0 : index
    %c0_149 = arith.constant 0 : index
    %c0_150 = arith.constant 0 : index
    %275 = vector.load %arg4[%c0_148, %c0_149, %c0_150] : memref<2x64x128xf32, #tpu.memory_space<vmem>>, vector<1x64x128xf32>
    %276 = vector.shape_cast %275 : vector<1x64x128xf32> to vector<64x128xf32>
    %cst_151 = arith.constant dense<0.000000e+00> : vector<2x128xf32>
    %277 = tpu.matmul %274, %276, %cst_151 {dimension_numbers = #tpu.dot_dimension_numbers<[1], [0], [0], [1], [0, 0, 1, 1], [], []>} : vector<2x64xf32>, vector<64x128xf32>, vector<2x128xf32> -> vector<2x128xf32>
    %c0_152 = arith.constant 0 : index
    %c0_153 = arith.constant 0 : index
    %c0_154 = arith.constant 0 : index
    %278 = vector.load %arg5[%c0_152, %c0_153, %c0_154] : memref<2x1x128xf32, #tpu.memory_space<vmem>>, vector<1x1x128xf32>
    %279 = vector.shape_cast %278 : vector<1x1x128xf32> to vector<1x128xf32>
    %280 = vector.broadcast %279 : vector<1x128xf32> to vector<2x128xf32>
    %281 = arith.addf %277, %280 : vector<2x128xf32>
    %282 = vector.extract_strided_slice %281 {offsets = [0, 0], sizes = [2, 32], strides = [1, 1]} : vector<2x128xf32> to vector<2x32xf32>
    %283 = arith.negf %282 : vector<2x32xf32>
    %284 = math.exp %283 : vector<2x32xf32>
    %cst_155 = arith.constant 1.000000e+00 : f32
    %285 = vector.broadcast %cst_155 : f32 to vector<2x32xf32>
    %286 = arith.addf %285, %284 : vector<2x32xf32>
    %287 = arith.divf %285, %286 : vector<2x32xf32>
    %288 = vector.extract_strided_slice %281 {offsets = [0, 32], sizes = [2, 32], strides = [1, 1]} : vector<2x128xf32> to vector<2x32xf32>
    %289 = arith.negf %288 : vector<2x32xf32>
    %290 = math.exp %289 : vector<2x32xf32>
    %cst_156 = arith.constant 1.000000e+00 : f32
    %291 = vector.broadcast %cst_156 : f32 to vector<2x32xf32>
    %292 = arith.addf %291, %290 : vector<2x32xf32>
    %293 = arith.divf %291, %292 : vector<2x32xf32>
    %294 = vector.extract_strided_slice %281 {offsets = [0, 64], sizes = [2, 32], strides = [1, 1]} : vector<2x128xf32> to vector<2x32xf32>
    %295 = math.tanh %294 : vector<2x32xf32>
    %296 = vector.extract_strided_slice %281 {offsets = [0, 96], sizes = [2, 32], strides = [1, 1]} : vector<2x128xf32> to vector<2x32xf32>
    %297 = arith.negf %296 : vector<2x32xf32>
    %298 = math.exp %297 : vector<2x32xf32>
    %cst_157 = arith.constant 1.000000e+00 : f32
    %299 = vector.broadcast %cst_157 : f32 to vector<2x32xf32>
    %300 = arith.addf %299, %298 : vector<2x32xf32>
    %301 = arith.divf %299, %300 : vector<2x32xf32>
    %c0_158 = arith.constant 0 : index
    %c0_159 = arith.constant 0 : index
    %c0_160 = arith.constant 0 : index
    %302 = vector.load %arg10[%c0_158, %c0_159, %c0_160] : memref<2x2x32xf32, #tpu.memory_space<vmem>>, vector<1x2x32xf32>
    %303 = vector.shape_cast %302 : vector<1x2x32xf32> to vector<2x32xf32>
    %304 = arith.mulf %293, %303 : vector<2x32xf32>
    %305 = arith.mulf %287, %295 : vector<2x32xf32>
    %306 = arith.addf %304, %305 : vector<2x32xf32>
    %307 = math.tanh %306 : vector<2x32xf32>
    %308 = arith.mulf %301, %307 : vector<2x32xf32>
    %c0_161 = arith.constant 0 : index
    %c0_162 = arith.constant 0 : index
    %c0_163 = arith.constant 0 : index
    %309 = vector.load %arg10[%c0_161, %c0_162, %c0_163] : memref<2x2x32xf32, #tpu.memory_space<vmem>>, vector<1x2x32xf32>
    %310 = vector.shape_cast %309 : vector<1x2x32xf32> to vector<2x32xf32>
    %311 = vector.shape_cast %306 : vector<2x32xf32> to vector<1x2x32xf32>
    tpu.vector_store %arg10[%c0_161, %c0_162, %c0_163], %311 {strides = array<i32>} : memref<2x2x32xf32, #tpu.memory_space<vmem>>, vector<1x2x32xf32>,
    %c0_164 = arith.constant 0 : index
    %c0_165 = arith.constant 0 : index
    %c0_166 = arith.constant 0 : index
    %312 = vector.load %arg9[%c0_164, %c0_165, %c0_166] : memref<2x2x32xf32, #tpu.memory_space<vmem>>, vector<1x2x32xf32>
    %313 = vector.shape_cast %312 : vector<1x2x32xf32> to vector<2x32xf32>
    %314 = vector.shape_cast %308 : vector<2x32xf32> to vector<1x2x32xf32>
    tpu.vector_store %arg9[%c0_164, %c0_165, %c0_166], %314 {strides = array<i32>} : memref<2x2x32xf32, #tpu.memory_space<vmem>>, vector<1x2x32xf32>,
    %c1_167 = arith.constant 1 : index
    %c0_168 = arith.constant 0 : index
    %c0_169 = arith.constant 0 : index
    %315 = vector.load %arg9[%c1_167, %c0_168, %c0_169] : memref<2x2x32xf32, #tpu.memory_space<vmem>>, vector<1x2x32xf32>
    %316 = vector.shape_cast %315 : vector<1x2x32xf32> to vector<2x32xf32>
    %317 = tpu.concatenate %308, %316 in 1 : vector<2x32xf32>, vector<2x32xf32> -> vector<2x64xf32>
    %c1_170 = arith.constant 1 : index
    %c0_171 = arith.constant 0 : index
    %c0_172 = arith.constant 0 : index
    %318 = vector.load %arg4[%c1_170, %c0_171, %c0_172] : memref<2x64x128xf32, #tpu.memory_space<vmem>>, vector<1x64x128xf32>
    %319 = vector.shape_cast %318 : vector<1x64x128xf32> to vector<64x128xf32>
    %cst_173 = arith.constant dense<0.000000e+00> : vector<2x128xf32>
    %320 = tpu.matmul %317, %319, %cst_173 {dimension_numbers = #tpu.dot_dimension_numbers<[1], [0], [0], [1], [0, 0, 1, 1], [], []>} : vector<2x64xf32>, vector<64x128xf32>, vector<2x128xf32> -> vector<2x128xf32>
    %c1_174 = arith.constant 1 : index
    %c0_175 = arith.constant 0 : index
    %c0_176 = arith.constant 0 : index
    %321 = vector.load %arg5[%c1_174, %c0_175, %c0_176] : memref<2x1x128xf32, #tpu.memory_space<vmem>>, vector<1x1x128xf32>
    %322 = vector.shape_cast %321 : vector<1x1x128xf32> to vector<1x128xf32>
    %323 = vector.broadcast %322 : vector<1x128xf32> to vector<2x128xf32>
    %324 = arith.addf %320, %323 : vector<2x128xf32>
    %325 = vector.extract_strided_slice %324 {offsets = [0, 0], sizes = [2, 32], strides = [1, 1]} : vector<2x128xf32> to vector<2x32xf32>
    %326 = arith.negf %325 : vector<2x32xf32>
    %327 = math.exp %326 : vector<2x32xf32>
    %cst_177 = arith.constant 1.000000e+00 : f32
    %328 = vector.broadcast %cst_177 : f32 to vector<2x32xf32>
    %329 = arith.addf %328, %327 : vector<2x32xf32>
    %330 = arith.divf %328, %329 : vector<2x32xf32>
    %331 = vector.extract_strided_slice %324 {offsets = [0, 32], sizes = [2, 32], strides = [1, 1]} : vector<2x128xf32> to vector<2x32xf32>
    %332 = arith.negf %331 : vector<2x32xf32>
    %333 = math.exp %332 : vector<2x32xf32>
    %cst_178 = arith.constant 1.000000e+00 : f32
    %334 = vector.broadcast %cst_178 : f32 to vector<2x32xf32>
    %335 = arith.addf %334, %333 : vector<2x32xf32>
    %336 = arith.divf %334, %335 : vector<2x32xf32>
    %337 = vector.extract_strided_slice %324 {offsets = [0, 64], sizes = [2, 32], strides = [1, 1]} : vector<2x128xf32> to vector<2x32xf32>
    %338 = math.tanh %337 : vector<2x32xf32>
    %339 = vector.extract_strided_slice %324 {offsets = [0, 96], sizes = [2, 32], strides = [1, 1]} : vector<2x128xf32> to vector<2x32xf32>
    %340 = arith.negf %339 : vector<2x32xf32>
    %341 = math.exp %340 : vector<2x32xf32>
    %cst_179 = arith.constant 1.000000e+00 : f32
    %342 = vector.broadcast %cst_179 : f32 to vector<2x32xf32>
    %343 = arith.addf %342, %341 : vector<2x32xf32>
    %344 = arith.divf %342, %343 : vector<2x32xf32>
    %c1_180 = arith.constant 1 : index
    %c0_181 = arith.constant 0 : index
    %c0_182 = arith.constant 0 : index
    %345 = vector.load %arg10[%c1_180, %c0_181, %c0_182] : memref<2x2x32xf32, #tpu.memory_space<vmem>>, vector<1x2x32xf32>
    %346 = vector.shape_cast %345 : vector<1x2x32xf32> to vector<2x32xf32>
    %347 = arith.mulf %336, %346 : vector<2x32xf32>
    %348 = arith.mulf %330, %338 : vector<2x32xf32>
    %349 = arith.addf %347, %348 : vector<2x32xf32>
    %350 = math.tanh %349 : vector<2x32xf32>
    %351 = arith.mulf %344, %350 : vector<2x32xf32>
    %c1_183 = arith.constant 1 : index
    %c0_184 = arith.constant 0 : index
    %c0_185 = arith.constant 0 : index
    %352 = vector.load %arg10[%c1_183, %c0_184, %c0_185] : memref<2x2x32xf32, #tpu.memory_space<vmem>>, vector<1x2x32xf32>
    %353 = vector.shape_cast %352 : vector<1x2x32xf32> to vector<2x32xf32>
    %354 = vector.shape_cast %349 : vector<2x32xf32> to vector<1x2x32xf32>
    tpu.vector_store %arg10[%c1_183, %c0_184, %c0_185], %354 {strides = array<i32>} : memref<2x2x32xf32, #tpu.memory_space<vmem>>, vector<1x2x32xf32>,
    %c1_186 = arith.constant 1 : index
    %c0_187 = arith.constant 0 : index
    %c0_188 = arith.constant 0 : index
    %355 = vector.load %arg9[%c1_186, %c0_187, %c0_188] : memref<2x2x32xf32, #tpu.memory_space<vmem>>, vector<1x2x32xf32>
    %356 = vector.shape_cast %355 : vector<1x2x32xf32> to vector<2x32xf32>
    %357 = vector.shape_cast %351 : vector<2x32xf32> to vector<1x2x32xf32>
    tpu.vector_store %arg9[%c1_186, %c0_187, %c0_188], %357 {strides = array<i32>} : memref<2x2x32xf32, #tpu.memory_space<vmem>>, vector<1x2x32xf32>,
    %c6 = arith.constant 6 : index
    %c0_189 = arith.constant 0 : index
    %358 = vector.load %arg11[%c6, %c0_189] : memref<16x32xf32, #tpu.memory_space<vmem>>, vector<2x32xf32>
    tpu.vector_store %arg11[%c6, %c0_189], %351 {strides = array<i32>} : memref<16x32xf32, #tpu.memory_space<vmem>>, vector<2x32xf32>,
    %c4_190 = arith.constant 4 : index
    %c0_191 = arith.constant 0 : index
    %c0_192 = arith.constant 0 : index
    %359 = vector.load %arg1[%c4_190, %c0_191, %c0_192] : memref<8x2x32xf32, #tpu.memory_space<vmem>>, vector<1x2x32xf32>
    %360 = vector.shape_cast %359 : vector<1x2x32xf32> to vector<2x32xf32>
    %c0_193 = arith.constant 0 : index
    %c0_194 = arith.constant 0 : index
    %c0_195 = arith.constant 0 : index
    %361 = vector.load %arg9[%c0_193, %c0_194, %c0_195] : memref<2x2x32xf32, #tpu.memory_space<vmem>>, vector<1x2x32xf32>
    %362 = vector.shape_cast %361 : vector<1x2x32xf32> to vector<2x32xf32>
    %363 = tpu.concatenate %360, %362 in 1 : vector<2x32xf32>, vector<2x32xf32> -> vector<2x64xf32>
    %c0_196 = arith.constant 0 : index
    %c0_197 = arith.constant 0 : index
    %c0_198 = arith.constant 0 : index
    %364 = vector.load %arg4[%c0_196, %c0_197, %c0_198] : memref<2x64x128xf32, #tpu.memory_space<vmem>>, vector<1x64x128xf32>
    %365 = vector.shape_cast %364 : vector<1x64x128xf32> to vector<64x128xf32>
    %cst_199 = arith.constant dense<0.000000e+00> : vector<2x128xf32>
    %366 = tpu.matmul %363, %365, %cst_199 {dimension_numbers = #tpu.dot_dimension_numbers<[1], [0], [0], [1], [0, 0, 1, 1], [], []>} : vector<2x64xf32>, vector<64x128xf32>, vector<2x128xf32> -> vector<2x128xf32>
    %c0_200 = arith.constant 0 : index
    %c0_201 = arith.constant 0 : index
    %c0_202 = arith.constant 0 : index
    %367 = vector.load %arg5[%c0_200, %c0_201, %c0_202] : memref<2x1x128xf32, #tpu.memory_space<vmem>>, vector<1x1x128xf32>
    %368 = vector.shape_cast %367 : vector<1x1x128xf32> to vector<1x128xf32>
    %369 = vector.broadcast %368 : vector<1x128xf32> to vector<2x128xf32>
    %370 = arith.addf %366, %369 : vector<2x128xf32>
    %371 = vector.extract_strided_slice %370 {offsets = [0, 0], sizes = [2, 32], strides = [1, 1]} : vector<2x128xf32> to vector<2x32xf32>
    %372 = arith.negf %371 : vector<2x32xf32>
    %373 = math.exp %372 : vector<2x32xf32>
    %cst_203 = arith.constant 1.000000e+00 : f32
    %374 = vector.broadcast %cst_203 : f32 to vector<2x32xf32>
    %375 = arith.addf %374, %373 : vector<2x32xf32>
    %376 = arith.divf %374, %375 : vector<2x32xf32>
    %377 = vector.extract_strided_slice %370 {offsets = [0, 32], sizes = [2, 32], strides = [1, 1]} : vector<2x128xf32> to vector<2x32xf32>
    %378 = arith.negf %377 : vector<2x32xf32>
    %379 = math.exp %378 : vector<2x32xf32>
    %cst_204 = arith.constant 1.000000e+00 : f32
    %380 = vector.broadcast %cst_204 : f32 to vector<2x32xf32>
    %381 = arith.addf %380, %379 : vector<2x32xf32>
    %382 = arith.divf %380, %381 : vector<2x32xf32>
    %383 = vector.extract_strided_slice %370 {offsets = [0, 64], sizes = [2, 32], strides = [1, 1]} : vector<2x128xf32> to vector<2x32xf32>
    %384 = math.tanh %383 : vector<2x32xf32>
    %385 = vector.extract_strided_slice %370 {offsets = [0, 96], sizes = [2, 32], strides = [1, 1]} : vector<2x128xf32> to vector<2x32xf32>
    %386 = arith.negf %385 : vector<2x32xf32>
    %387 = math.exp %386 : vector<2x32xf32>
    %cst_205 = arith.constant 1.000000e+00 : f32
    %388 = vector.broadcast %cst_205 : f32 to vector<2x32xf32>
    %389 = arith.addf %388, %387 : vector<2x32xf32>
    %390 = arith.divf %388, %389 : vector<2x32xf32>
    %c0_206 = arith.constant 0 : index
    %c0_207 = arith.constant 0 : index
    %c0_208 = arith.constant 0 : index
    %391 = vector.load %arg10[%c0_206, %c0_207, %c0_208] : memref<2x2x32xf32, #tpu.memory_space<vmem>>, vector<1x2x32xf32>
    %392 = vector.shape_cast %391 : vector<1x2x32xf32> to vector<2x32xf32>
    %393 = arith.mulf %382, %392 : vector<2x32xf32>
    %394 = arith.mulf %376, %384 : vector<2x32xf32>
    %395 = arith.addf %393, %394 : vector<2x32xf32>
    %396 = math.tanh %395 : vector<2x32xf32>
    %397 = arith.mulf %390, %396 : vector<2x32xf32>
    %c0_209 = arith.constant 0 : index
    %c0_210 = arith.constant 0 : index
    %c0_211 = arith.constant 0 : index
    %398 = vector.load %arg10[%c0_209, %c0_210, %c0_211] : memref<2x2x32xf32, #tpu.memory_space<vmem>>, vector<1x2x32xf32>
    %399 = vector.shape_cast %398 : vector<1x2x32xf32> to vector<2x32xf32>
    %400 = vector.shape_cast %395 : vector<2x32xf32> to vector<1x2x32xf32>
    tpu.vector_store %arg10[%c0_209, %c0_210, %c0_211], %400 {strides = array<i32>} : memref<2x2x32xf32, #tpu.memory_space<vmem>>, vector<1x2x32xf32>,
    %c0_212 = arith.constant 0 : index
    %c0_213 = arith.constant 0 : index
    %c0_214 = arith.constant 0 : index
    %401 = vector.load %arg9[%c0_212, %c0_213, %c0_214] : memref<2x2x32xf32, #tpu.memory_space<vmem>>, vector<1x2x32xf32>
    %402 = vector.shape_cast %401 : vector<1x2x32xf32> to vector<2x32xf32>
    %403 = vector.shape_cast %397 : vector<2x32xf32> to vector<1x2x32xf32>
    tpu.vector_store %arg9[%c0_212, %c0_213, %c0_214], %403 {strides = array<i32>} : memref<2x2x32xf32, #tpu.memory_space<vmem>>, vector<1x2x32xf32>,
    %c1_215 = arith.constant 1 : index
    %c0_216 = arith.constant 0 : index
    %c0_217 = arith.constant 0 : index
    %404 = vector.load %arg9[%c1_215, %c0_216, %c0_217] : memref<2x2x32xf32, #tpu.memory_space<vmem>>, vector<1x2x32xf32>
    %405 = vector.shape_cast %404 : vector<1x2x32xf32> to vector<2x32xf32>
    %406 = tpu.concatenate %397, %405 in 1 : vector<2x32xf32>, vector<2x32xf32> -> vector<2x64xf32>
    %c1_218 = arith.constant 1 : index
    %c0_219 = arith.constant 0 : index
    %c0_220 = arith.constant 0 : index
    %407 = vector.load %arg4[%c1_218, %c0_219, %c0_220] : memref<2x64x128xf32, #tpu.memory_space<vmem>>, vector<1x64x128xf32>
    %408 = vector.shape_cast %407 : vector<1x64x128xf32> to vector<64x128xf32>
    %cst_221 = arith.constant dense<0.000000e+00> : vector<2x128xf32>
    %409 = tpu.matmul %406, %408, %cst_221 {dimension_numbers = #tpu.dot_dimension_numbers<[1], [0], [0], [1], [0, 0, 1, 1], [], []>} : vector<2x64xf32>, vector<64x128xf32>, vector<2x128xf32> -> vector<2x128xf32>
    %c1_222 = arith.constant 1 : index
    %c0_223 = arith.constant 0 : index
    %c0_224 = arith.constant 0 : index
    %410 = vector.load %arg5[%c1_222, %c0_223, %c0_224] : memref<2x1x128xf32, #tpu.memory_space<vmem>>, vector<1x1x128xf32>
    %411 = vector.shape_cast %410 : vector<1x1x128xf32> to vector<1x128xf32>
    %412 = vector.broadcast %411 : vector<1x128xf32> to vector<2x128xf32>
    %413 = arith.addf %409, %412 : vector<2x128xf32>
    %414 = vector.extract_strided_slice %413 {offsets = [0, 0], sizes = [2, 32], strides = [1, 1]} : vector<2x128xf32> to vector<2x32xf32>
    %415 = arith.negf %414 : vector<2x32xf32>
    %416 = math.exp %415 : vector<2x32xf32>
    %cst_225 = arith.constant 1.000000e+00 : f32
    %417 = vector.broadcast %cst_225 : f32 to vector<2x32xf32>
    %418 = arith.addf %417, %416 : vector<2x32xf32>
    %419 = arith.divf %417, %418 : vector<2x32xf32>
    %420 = vector.extract_strided_slice %413 {offsets = [0, 32], sizes = [2, 32], strides = [1, 1]} : vector<2x128xf32> to vector<2x32xf32>
    %421 = arith.negf %420 : vector<2x32xf32>
    %422 = math.exp %421 : vector<2x32xf32>
    %cst_226 = arith.constant 1.000000e+00 : f32
    %423 = vector.broadcast %cst_226 : f32 to vector<2x32xf32>
    %424 = arith.addf %423, %422 : vector<2x32xf32>
    %425 = arith.divf %423, %424 : vector<2x32xf32>
    %426 = vector.extract_strided_slice %413 {offsets = [0, 64], sizes = [2, 32], strides = [1, 1]} : vector<2x128xf32> to vector<2x32xf32>
    %427 = math.tanh %426 : vector<2x32xf32>
    %428 = vector.extract_strided_slice %413 {offsets = [0, 96], sizes = [2, 32], strides = [1, 1]} : vector<2x128xf32> to vector<2x32xf32>
    %429 = arith.negf %428 : vector<2x32xf32>
    %430 = math.exp %429 : vector<2x32xf32>
    %cst_227 = arith.constant 1.000000e+00 : f32
    %431 = vector.broadcast %cst_227 : f32 to vector<2x32xf32>
    %432 = arith.addf %431, %430 : vector<2x32xf32>
    %433 = arith.divf %431, %432 : vector<2x32xf32>
    %c1_228 = arith.constant 1 : index
    %c0_229 = arith.constant 0 : index
    %c0_230 = arith.constant 0 : index
    %434 = vector.load %arg10[%c1_228, %c0_229, %c0_230] : memref<2x2x32xf32, #tpu.memory_space<vmem>>, vector<1x2x32xf32>
    %435 = vector.shape_cast %434 : vector<1x2x32xf32> to vector<2x32xf32>
    %436 = arith.mulf %425, %435 : vector<2x32xf32>
    %437 = arith.mulf %419, %427 : vector<2x32xf32>
    %438 = arith.addf %436, %437 : vector<2x32xf32>
    %439 = math.tanh %438 : vector<2x32xf32>
    %440 = arith.mulf %433, %439 : vector<2x32xf32>
    %c1_231 = arith.constant 1 : index
    %c0_232 = arith.constant 0 : index
    %c0_233 = arith.constant 0 : index
    %441 = vector.load %arg10[%c1_231, %c0_232, %c0_233] : memref<2x2x32xf32, #tpu.memory_space<vmem>>, vector<1x2x32xf32>
    %442 = vector.shape_cast %441 : vector<1x2x32xf32> to vector<2x32xf32>
    %443 = vector.shape_cast %438 : vector<2x32xf32> to vector<1x2x32xf32>
    tpu.vector_store %arg10[%c1_231, %c0_232, %c0_233], %443 {strides = array<i32>} : memref<2x2x32xf32, #tpu.memory_space<vmem>>, vector<1x2x32xf32>,
    %c1_234 = arith.constant 1 : index
    %c0_235 = arith.constant 0 : index
    %c0_236 = arith.constant 0 : index
    %444 = vector.load %arg9[%c1_234, %c0_235, %c0_236] : memref<2x2x32xf32, #tpu.memory_space<vmem>>, vector<1x2x32xf32>
    %445 = vector.shape_cast %444 : vector<1x2x32xf32> to vector<2x32xf32>
    %446 = vector.shape_cast %440 : vector<2x32xf32> to vector<1x2x32xf32>
    tpu.vector_store %arg9[%c1_234, %c0_235, %c0_236], %446 {strides = array<i32>} : memref<2x2x32xf32, #tpu.memory_space<vmem>>, vector<1x2x32xf32>,
    %c8 = arith.constant 8 : index
    %c0_237 = arith.constant 0 : index
    %447 = vector.load %arg11[%c8, %c0_237] : memref<16x32xf32, #tpu.memory_space<vmem>>, vector<2x32xf32>
    tpu.vector_store %arg11[%c8, %c0_237], %440 {strides = array<i32>} : memref<16x32xf32, #tpu.memory_space<vmem>>, vector<2x32xf32>,
    %c5 = arith.constant 5 : index
    %c0_238 = arith.constant 0 : index
    %c0_239 = arith.constant 0 : index
    %448 = vector.load %arg1[%c5, %c0_238, %c0_239] : memref<8x2x32xf32, #tpu.memory_space<vmem>>, vector<1x2x32xf32>
    %449 = vector.shape_cast %448 : vector<1x2x32xf32> to vector<2x32xf32>
    %c0_240 = arith.constant 0 : index
    %c0_241 = arith.constant 0 : index
    %c0_242 = arith.constant 0 : index
    %450 = vector.load %arg9[%c0_240, %c0_241, %c0_242] : memref<2x2x32xf32, #tpu.memory_space<vmem>>, vector<1x2x32xf32>
    %451 = vector.shape_cast %450 : vector<1x2x32xf32> to vector<2x32xf32>
    %452 = tpu.concatenate %449, %451 in 1 : vector<2x32xf32>, vector<2x32xf32> -> vector<2x64xf32>
    %c0_243 = arith.constant 0 : index
    %c0_244 = arith.constant 0 : index
    %c0_245 = arith.constant 0 : index
    %453 = vector.load %arg4[%c0_243, %c0_244, %c0_245] : memref<2x64x128xf32, #tpu.memory_space<vmem>>, vector<1x64x128xf32>
    %454 = vector.shape_cast %453 : vector<1x64x128xf32> to vector<64x128xf32>
    %cst_246 = arith.constant dense<0.000000e+00> : vector<2x128xf32>
    %455 = tpu.matmul %452, %454, %cst_246 {dimension_numbers = #tpu.dot_dimension_numbers<[1], [0], [0], [1], [0, 0, 1, 1], [], []>} : vector<2x64xf32>, vector<64x128xf32>, vector<2x128xf32> -> vector<2x128xf32>
    %c0_247 = arith.constant 0 : index
    %c0_248 = arith.constant 0 : index
    %c0_249 = arith.constant 0 : index
    %456 = vector.load %arg5[%c0_247, %c0_248, %c0_249] : memref<2x1x128xf32, #tpu.memory_space<vmem>>, vector<1x1x128xf32>
    %457 = vector.shape_cast %456 : vector<1x1x128xf32> to vector<1x128xf32>
    %458 = vector.broadcast %457 : vector<1x128xf32> to vector<2x128xf32>
    %459 = arith.addf %455, %458 : vector<2x128xf32>
    %460 = vector.extract_strided_slice %459 {offsets = [0, 0], sizes = [2, 32], strides = [1, 1]} : vector<2x128xf32> to vector<2x32xf32>
    %461 = arith.negf %460 : vector<2x32xf32>
    %462 = math.exp %461 : vector<2x32xf32>
    %cst_250 = arith.constant 1.000000e+00 : f32
    %463 = vector.broadcast %cst_250 : f32 to vector<2x32xf32>
    %464 = arith.addf %463, %462 : vector<2x32xf32>
    %465 = arith.divf %463, %464 : vector<2x32xf32>
    %466 = vector.extract_strided_slice %459 {offsets = [0, 32], sizes = [2, 32], strides = [1, 1]} : vector<2x128xf32> to vector<2x32xf32>
    %467 = arith.negf %466 : vector<2x32xf32>
    %468 = math.exp %467 : vector<2x32xf32>
    %cst_251 = arith.constant 1.000000e+00 : f32
    %469 = vector.broadcast %cst_251 : f32 to vector<2x32xf32>
    %470 = arith.addf %469, %468 : vector<2x32xf32>
    %471 = arith.divf %469, %470 : vector<2x32xf32>
    %472 = vector.extract_strided_slice %459 {offsets = [0, 64], sizes = [2, 32], strides = [1, 1]} : vector<2x128xf32> to vector<2x32xf32>
    %473 = math.tanh %472 : vector<2x32xf32>
    %474 = vector.extract_strided_slice %459 {offsets = [0, 96], sizes = [2, 32], strides = [1, 1]} : vector<2x128xf32> to vector<2x32xf32>
    %475 = arith.negf %474 : vector<2x32xf32>
    %476 = math.exp %475 : vector<2x32xf32>
    %cst_252 = arith.constant 1.000000e+00 : f32
    %477 = vector.broadcast %cst_252 : f32 to vector<2x32xf32>
    %478 = arith.addf %477, %476 : vector<2x32xf32>
    %479 = arith.divf %477, %478 : vector<2x32xf32>
    %c0_253 = arith.constant 0 : index
    %c0_254 = arith.constant 0 : index
    %c0_255 = arith.constant 0 : index
    %480 = vector.load %arg10[%c0_253, %c0_254, %c0_255] : memref<2x2x32xf32, #tpu.memory_space<vmem>>, vector<1x2x32xf32>
    %481 = vector.shape_cast %480 : vector<1x2x32xf32> to vector<2x32xf32>
    %482 = arith.mulf %471, %481 : vector<2x32xf32>
    %483 = arith.mulf %465, %473 : vector<2x32xf32>
    %484 = arith.addf %482, %483 : vector<2x32xf32>
    %485 = math.tanh %484 : vector<2x32xf32>
    %486 = arith.mulf %479, %485 : vector<2x32xf32>
    %c0_256 = arith.constant 0 : index
    %c0_257 = arith.constant 0 : index
    %c0_258 = arith.constant 0 : index
    %487 = vector.load %arg10[%c0_256, %c0_257, %c0_258] : memref<2x2x32xf32, #tpu.memory_space<vmem>>, vector<1x2x32xf32>
    %488 = vector.shape_cast %487 : vector<1x2x32xf32> to vector<2x32xf32>
    %489 = vector.shape_cast %484 : vector<2x32xf32> to vector<1x2x32xf32>
    tpu.vector_store %arg10[%c0_256, %c0_257, %c0_258], %489 {strides = array<i32>} : memref<2x2x32xf32, #tpu.memory_space<vmem>>, vector<1x2x32xf32>,
    %c0_259 = arith.constant 0 : index
    %c0_260 = arith.constant 0 : index
    %c0_261 = arith.constant 0 : index
    %490 = vector.load %arg9[%c0_259, %c0_260, %c0_261] : memref<2x2x32xf32, #tpu.memory_space<vmem>>, vector<1x2x32xf32>
    %491 = vector.shape_cast %490 : vector<1x2x32xf32> to vector<2x32xf32>
    %492 = vector.shape_cast %486 : vector<2x32xf32> to vector<1x2x32xf32>
    tpu.vector_store %arg9[%c0_259, %c0_260, %c0_261], %492 {strides = array<i32>} : memref<2x2x32xf32, #tpu.memory_space<vmem>>, vector<1x2x32xf32>,
    %c1_262 = arith.constant 1 : index
    %c0_263 = arith.constant 0 : index
    %c0_264 = arith.constant 0 : index
    %493 = vector.load %arg9[%c1_262, %c0_263, %c0_264] : memref<2x2x32xf32, #tpu.memory_space<vmem>>, vector<1x2x32xf32>
    %494 = vector.shape_cast %493 : vector<1x2x32xf32> to vector<2x32xf32>
    %495 = tpu.concatenate %486, %494 in 1 : vector<2x32xf32>, vector<2x32xf32> -> vector<2x64xf32>
    %c1_265 = arith.constant 1 : index
    %c0_266 = arith.constant 0 : index
    %c0_267 = arith.constant 0 : index
    %496 = vector.load %arg4[%c1_265, %c0_266, %c0_267] : memref<2x64x128xf32, #tpu.memory_space<vmem>>, vector<1x64x128xf32>
    %497 = vector.shape_cast %496 : vector<1x64x128xf32> to vector<64x128xf32>
    %cst_268 = arith.constant dense<0.000000e+00> : vector<2x128xf32>
    %498 = tpu.matmul %495, %497, %cst_268 {dimension_numbers = #tpu.dot_dimension_numbers<[1], [0], [0], [1], [0, 0, 1, 1], [], []>} : vector<2x64xf32>, vector<64x128xf32>, vector<2x128xf32> -> vector<2x128xf32>
    %c1_269 = arith.constant 1 : index
    %c0_270 = arith.constant 0 : index
    %c0_271 = arith.constant 0 : index
    %499 = vector.load %arg5[%c1_269, %c0_270, %c0_271] : memref<2x1x128xf32, #tpu.memory_space<vmem>>, vector<1x1x128xf32>
    %500 = vector.shape_cast %499 : vector<1x1x128xf32> to vector<1x128xf32>
    %501 = vector.broadcast %500 : vector<1x128xf32> to vector<2x128xf32>
    %502 = arith.addf %498, %501 : vector<2x128xf32>
    %503 = vector.extract_strided_slice %502 {offsets = [0, 0], sizes = [2, 32], strides = [1, 1]} : vector<2x128xf32> to vector<2x32xf32>
    %504 = arith.negf %503 : vector<2x32xf32>
    %505 = math.exp %504 : vector<2x32xf32>
    %cst_272 = arith.constant 1.000000e+00 : f32
    %506 = vector.broadcast %cst_272 : f32 to vector<2x32xf32>
    %507 = arith.addf %506, %505 : vector<2x32xf32>
    %508 = arith.divf %506, %507 : vector<2x32xf32>
    %509 = vector.extract_strided_slice %502 {offsets = [0, 32], sizes = [2, 32], strides = [1, 1]} : vector<2x128xf32> to vector<2x32xf32>
    %510 = arith.negf %509 : vector<2x32xf32>
    %511 = math.exp %510 : vector<2x32xf32>
    %cst_273 = arith.constant 1.000000e+00 : f32
    %512 = vector.broadcast %cst_273 : f32 to vector<2x32xf32>
    %513 = arith.addf %512, %511 : vector<2x32xf32>
    %514 = arith.divf %512, %513 : vector<2x32xf32>
    %515 = vector.extract_strided_slice %502 {offsets = [0, 64], sizes = [2, 32], strides = [1, 1]} : vector<2x128xf32> to vector<2x32xf32>
    %516 = math.tanh %515 : vector<2x32xf32>
    %517 = vector.extract_strided_slice %502 {offsets = [0, 96], sizes = [2, 32], strides = [1, 1]} : vector<2x128xf32> to vector<2x32xf32>
    %518 = arith.negf %517 : vector<2x32xf32>
    %519 = math.exp %518 : vector<2x32xf32>
    %cst_274 = arith.constant 1.000000e+00 : f32
    %520 = vector.broadcast %cst_274 : f32 to vector<2x32xf32>
    %521 = arith.addf %520, %519 : vector<2x32xf32>
    %522 = arith.divf %520, %521 : vector<2x32xf32>
    %c1_275 = arith.constant 1 : index
    %c0_276 = arith.constant 0 : index
    %c0_277 = arith.constant 0 : index
    %523 = vector.load %arg10[%c1_275, %c0_276, %c0_277] : memref<2x2x32xf32, #tpu.memory_space<vmem>>, vector<1x2x32xf32>
    %524 = vector.shape_cast %523 : vector<1x2x32xf32> to vector<2x32xf32>
    %525 = arith.mulf %514, %524 : vector<2x32xf32>
    %526 = arith.mulf %508, %516 : vector<2x32xf32>
    %527 = arith.addf %525, %526 : vector<2x32xf32>
    %528 = math.tanh %527 : vector<2x32xf32>
    %529 = arith.mulf %522, %528 : vector<2x32xf32>
    %c1_278 = arith.constant 1 : index
    %c0_279 = arith.constant 0 : index
    %c0_280 = arith.constant 0 : index
    %530 = vector.load %arg10[%c1_278, %c0_279, %c0_280] : memref<2x2x32xf32, #tpu.memory_space<vmem>>, vector<1x2x32xf32>
    %531 = vector.shape_cast %530 : vector<1x2x32xf32> to vector<2x32xf32>
    %532 = vector.shape_cast %527 : vector<2x32xf32> to vector<1x2x32xf32>
    tpu.vector_store %arg10[%c1_278, %c0_279, %c0_280], %532 {strides = array<i32>} : memref<2x2x32xf32, #tpu.memory_space<vmem>>, vector<1x2x32xf32>,
    %c1_281 = arith.constant 1 : index
    %c0_282 = arith.constant 0 : index
    %c0_283 = arith.constant 0 : index
    %533 = vector.load %arg9[%c1_281, %c0_282, %c0_283] : memref<2x2x32xf32, #tpu.memory_space<vmem>>, vector<1x2x32xf32>
    %534 = vector.shape_cast %533 : vector<1x2x32xf32> to vector<2x32xf32>
    %535 = vector.shape_cast %529 : vector<2x32xf32> to vector<1x2x32xf32>
    tpu.vector_store %arg9[%c1_281, %c0_282, %c0_283], %535 {strides = array<i32>} : memref<2x2x32xf32, #tpu.memory_space<vmem>>, vector<1x2x32xf32>,
    %c10 = arith.constant 10 : index
    %c0_284 = arith.constant 0 : index
    %536 = vector.load %arg11[%c10, %c0_284] : memref<16x32xf32, #tpu.memory_space<vmem>>, vector<2x32xf32>
    tpu.vector_store %arg11[%c10, %c0_284], %529 {strides = array<i32>} : memref<16x32xf32, #tpu.memory_space<vmem>>, vector<2x32xf32>,
    %c6_285 = arith.constant 6 : index
    %c0_286 = arith.constant 0 : index
    %c0_287 = arith.constant 0 : index
    %537 = vector.load %arg1[%c6_285, %c0_286, %c0_287] : memref<8x2x32xf32, #tpu.memory_space<vmem>>, vector<1x2x32xf32>
    %538 = vector.shape_cast %537 : vector<1x2x32xf32> to vector<2x32xf32>
    %c0_288 = arith.constant 0 : index
    %c0_289 = arith.constant 0 : index
    %c0_290 = arith.constant 0 : index
    %539 = vector.load %arg9[%c0_288, %c0_289, %c0_290] : memref<2x2x32xf32, #tpu.memory_space<vmem>>, vector<1x2x32xf32>
    %540 = vector.shape_cast %539 : vector<1x2x32xf32> to vector<2x32xf32>
    %541 = tpu.concatenate %538, %540 in 1 : vector<2x32xf32>, vector<2x32xf32> -> vector<2x64xf32>
    %c0_291 = arith.constant 0 : index
    %c0_292 = arith.constant 0 : index
    %c0_293 = arith.constant 0 : index
    %542 = vector.load %arg4[%c0_291, %c0_292, %c0_293] : memref<2x64x128xf32, #tpu.memory_space<vmem>>, vector<1x64x128xf32>
    %543 = vector.shape_cast %542 : vector<1x64x128xf32> to vector<64x128xf32>
    %cst_294 = arith.constant dense<0.000000e+00> : vector<2x128xf32>
    %544 = tpu.matmul %541, %543, %cst_294 {dimension_numbers = #tpu.dot_dimension_numbers<[1], [0], [0], [1], [0, 0, 1, 1], [], []>} : vector<2x64xf32>, vector<64x128xf32>, vector<2x128xf32> -> vector<2x128xf32>
    %c0_295 = arith.constant 0 : index
    %c0_296 = arith.constant 0 : index
    %c0_297 = arith.constant 0 : index
    %545 = vector.load %arg5[%c0_295, %c0_296, %c0_297] : memref<2x1x128xf32, #tpu.memory_space<vmem>>, vector<1x1x128xf32>
    %546 = vector.shape_cast %545 : vector<1x1x128xf32> to vector<1x128xf32>
    %547 = vector.broadcast %546 : vector<1x128xf32> to vector<2x128xf32>
    %548 = arith.addf %544, %547 : vector<2x128xf32>
    %549 = vector.extract_strided_slice %548 {offsets = [0, 0], sizes = [2, 32], strides = [1, 1]} : vector<2x128xf32> to vector<2x32xf32>
    %550 = arith.negf %549 : vector<2x32xf32>
    %551 = math.exp %550 : vector<2x32xf32>
    %cst_298 = arith.constant 1.000000e+00 : f32
    %552 = vector.broadcast %cst_298 : f32 to vector<2x32xf32>
    %553 = arith.addf %552, %551 : vector<2x32xf32>
    %554 = arith.divf %552, %553 : vector<2x32xf32>
    %555 = vector.extract_strided_slice %548 {offsets = [0, 32], sizes = [2, 32], strides = [1, 1]} : vector<2x128xf32> to vector<2x32xf32>
    %556 = arith.negf %555 : vector<2x32xf32>
    %557 = math.exp %556 : vector<2x32xf32>
    %cst_299 = arith.constant 1.000000e+00 : f32
    %558 = vector.broadcast %cst_299 : f32 to vector<2x32xf32>
    %559 = arith.addf %558, %557 : vector<2x32xf32>
    %560 = arith.divf %558, %559 : vector<2x32xf32>
    %561 = vector.extract_strided_slice %548 {offsets = [0, 64], sizes = [2, 32], strides = [1, 1]} : vector<2x128xf32> to vector<2x32xf32>
    %562 = math.tanh %561 : vector<2x32xf32>
    %563 = vector.extract_strided_slice %548 {offsets = [0, 96], sizes = [2, 32], strides = [1, 1]} : vector<2x128xf32> to vector<2x32xf32>
    %564 = arith.negf %563 : vector<2x32xf32>
    %565 = math.exp %564 : vector<2x32xf32>
    %cst_300 = arith.constant 1.000000e+00 : f32
    %566 = vector.broadcast %cst_300 : f32 to vector<2x32xf32>
    %567 = arith.addf %566, %565 : vector<2x32xf32>
    %568 = arith.divf %566, %567 : vector<2x32xf32>
    %c0_301 = arith.constant 0 : index
    %c0_302 = arith.constant 0 : index
    %c0_303 = arith.constant 0 : index
    %569 = vector.load %arg10[%c0_301, %c0_302, %c0_303] : memref<2x2x32xf32, #tpu.memory_space<vmem>>, vector<1x2x32xf32>
    %570 = vector.shape_cast %569 : vector<1x2x32xf32> to vector<2x32xf32>
    %571 = arith.mulf %560, %570 : vector<2x32xf32>
    %572 = arith.mulf %554, %562 : vector<2x32xf32>
    %573 = arith.addf %571, %572 : vector<2x32xf32>
    %574 = math.tanh %573 : vector<2x32xf32>
    %575 = arith.mulf %568, %574 : vector<2x32xf32>
    %c0_304 = arith.constant 0 : index
    %c0_305 = arith.constant 0 : index
    %c0_306 = arith.constant 0 : index
    %576 = vector.load %arg10[%c0_304, %c0_305, %c0_306] : memref<2x2x32xf32, #tpu.memory_space<vmem>>, vector<1x2x32xf32>
    %577 = vector.shape_cast %576 : vector<1x2x32xf32> to vector<2x32xf32>
    %578 = vector.shape_cast %573 : vector<2x32xf32> to vector<1x2x32xf32>
    tpu.vector_store %arg10[%c0_304, %c0_305, %c0_306], %578 {strides = array<i32>} : memref<2x2x32xf32, #tpu.memory_space<vmem>>, vector<1x2x32xf32>,
    %c0_307 = arith.constant 0 : index
    %c0_308 = arith.constant 0 : index
    %c0_309 = arith.constant 0 : index
    %579 = vector.load %arg9[%c0_307, %c0_308, %c0_309] : memref<2x2x32xf32, #tpu.memory_space<vmem>>, vector<1x2x32xf32>
    %580 = vector.shape_cast %579 : vector<1x2x32xf32> to vector<2x32xf32>
    %581 = vector.shape_cast %575 : vector<2x32xf32> to vector<1x2x32xf32>
    tpu.vector_store %arg9[%c0_307, %c0_308, %c0_309], %581 {strides = array<i32>} : memref<2x2x32xf32, #tpu.memory_space<vmem>>, vector<1x2x32xf32>,
    %c1_310 = arith.constant 1 : index
    %c0_311 = arith.constant 0 : index
    %c0_312 = arith.constant 0 : index
    %582 = vector.load %arg9[%c1_310, %c0_311, %c0_312] : memref<2x2x32xf32, #tpu.memory_space<vmem>>, vector<1x2x32xf32>
    %583 = vector.shape_cast %582 : vector<1x2x32xf32> to vector<2x32xf32>
    %584 = tpu.concatenate %575, %583 in 1 : vector<2x32xf32>, vector<2x32xf32> -> vector<2x64xf32>
    %c1_313 = arith.constant 1 : index
    %c0_314 = arith.constant 0 : index
    %c0_315 = arith.constant 0 : index
    %585 = vector.load %arg4[%c1_313, %c0_314, %c0_315] : memref<2x64x128xf32, #tpu.memory_space<vmem>>, vector<1x64x128xf32>
    %586 = vector.shape_cast %585 : vector<1x64x128xf32> to vector<64x128xf32>
    %cst_316 = arith.constant dense<0.000000e+00> : vector<2x128xf32>
    %587 = tpu.matmul %584, %586, %cst_316 {dimension_numbers = #tpu.dot_dimension_numbers<[1], [0], [0], [1], [0, 0, 1, 1], [], []>} : vector<2x64xf32>, vector<64x128xf32>, vector<2x128xf32> -> vector<2x128xf32>
    %c1_317 = arith.constant 1 : index
    %c0_318 = arith.constant 0 : index
    %c0_319 = arith.constant 0 : index
    %588 = vector.load %arg5[%c1_317, %c0_318, %c0_319] : memref<2x1x128xf32, #tpu.memory_space<vmem>>, vector<1x1x128xf32>
    %589 = vector.shape_cast %588 : vector<1x1x128xf32> to vector<1x128xf32>
    %590 = vector.broadcast %589 : vector<1x128xf32> to vector<2x128xf32>
    %591 = arith.addf %587, %590 : vector<2x128xf32>
    %592 = vector.extract_strided_slice %591 {offsets = [0, 0], sizes = [2, 32], strides = [1, 1]} : vector<2x128xf32> to vector<2x32xf32>
    %593 = arith.negf %592 : vector<2x32xf32>
    %594 = math.exp %593 : vector<2x32xf32>
    %cst_320 = arith.constant 1.000000e+00 : f32
    %595 = vector.broadcast %cst_320 : f32 to vector<2x32xf32>
    %596 = arith.addf %595, %594 : vector<2x32xf32>
    %597 = arith.divf %595, %596 : vector<2x32xf32>
    %598 = vector.extract_strided_slice %591 {offsets = [0, 32], sizes = [2, 32], strides = [1, 1]} : vector<2x128xf32> to vector<2x32xf32>
    %599 = arith.negf %598 : vector<2x32xf32>
    %600 = math.exp %599 : vector<2x32xf32>
    %cst_321 = arith.constant 1.000000e+00 : f32
    %601 = vector.broadcast %cst_321 : f32 to vector<2x32xf32>
    %602 = arith.addf %601, %600 : vector<2x32xf32>
    %603 = arith.divf %601, %602 : vector<2x32xf32>
    %604 = vector.extract_strided_slice %591 {offsets = [0, 64], sizes = [2, 32], strides = [1, 1]} : vector<2x128xf32> to vector<2x32xf32>
    %605 = math.tanh %604 : vector<2x32xf32>
    %606 = vector.extract_strided_slice %591 {offsets = [0, 96], sizes = [2, 32], strides = [1, 1]} : vector<2x128xf32> to vector<2x32xf32>
    %607 = arith.negf %606 : vector<2x32xf32>
    %608 = math.exp %607 : vector<2x32xf32>
    %cst_322 = arith.constant 1.000000e+00 : f32
    %609 = vector.broadcast %cst_322 : f32 to vector<2x32xf32>
    %610 = arith.addf %609, %608 : vector<2x32xf32>
    %611 = arith.divf %609, %610 : vector<2x32xf32>
    %c1_323 = arith.constant 1 : index
    %c0_324 = arith.constant 0 : index
    %c0_325 = arith.constant 0 : index
    %612 = vector.load %arg10[%c1_323, %c0_324, %c0_325] : memref<2x2x32xf32, #tpu.memory_space<vmem>>, vector<1x2x32xf32>
    %613 = vector.shape_cast %612 : vector<1x2x32xf32> to vector<2x32xf32>
    %614 = arith.mulf %603, %613 : vector<2x32xf32>
    %615 = arith.mulf %597, %605 : vector<2x32xf32>
    %616 = arith.addf %614, %615 : vector<2x32xf32>
    %617 = math.tanh %616 : vector<2x32xf32>
    %618 = arith.mulf %611, %617 : vector<2x32xf32>
    %c1_326 = arith.constant 1 : index
    %c0_327 = arith.constant 0 : index
    %c0_328 = arith.constant 0 : index
    %619 = vector.load %arg10[%c1_326, %c0_327, %c0_328] : memref<2x2x32xf32, #tpu.memory_space<vmem>>, vector<1x2x32xf32>
    %620 = vector.shape_cast %619 : vector<1x2x32xf32> to vector<2x32xf32>
    %621 = vector.shape_cast %616 : vector<2x32xf32> to vector<1x2x32xf32>
    tpu.vector_store %arg10[%c1_326, %c0_327, %c0_328], %621 {strides = array<i32>} : memref<2x2x32xf32, #tpu.memory_space<vmem>>, vector<1x2x32xf32>,
    %c1_329 = arith.constant 1 : index
    %c0_330 = arith.constant 0 : index
    %c0_331 = arith.constant 0 : index
    %622 = vector.load %arg9[%c1_329, %c0_330, %c0_331] : memref<2x2x32xf32, #tpu.memory_space<vmem>>, vector<1x2x32xf32>
    %623 = vector.shape_cast %622 : vector<1x2x32xf32> to vector<2x32xf32>
    %624 = vector.shape_cast %618 : vector<2x32xf32> to vector<1x2x32xf32>
    tpu.vector_store %arg9[%c1_329, %c0_330, %c0_331], %624 {strides = array<i32>} : memref<2x2x32xf32, #tpu.memory_space<vmem>>, vector<1x2x32xf32>,
    %c12 = arith.constant 12 : index
    %c0_332 = arith.constant 0 : index
    %625 = vector.load %arg11[%c12, %c0_332] : memref<16x32xf32, #tpu.memory_space<vmem>>, vector<2x32xf32>
    tpu.vector_store %arg11[%c12, %c0_332], %618 {strides = array<i32>} : memref<16x32xf32, #tpu.memory_space<vmem>>, vector<2x32xf32>,
    %c7 = arith.constant 7 : index
    %c0_333 = arith.constant 0 : index
    %c0_334 = arith.constant 0 : index
    %626 = vector.load %arg1[%c7, %c0_333, %c0_334] : memref<8x2x32xf32, #tpu.memory_space<vmem>>, vector<1x2x32xf32>
    %627 = vector.shape_cast %626 : vector<1x2x32xf32> to vector<2x32xf32>
    %c0_335 = arith.constant 0 : index
    %c0_336 = arith.constant 0 : index
    %c0_337 = arith.constant 0 : index
    %628 = vector.load %arg9[%c0_335, %c0_336, %c0_337] : memref<2x2x32xf32, #tpu.memory_space<vmem>>, vector<1x2x32xf32>
    %629 = vector.shape_cast %628 : vector<1x2x32xf32> to vector<2x32xf32>
    %630 = tpu.concatenate %627, %629 in 1 : vector<2x32xf32>, vector<2x32xf32> -> vector<2x64xf32>
    %c0_338 = arith.constant 0 : index
    %c0_339 = arith.constant 0 : index
    %c0_340 = arith.constant 0 : index
    %631 = vector.load %arg4[%c0_338, %c0_339, %c0_340] : memref<2x64x128xf32, #tpu.memory_space<vmem>>, vector<1x64x128xf32>
    %632 = vector.shape_cast %631 : vector<1x64x128xf32> to vector<64x128xf32>
    %cst_341 = arith.constant dense<0.000000e+00> : vector<2x128xf32>
    %633 = tpu.matmul %630, %632, %cst_341 {dimension_numbers = #tpu.dot_dimension_numbers<[1], [0], [0], [1], [0, 0, 1, 1], [], []>} : vector<2x64xf32>, vector<64x128xf32>, vector<2x128xf32> -> vector<2x128xf32>
    %c0_342 = arith.constant 0 : index
    %c0_343 = arith.constant 0 : index
    %c0_344 = arith.constant 0 : index
    %634 = vector.load %arg5[%c0_342, %c0_343, %c0_344] : memref<2x1x128xf32, #tpu.memory_space<vmem>>, vector<1x1x128xf32>
    %635 = vector.shape_cast %634 : vector<1x1x128xf32> to vector<1x128xf32>
    %636 = vector.broadcast %635 : vector<1x128xf32> to vector<2x128xf32>
    %637 = arith.addf %633, %636 : vector<2x128xf32>
    %638 = vector.extract_strided_slice %637 {offsets = [0, 0], sizes = [2, 32], strides = [1, 1]} : vector<2x128xf32> to vector<2x32xf32>
    %639 = arith.negf %638 : vector<2x32xf32>
    %640 = math.exp %639 : vector<2x32xf32>
    %cst_345 = arith.constant 1.000000e+00 : f32
    %641 = vector.broadcast %cst_345 : f32 to vector<2x32xf32>
    %642 = arith.addf %641, %640 : vector<2x32xf32>
    %643 = arith.divf %641, %642 : vector<2x32xf32>
    %644 = vector.extract_strided_slice %637 {offsets = [0, 32], sizes = [2, 32], strides = [1, 1]} : vector<2x128xf32> to vector<2x32xf32>
    %645 = arith.negf %644 : vector<2x32xf32>
    %646 = math.exp %645 : vector<2x32xf32>
    %cst_346 = arith.constant 1.000000e+00 : f32
    %647 = vector.broadcast %cst_346 : f32 to vector<2x32xf32>
    %648 = arith.addf %647, %646 : vector<2x32xf32>
    %649 = arith.divf %647, %648 : vector<2x32xf32>
    %650 = vector.extract_strided_slice %637 {offsets = [0, 64], sizes = [2, 32], strides = [1, 1]} : vector<2x128xf32> to vector<2x32xf32>
    %651 = math.tanh %650 : vector<2x32xf32>
    %652 = vector.extract_strided_slice %637 {offsets = [0, 96], sizes = [2, 32], strides = [1, 1]} : vector<2x128xf32> to vector<2x32xf32>
    %653 = arith.negf %652 : vector<2x32xf32>
    %654 = math.exp %653 : vector<2x32xf32>
    %cst_347 = arith.constant 1.000000e+00 : f32
    %655 = vector.broadcast %cst_347 : f32 to vector<2x32xf32>
    %656 = arith.addf %655, %654 : vector<2x32xf32>
    %657 = arith.divf %655, %656 : vector<2x32xf32>
    %c0_348 = arith.constant 0 : index
    %c0_349 = arith.constant 0 : index
    %c0_350 = arith.constant 0 : index
    %658 = vector.load %arg10[%c0_348, %c0_349, %c0_350] : memref<2x2x32xf32, #tpu.memory_space<vmem>>, vector<1x2x32xf32>
    %659 = vector.shape_cast %658 : vector<1x2x32xf32> to vector<2x32xf32>
    %660 = arith.mulf %649, %659 : vector<2x32xf32>
    %661 = arith.mulf %643, %651 : vector<2x32xf32>
    %662 = arith.addf %660, %661 : vector<2x32xf32>
    %663 = math.tanh %662 : vector<2x32xf32>
    %664 = arith.mulf %657, %663 : vector<2x32xf32>
    %c0_351 = arith.constant 0 : index
    %c0_352 = arith.constant 0 : index
    %c0_353 = arith.constant 0 : index
    %665 = vector.load %arg10[%c0_351, %c0_352, %c0_353] : memref<2x2x32xf32, #tpu.memory_space<vmem>>, vector<1x2x32xf32>
    %666 = vector.shape_cast %665 : vector<1x2x32xf32> to vector<2x32xf32>
    %667 = vector.shape_cast %662 : vector<2x32xf32> to vector<1x2x32xf32>
    tpu.vector_store %arg10[%c0_351, %c0_352, %c0_353], %667 {strides = array<i32>} : memref<2x2x32xf32, #tpu.memory_space<vmem>>, vector<1x2x32xf32>,
    %c0_354 = arith.constant 0 : index
    %c0_355 = arith.constant 0 : index
    %c0_356 = arith.constant 0 : index
    %668 = vector.load %arg9[%c0_354, %c0_355, %c0_356] : memref<2x2x32xf32, #tpu.memory_space<vmem>>, vector<1x2x32xf32>
    %669 = vector.shape_cast %668 : vector<1x2x32xf32> to vector<2x32xf32>
    %670 = vector.shape_cast %664 : vector<2x32xf32> to vector<1x2x32xf32>
    tpu.vector_store %arg9[%c0_354, %c0_355, %c0_356], %670 {strides = array<i32>} : memref<2x2x32xf32, #tpu.memory_space<vmem>>, vector<1x2x32xf32>,
    %c1_357 = arith.constant 1 : index
    %c0_358 = arith.constant 0 : index
    %c0_359 = arith.constant 0 : index
    %671 = vector.load %arg9[%c1_357, %c0_358, %c0_359] : memref<2x2x32xf32, #tpu.memory_space<vmem>>, vector<1x2x32xf32>
    %672 = vector.shape_cast %671 : vector<1x2x32xf32> to vector<2x32xf32>
    %673 = tpu.concatenate %664, %672 in 1 : vector<2x32xf32>, vector<2x32xf32> -> vector<2x64xf32>
    %c1_360 = arith.constant 1 : index
    %c0_361 = arith.constant 0 : index
    %c0_362 = arith.constant 0 : index
    %674 = vector.load %arg4[%c1_360, %c0_361, %c0_362] : memref<2x64x128xf32, #tpu.memory_space<vmem>>, vector<1x64x128xf32>
    %675 = vector.shape_cast %674 : vector<1x64x128xf32> to vector<64x128xf32>
    %cst_363 = arith.constant dense<0.000000e+00> : vector<2x128xf32>
    %676 = tpu.matmul %673, %675, %cst_363 {dimension_numbers = #tpu.dot_dimension_numbers<[1], [0], [0], [1], [0, 0, 1, 1], [], []>} : vector<2x64xf32>, vector<64x128xf32>, vector<2x128xf32> -> vector<2x128xf32>
    %c1_364 = arith.constant 1 : index
    %c0_365 = arith.constant 0 : index
    %c0_366 = arith.constant 0 : index
    %677 = vector.load %arg5[%c1_364, %c0_365, %c0_366] : memref<2x1x128xf32, #tpu.memory_space<vmem>>, vector<1x1x128xf32>
    %678 = vector.shape_cast %677 : vector<1x1x128xf32> to vector<1x128xf32>
    %679 = vector.broadcast %678 : vector<1x128xf32> to vector<2x128xf32>
    %680 = arith.addf %676, %679 : vector<2x128xf32>
    %681 = vector.extract_strided_slice %680 {offsets = [0, 0], sizes = [2, 32], strides = [1, 1]} : vector<2x128xf32> to vector<2x32xf32>
    %682 = arith.negf %681 : vector<2x32xf32>
    %683 = math.exp %682 : vector<2x32xf32>
    %cst_367 = arith.constant 1.000000e+00 : f32
    %684 = vector.broadcast %cst_367 : f32 to vector<2x32xf32>
    %685 = arith.addf %684, %683 : vector<2x32xf32>
    %686 = arith.divf %684, %685 : vector<2x32xf32>
    %687 = vector.extract_strided_slice %680 {offsets = [0, 32], sizes = [2, 32], strides = [1, 1]} : vector<2x128xf32> to vector<2x32xf32>
    %688 = arith.negf %687 : vector<2x32xf32>
    %689 = math.exp %688 : vector<2x32xf32>
    %cst_368 = arith.constant 1.000000e+00 : f32
    %690 = vector.broadcast %cst_368 : f32 to vector<2x32xf32>
    %691 = arith.addf %690, %689 : vector<2x32xf32>
    %692 = arith.divf %690, %691 : vector<2x32xf32>
    %693 = vector.extract_strided_slice %680 {offsets = [0, 64], sizes = [2, 32], strides = [1, 1]} : vector<2x128xf32> to vector<2x32xf32>
    %694 = math.tanh %693 : vector<2x32xf32>
    %695 = vector.extract_strided_slice %680 {offsets = [0, 96], sizes = [2, 32], strides = [1, 1]} : vector<2x128xf32> to vector<2x32xf32>
    %696 = arith.negf %695 : vector<2x32xf32>
    %697 = math.exp %696 : vector<2x32xf32>
    %cst_369 = arith.constant 1.000000e+00 : f32
    %698 = vector.broadcast %cst_369 : f32 to vector<2x32xf32>
    %699 = arith.addf %698, %697 : vector<2x32xf32>
    %700 = arith.divf %698, %699 : vector<2x32xf32>
    %c1_370 = arith.constant 1 : index
    %c0_371 = arith.constant 0 : index
    %c0_372 = arith.constant 0 : index
    %701 = vector.load %arg10[%c1_370, %c0_371, %c0_372] : memref<2x2x32xf32, #tpu.memory_space<vmem>>, vector<1x2x32xf32>
    %702 = vector.shape_cast %701 : vector<1x2x32xf32> to vector<2x32xf32>
    %703 = arith.mulf %692, %702 : vector<2x32xf32>
    %704 = arith.mulf %686, %694 : vector<2x32xf32>
    %705 = arith.addf %703, %704 : vector<2x32xf32>
    %706 = math.tanh %705 : vector<2x32xf32>
    %707 = arith.mulf %700, %706 : vector<2x32xf32>
    %c1_373 = arith.constant 1 : index
    %c0_374 = arith.constant 0 : index
    %c0_375 = arith.constant 0 : index
    %708 = vector.load %arg10[%c1_373, %c0_374, %c0_375] : memref<2x2x32xf32, #tpu.memory_space<vmem>>, vector<1x2x32xf32>
    %709 = vector.shape_cast %708 : vector<1x2x32xf32> to vector<2x32xf32>
    %710 = vector.shape_cast %705 : vector<2x32xf32> to vector<1x2x32xf32>
    tpu.vector_store %arg10[%c1_373, %c0_374, %c0_375], %710 {strides = array<i32>} : memref<2x2x32xf32, #tpu.memory_space<vmem>>, vector<1x2x32xf32>,
    %c1_376 = arith.constant 1 : index
    %c0_377 = arith.constant 0 : index
    %c0_378 = arith.constant 0 : index
    %711 = vector.load %arg9[%c1_376, %c0_377, %c0_378] : memref<2x2x32xf32, #tpu.memory_space<vmem>>, vector<1x2x32xf32>
    %712 = vector.shape_cast %711 : vector<1x2x32xf32> to vector<2x32xf32>
    %713 = vector.shape_cast %707 : vector<2x32xf32> to vector<1x2x32xf32>
    tpu.vector_store %arg9[%c1_376, %c0_377, %c0_378], %713 {strides = array<i32>} : memref<2x2x32xf32, #tpu.memory_space<vmem>>, vector<1x2x32xf32>,
    %c14 = arith.constant 14 : index
    %c0_379 = arith.constant 0 : index
    %714 = vector.load %arg11[%c14, %c0_379] : memref<16x32xf32, #tpu.memory_space<vmem>>, vector<2x32xf32>
    tpu.vector_store %arg11[%c14, %c0_379], %707 {strides = array<i32>} : memref<16x32xf32, #tpu.memory_space<vmem>>, vector<2x32xf32>,
    %c0_380 = arith.constant 0 : index
    %c0_381 = arith.constant 0 : index
    %715 = vector.load %arg11[%c0_380, %c0_381] : memref<16x32xf32, #tpu.memory_space<vmem>>, vector<16x32xf32>
    %c0_382 = arith.constant 0 : index
    %c0_383 = arith.constant 0 : index
    %716 = vector.load %arg6[%c0_382, %c0_383] : memref<32x128xf32, #tpu.memory_space<vmem>>, vector<32x128xf32>
    %cst_384 = arith.constant dense<0.000000e+00> : vector<16x128xf32>
    %717 = tpu.matmul %715, %716, %cst_384 {dimension_numbers = #tpu.dot_dimension_numbers<[1], [0], [0], [1], [0, 0, 1, 1], [], []>} : vector<16x32xf32>, vector<32x128xf32>, vector<16x128xf32> -> vector<16x128xf32>
    %c0_385 = arith.constant 0 : index
    %c0_386 = arith.constant 0 : index
    %718 = vector.load %arg7[%c0_385, %c0_386] : memref<1x128xf32, #tpu.memory_space<vmem>>, vector<1x128xf32>
    %719 = vector.broadcast %718 : vector<1x128xf32> to vector<16x128xf32>
    %720 = arith.addf %717, %719 : vector<16x128xf32>
    %c0_387 = arith.constant 0 : index
    %c0_388 = arith.constant 0 : index
    %721 = vector.load %arg8[%c0_387, %c0_388] : memref<16x128xf32, #tpu.memory_space<vmem>>, vector<16x128xf32>
    tpu.vector_store %arg8[%c0_387, %c0_388], %720 {strides = array<i32>} : memref<16x128xf32, #tpu.memory_space<vmem>>, vector<16x128xf32>,
    return
  }
  func.func @transform_0(%arg0: i32) -> (i32, i32, i32) {
    %c0_i32 = arith.constant 0 : i32
    %c0_i32_0 = arith.constant 0 : i32
    %c0_i32_1 = arith.constant 0 : i32
    return %arg0, %c0_i32, %c0_i32_0 : i32, i32, i32
  }
  func.func @transform_1(%arg0: i32) -> (i32, i32, i32) {
    %c0_i32 = arith.constant 0 : i32
    %c0_i32_0 = arith.constant 0 : i32
    %c0_i32_1 = arith.constant 0 : i32
    %c0_i32_2 = arith.constant 0 : i32
    return %c0_i32, %c0_i32_0, %c0_i32_1 : i32, i32, i32
  }
  func.func @transform_2(%arg0: i32) -> (i32, i32, i32) {
    %c0_i32 = arith.constant 0 : i32
    %c0_i32_0 = arith.constant 0 : i32
    %c0_i32_1 = arith.constant 0 : i32
    %c0_i32_2 = arith.constant 0 : i32
    return %c0_i32, %c0_i32_0, %c0_i32_1 : i32, i32, i32
  }
  func.func @transform_3(%arg0: i32) -> (i32, i32, i32) {
    %c0_i32 = arith.constant 0 : i32
    %c0_i32_0 = arith.constant 0 : i32
    %c0_i32_1 = arith.constant 0 : i32
    %c0_i32_2 = arith.constant 0 : i32
    return %c0_i32, %c0_i32_0, %c0_i32_1 : i32, i32, i32
  }
  func.func @transform_4(%arg0: i32) -> (i32, i32, i32) {
    %c0_i32 = arith.constant 0 : i32
    %c0_i32_0 = arith.constant 0 : i32
    %c0_i32_1 = arith.constant 0 : i32
    %c0_i32_2 = arith.constant 0 : i32
    return %c0_i32, %c0_i32_0, %c0_i32_1 : i32, i32, i32
  }
  func.func @transform_5(%arg0: i32) -> (i32, i32) {
    %c0_i32 = arith.constant 0 : i32
    %c0_i32_0 = arith.constant 0 : i32
    %c0_i32_1 = arith.constant 0 : i32
    return %c0_i32, %c0_i32_0 : i32, i32
  }
  func.func @transform_6(%arg0: i32) -> (i32, i32) {
    %c0_i32 = arith.constant 0 : i32
    %c0_i32_0 = arith.constant 0 : i32
    %c0_i32_1 = arith.constant 0 : i32
    return %c0_i32, %c0_i32_0 : i32, i32
  }
  func.func @transform_7(%arg0: i32) -> (i32, i32) {
    %c0_i32 = arith.constant 0 : i32
    %c0_i32_0 = arith.constant 0 : i32
    return %arg0, %c0_i32 : i32, i32
  }
  func.func @transform_8(%arg0: i32) -> (i32, i32, i32) {
    %c0_i32 = arith.constant 0 : i32
    %c0_i32_0 = arith.constant 0 : i32
    %c0_i32_1 = arith.constant 0 : i32
    %c0_i32_2 = arith.constant 0 : i32
    return %c0_i32, %c0_i32_0, %c0_i32_1 : i32, i32, i32
  }
  func.func @transform_9(%arg0: i32) -> (i32, i32, i32) {
    %c0_i32 = arith.constant 0 : i32
    %c0_i32_0 = arith.constant 0 : i32
    %c0_i32_1 = arith.constant 0 : i32
    %c0_i32_2 = arith.constant 0 : i32
    return %c0_i32, %c0_i32_0, %c0_i32_1 : i32, i32, i32
  }
}

</mosaic_0001>

<bundles_post_ra>
// kernel: tpu_custom_call.1
= control target key start
LH: loop header
LB: loop body
LE: loop exit
PB: predicated region body
PF: predicated region fallthrough
CT: control target
= control target key end

     0   :  { %s4815_s0 = inlined_call_operand.hbm [shape: f32[16,2,32], index: 0, kind: input, shape index: {}]   ;;  %s4816_s1 = inlined_call_operand.hbm [shape: f32[2,2,32], index: 1, kind: input, shape index: {}]   ;;  %s4817_s2 = inlined_call_operand.hbm [shape: f32[2,2,32], index: 2, kind: input, shape index: {}]   ;;  %s4818_s3 = inlined_call_operand.hbm [shape: f32[2,64,128], index: 3, kind: input, shape index: {}]   ;;  %s4819_s4 = inlined_call_operand.vmem [shape: f32[2,1,128], index: 4, kind: input, shape index: {}]   ;;  %s4820_s5 = inlined_call_operand.hbm [shape: f32[32,128], index: 5, kind: input, shape index: {}]   ;;  %s4821_s6 = inlined_call_operand.vmem [shape: f32[1,128], index: 6, kind: input, shape index: {}]   ;;  %s4822_s7 = inlined_call_operand.hbm [shape: f32[32,128], index: 7, kind: output, shape index: {0}]   ;;  %s4823_s8 = inlined_call_operand.hbm [shape: f32[2,2,32], index: 8, kind: output, shape index: {1}]   ;;  %s4824_s9 = inlined_call_operand.hbm [shape: f32[2,2,32], index: 9, kind: output, shape index: {2}]  }
   0x1   :  { %4831 = sst [smem:[#allocation21_spill]] %s4816_s1 }
   0x2   :  { %4832 = sst [smem:[#allocation22_spill]] %s4817_s2 }
   0x3   :  { %4833 = sst [smem:[#allocation23_spill]] %s4818_s3 }
   0x4   :  { %15 = vsyncpa [#allocation4], 0 }
   0x5   :  { %17 = vsyncpa [#allocation4 + $0x1], 0 }
   0x6   :  { %18 = vsyncpa [#allocation7], 0 }
   0x7   :  { %19 = vsyncpa [#allocation10], 0 }
   0x8   :  { %20 = vsyncpa [#allocation5], 0 }
   0x9   :  { %22 = vsyncpa [#allocation5 + $0x1], 0 }
   0xa   :  { %23 = vsyncpa [#allocation14], 0  ;;  %s3975_s30 = smov 0   ;;  %s3977_s10 = smov 0  }
   0xb   :  { %s3979_s11 = smov 0   ;;  %s3981_s12 = smov 0  }
   0xc LB: > { %s3996_s13 = sadd.s32 4294967295, %s3903_s12   ;;  %s2846_s14 = sadd.s32 4294967294, %s3903_s12   ;;  %s3903_s12 = sphi %s3981_s12, %s4865_s12   ;;  %s3899_s11 = sphi %s3979_s11, %s4864_s11   ;;  %s3895_s10 = sphi %s3977_s10, %s4863_s10   ;;  %s3891_s30 = sphi %s3975_s30, %s4862_s30  }
   0xd   : > { %p49_p0 = scmp.ne.s32.totalorder %s3895_s10, %s3891_s30  ;;  %p4825_p1 = scmp.eq.s32.totalorder %s3996_s13, 0 }
   0xe   : > { %p205_p3 = scmp.eq.s32.totalorder %s2846_s14, 1  ;;  %p2847_p5 = scmp.ge.s32.totalorder %s3903_s12, 1 }
   0xf   : > { %p4005_p4 = por %p4825_p1, %p49_p0  ;;  %p254_p7 = scmp.lt.s32.totalorder %s3903_s12, 3 }
  0x10   : > { %p4010_p6 = por %p205_p3, %p49_p0  ;;  %s3905_s18 = smov [#allocation6]  }
  0x11   : > { %s4834_s15 = scalar_select %p4005_p4, 1, 0 }
  0x12   : > { %s4835_s16 = scalar_select %p4010_p6, 1, 0 }
  0x13   : > { %p4016_p9 = pnand %p2847_p5, %p254_p7  ;;  %s266_s19 = sshll.u32 %s3905_s18, 4  ;;  %s267_s19 = int_to_ptr.vmem [resolvable:$true] %s266_s19 }
  0x14   : > { %s3906_s21 = smov [#allocation9]   ;;  %s3658_s23 = scalar_lea.vmem %s267_s19, 64 }
  0x15   : > { %s4836_s17 = scalar_select %p4016_p9, 1, 0 }
  0x16   : > { %p3434_p10 = pneg %p4016_p9  ;;  %s292_s22 = sshll.u32 %s3906_s21, 4  ;;  %s293_s22 = int_to_ptr.vmem [resolvable:$true] %s292_s22 }
  0x17   : > { %p3659_p0 = scmp.ne.s32.totalorder %s267_s19, %s3658_s23  ;;  %p3666_p7 = scmp.lt.s32.totalorder %s267_s19, %s267_s19 }
  0x18   : > { %p4025_p12 = pnand %p3434_p10, %p4825_p1  ;;  %p3667_p11 = scmp.lt.s32.totalorder %s3658_s23, %s3658_s23 }
  0x1a   : > { %p3649_p13 = pneg %p4025_p12  ;;  %p3668_p8 = por %p3667_p11, %p3666_p7 }
  0x1c   : > { %p3661_p3 = pnand %p3659_p0, %p3649_p13 }
  0x1e   : > { %p3662_p5 = pneg %p3661_p3 }
  0x20   : > { %p3669_p10 = pnand %p3668_p8, %p3662_p5 }
  0x22   : > { %3672 = shalt.err (!%p3669_p10)
}
  0x23   : > { %s4826_s24 = smov 32   ;;  %s4827_s25 = smov 2  }
  0x24   : > { %s4838_s1 = sld [smem:[#allocation21_spill]]  ;;  %s3684_s28 = scalar_lea.vmem %s293_s22, 2048 }
  0x25   : > { %p3685_p0 = scmp.ne.s32.totalorder %s293_s22, %s3684_s28  ;;  %p3692_p8 = scmp.lt.s32.totalorder %s293_s22, %s293_s22 }
  0x26   : > { %p3693_p5 = scmp.lt.s32.totalorder %s3684_s28, %s3684_s28 }
  0x27   : > { %p3687_p3 = pnand %p3685_p0, %p3649_p13 }
  0x28   : > { %p3694_p7 = por %p3693_p5, %p3692_p8 }
  0x29   : > { %p3688_p11 = pneg %p3687_p3 }
  0x2a   : > { %3437 = dma.hbm_to_vmem [thread:$0]  (!%p4025_p12), %s4838_s1, 64, %s267_s19, [#allocation7], %s4826_s24, %s4826_s24, %s4827_s25  }
  0x2b   : > { %p3695_p10 = pnand %p3694_p7, %p3688_p11 }
  0x2d   : > { %3698 = shalt.err (!%p3695_p10)
}
  0x2e   : > { %s3909_s29 = smov 128   ;;  %s3910_s14 = smov 8  }
  0x2f   : > { %s4839_s3 = sld [smem:[#allocation23_spill]]  ;;  %s3911_s21 = smov [#allocation8]  }
  0x30   : > { %s279_s23 = sshll.u32 %s3911_s21, 4  ;;  %s3912_s26 = smov [#allocation11]   ;;  %s280_s23 = int_to_ptr.vmem [resolvable:$true] %s279_s23 }
  0x31   : > { %s308_s27 = sshll.u32 %s3912_s26, 4  ;;  %s3710_s28 = scalar_lea.vmem %s280_s23, 64  ;;  %s309_s27 = int_to_ptr.vmem [resolvable:$true] %s308_s27 }
  0x32   : > { %p3711_p0 = scmp.ne.s32.totalorder %s280_s23, %s3710_s28  ;;  %p3718_p8 = scmp.lt.s32.totalorder %s280_s23, %s280_s23 }
  0x33   : > { %p3719_p5 = scmp.lt.s32.totalorder %s3710_s28, %s3710_s28 }
  0x34   : > { %p3713_p3 = pnand %p3711_p0, %p3649_p13 }
  0x35   : > { %3443 = dma.hbm_to_vmem [thread:$0]  (!%p4025_p12), %s4839_s3, 2048, %s293_s22, [#allocation10], %s3909_s29, %s3909_s29, %s3910_s14  }
  0x36   : > { %p3714_p11 = pneg %p3713_p3  ;;  %p3720_p7 = por %p3719_p5, %p3718_p8 }
  0x38   : > { %p3721_p10 = pnand %p3720_p7, %p3714_p11 }
  0x3a   : > { %3724 = shalt.err (!%p3721_p10)
}
  0x3b   : > { %s4840_s2 = sld [smem:[#allocation22_spill]]  ;;  %s3736_s19 = scalar_lea.vmem %s309_s27, 512 }
  0x3c   : > { %p3737_p1 = scmp.ne.s32.totalorder %s309_s27, %s3736_s19  ;;  %p3744_p2 = scmp.lt.s32.totalorder %s309_s27, %s309_s27 }
  0x3d   : > { %p3745_p8 = scmp.lt.s32.totalorder %s3736_s19, %s3736_s19 }
  0x3e   : > { %p3739_p0 = pnand %p3737_p1, %p3649_p13 }
  0x3f   : > { %p3746_p11 = por %p3745_p8, %p3744_p2 }
  0x40   : > { %p3740_p3 = pneg %p3739_p0 }
  0x41   : > { %3440 = dma.hbm_to_vmem [thread:$0]  (!%p4025_p12), %s4840_s2, 64, %s280_s23, [#allocation7], %s4826_s24, %s4826_s24, %s4827_s25  }
  0x42   : > { %p3747_p5 = pnand %p3746_p11, %p3740_p3 }
  0x44   : > { %3750 = shalt.err (!%p3747_p5)
}
  0x45   : > { %3446 = dma.hbm_to_vmem [thread:$0]  (!%p4025_p12), %s4820_s5, 512, %s309_s27, [#allocation10], %s3909_s29, %s3909_s29, %s3910_s14  }
  0x46   : > { %s4076_s23 = sadd.s32 1, %s3903_s12   ;;  %s36_s28 = sadd.s32 1, %s3899_s11 }
  0x47   : > { %s33_s20 = ssub.s32 %s3903_s12, %s4076_s23  ;;  %p43_p2 = scmp.ne.s32.totalorder %s3899_s11, %s3895_s10 }
  0x48   : > { %p34_p1 = scmp.eq.s32.totalorder %s33_s20, 0  ;;  %p44_p13 = scmp.eq.s32.totalorder %s3903_s12, 0 }
  0x49   : > { %p4841_p10 = scmp.eq.s32.totalorder %s3996_s13, 1  ;;  %p3459_p3 = scmp.lt.s32.totalorder %s3903_s12, 2 }
  0x4a   : > { %s4085_s22 = scalar_select %p34_p1, %s3899_s11, %s36_s28  }
  0x4b   : > { %p45_p7 = por %p44_p13, %p43_p2  ;;  %p4089_p0 = por %p4841_p10, %p43_p2 }
  0x4c   : > { %s325_s19 = sand.u32 1, %s3899_s11   ;;  %s2939_s29 = sshll.u32 %s3903_s12, 8 }
  0x4d   : > { %s4842_s18 = scalar_select %p4089_p0, 1, 0 }
  0x4e   : > { %s2853_s21 = sshll.u32 %s325_s19, 4  ;;  %s4099_s26 = scalar_lea.hbm %s4815_s0, %s2939_s29 }
  0x4f   : > { %s329_s20 = scalar_lea.vmem [#allocation3], %s2853_s21  ;;  %p4103_p12 = pnand %p3459_p3, %p45_p7 }
  0x50   : > { %s336_s28 = sshll.u32 %s329_s20, 4  ;;  %s4107_s25 = scalar_lea.sflag [#allocation4], %s325_s19  ;;  %s4101_s28 = int_to_ptr.vmem [resolvable:$true] %s336_s28 }
  0x51   : > { %s3751_s1 = scalar_lea.hbm %s4099_s26, 256  ;;  %p3753_p11 = pneg %p4103_p12 }
  0x52   : > { %p3752_p8 = scmp.ne.s32.totalorder %s4099_s26, %s3751_s1  ;;  %s3756_s21 = scalar_lea.hbm %s4815_s0, 512 }
  0x53   : > { %p3757_p2 = scmp.lt.s32.totalorder %s4099_s26, %s4815_s0  ;;  %p3758_p13 = scmp.lt.s32.totalorder %s3756_s21, %s3751_s1 }
  0x54   : > { %p3754_p5 = pnand %p3753_p11, %p3752_p8 }
  0x55   : > { %p3759_p7 = por %p3758_p13, %p3757_p2 }
  0x56   : > { %p3755_p1 = pneg %p3754_p5 }
  0x58   : > { %p3760_p10 = pnand %p3759_p7, %p3755_p1 }
  0x5a   : > { %3763 = shalt.err (!%p3760_p10)
}
  0x5b   : > { %s3764_s19 = scalar_lea.vmem %s4101_s28, 256  ;;  %s3913_s2 = smov [#allocation3]  }
  0x5c   : > { %p3765_p3 = scmp.ne.s32.totalorder %s4101_s28, %s3764_s19  ;;  %s3769_s3 = sshll.u32 %s3913_s2, 4  ;;  %s3770_s3 = int_to_ptr.vmem [resolvable:$false] %s3769_s3 }
  0x5d   : > { %s3771_s29 = scalar_lea.vmem %s3770_s3, 512  ;;  %p3772_p5 = scmp.lt.s32.totalorder %s4101_s28, %s3770_s3 }
  0x5e   : > { %p3767_p6 = pnand %p3765_p3, %p3753_p11  ;;  %p3773_p0 = scmp.lt.s32.totalorder %s3771_s29, %s3764_s19 }
  0x60   : > { %p3768_p8 = pneg %p3767_p6  ;;  %p3774_p4 = por %p3773_p0, %p3772_p5 }
  0x62   : > { %p3775_p9 = pnand %p3774_p4, %p3768_p8 }
  0x64   : > { %3778 = shalt.err (!%p3775_p9)
}
  0x65   : > { %s4844_s1 = smov 2   ;;  %s4845_s14 = smov 32  }
  0x66   : > { %3450 = dma.hbm_to_vmem [thread:$0]  (!%p4103_p12), %s4099_s26, 256, %s4101_s28, %s4107_s25, %s4845_s14, %s4845_s14, %s4844_s1  }
  0x67   : > { %p4846_p6 = scmp.ne.s32.totalorder %s4836_s17, 0 }
  0x68   : > { %s4134_s2 = sand.u32 (!%p4846_p6), 1, %s3895_s10   ;;  %p4847_p4 = scmp.ne.s32.totalorder (!%p4846_p6), %s4834_s15, 0 }
  0x69   : > { %348 = sbr.rel (%p4846_p6) target bundleno = 7544 (0x1d78), region = 48  ;;  %s2857_s3 = sshll.u32 (!%p4846_p6), %s4134_s2, 4 }
  0x6a   : > { %s351_s21 = scalar_lea.sflag (!%p4846_p6), [#allocation4], %s4134_s2  ;;  %s4138_s27 = scalar_lea.vmem (!%p4846_p6), [#allocation3], %s2857_s3 }
  0x6e   : > { %3870 = dma.done.wait (%p4847_p4), %s351_s21, 256  }
  0x6f   : > { %3872 = vsyncadd (%p4847_p4), %s351_s21, 4294967040  ;;  %p4848_p9 = scmp.eq.s32.totalorder %s3996_s13, 0 }
  0x71   : > { %3874 = dma.done.wait (%p4848_p9), [#allocation7], 128   ;;  %p4849_p0 = pmov %p4848_p9 }
  0x73   : > { %3876 = vsyncadd (%p4849_p0), [#allocation7], 4294967168  ;;  %p4850_p12 = pmov %p4849_p0 }
  0x74   : > { %p4851_p11 = pmov %p4849_p0 }
  0x75   : > { %3878 = dma.done.wait (%p4850_p12), [#allocation10], 2560  }
  0x76   : > { %3880 = vsyncadd (%p4851_p11), [#allocation10], 4294964736  ;;  %s4152_s17 = scalar_lea.vmem [#allocation12], %s2857_s3  ;;  %p4852_p1 = scmp.ne.s32.totalorder %s3996_s13, 0 }
  0x78   : > { %410 = sbr.rel (%p4852_p1) target bundleno = 129 (0x81), region = 72 }
  0x7d   : > { %v411_v0 = vld [vmem:[#allocation6] sm:$0x3]  ;;  %vm413_vm0 = vcmask 254976   ;;  %v412_v1 = vld [vmem:[#allocation6 + $0x2] sm:$0x3] }
  0x7e   : > { %414 = vst.msk [vmem:[#allocation13] sm:$0x3] %vm413_vm0, %v411_v0  ;;  %415 = vst.msk [vmem:[#allocation13 + $0x2] sm:$0x3] %vm413_vm0, %v412_v1  ;;  %v416_v2 = vld [vmem:[#allocation8] sm:$0x3] }
  0x7f   : > { %v417_v3 = vld [vmem:[#allocation8 + $0x2] sm:$0x3]  ;;  %418 = vst.msk [vmem:[#allocation15] sm:$0x3] %vm413_vm0, %v416_v2 }
  0x80   : > { %419 = vst.msk [vmem:[#allocation15 + $0x2] sm:$0x3] %vm413_vm0, %v417_v3 }
  0x81 PF: > { %v4156_v5 = vld [vmem:[#allocation9 + $0x38] sm:$0xff]  ;;  %s3914_s15 = smov 32   ;;  %v3915_v6 = vmov 0.0   ;;  %v4160_v7 = vld [vmem:[#allocation9 + $0x30] sm:$0xff]  ;;  %vm3916_vm1 = vmmov 0   ;;  %v4166_v8 = vld [vmem:[#allocation9 + $0x28] sm:$0xff] }
  0x82   : > { %3091 = vmatprep.subr.mxu0 %v3915_v6  ;;  %3107 = vmatprep.mubr.msk.f32.mxu0 %vm3916_vm1, %v3915_v6  ;;  %v4172_v10 = vld [vmem:[#allocation9 + $0x20] sm:$0xff]  ;;  %v4178_v11 = vld [vmem:[#allocation9 + $0x18] sm:$0xff]  ;;  %v4182_v12 = vld [vmem:[#allocation9 + $0x10] sm:$0xff]  ;;  %vm426_vm2 = vcmask 261120   ;;  %vm443_vm3 = vcmask 523264   ;;  %s3917_s26 = smov 64  }
  0x83   : > { %3092 = vmatpush3.msra.mxu0 %v4156_v5  ;;  %3110 = vmatprep.subr.mxu1 %v3915_v6  ;;  %v4186_v13 = vld [vmem:[#allocation9 + $0x8] sm:$0xff]  ;;  %v4190_v14 = vld [vmem:[#allocation9] sm:$0xff]  ;;  %v4225_v33 = vld [vmem:[#allocation9 + $0x78] sm:$0xff]  ;;  %vm550_vm4 = vcmask 254976   ;;  %s3918_s28 = smov 96   ;;  %s3919_s21 = smov [#allocation13]  }
  0x84   : > { %3093 = vmatprep.subr.mxu0 %v3915_v6  ;;  %3126 = vmatprep.mubr.msk.f32.mxu1 %vm3916_vm1, %v3915_v6  ;;  %v420_v15 = vld [vmem:[%s4138_s27] sm:$0x3]  ;;  %v4227_v34 = vld [vmem:[#allocation9 + $0x70] sm:$0xff]  ;;  %v4235_v36 = vld [vmem:[#allocation9 + $0x60] sm:$0xff]  ;;  %p4853_p13 = scmp.eq.s32.totalorder %s3996_s13, 1 }
  0x85   : > { %v421_v4 = vld [vmem:[#allocation13] sm:$0x3]  ;;  %3094 = vmatpush3.msra.mxu0 %v4160_v7  ;;  %v4220_v18 = vld [vmem:[%s4819_s4] ss:$0 sm:$0xff]  ;;  %3111 = vmatpush3.msra.mxu1 %v4225_v33  ;;  %v4239_v37 = vld [vmem:[#allocation9 + $0x58] sm:$0xff] }
  0x86   : > { %423 = vrot.lane.b32.xlu0 %v421_v4, %s3914_s15  ;;  %v524_v9 = vld [vmem:[#allocation15] sm:$0x3]  ;;  %3095 = vmatprep.subr.mxu0 %v3915_v6  ;;  %v4231_v35 = vld [vmem:[#allocation9 + $0x68] sm:$0xff]  ;;  %v4243_v38 = vld [vmem:[#allocation9 + $0x50] sm:$0xff] }
  0x87   : > { %526 = vrot.lane.b32.xlu1 %v524_v9, %s3914_s15  ;;  %3096 = vmatpush3.msra.mxu0 %v4166_v8  ;;  %v4247_v40 = vld [vmem:[#allocation9 + $0x48] sm:$0xff]  ;;  %v558_v41 = vld [vmem:[#allocation13 + $0x2] sm:$0x3]  ;;  %v662_v58 = vld [vmem:[#allocation15 + $0x2] sm:$0x3] }
  0x88   : > { %3097 = vmatprep.subr.mxu0 %v3915_v6  ;;  %3112 = vmatprep.subr.mxu1 %v3915_v6  ;;  %v4255_v42 = vld [vmem:[#allocation9 + $0x40] sm:$0xff]  ;;  %v2871_v49 = vld [vmem:[%s4138_s27 + $0x2] sm:$0x3]  ;;  %v4308_v53 = vld [vmem:[%s4819_s4 + $0x1] ss:$0 sm:$0xff] }
  0x89   : > { %3098 = vmatpush3.msra.mxu0 %v4172_v10  ;;  %3113 = vmatpush3.msra.mxu1 %v4227_v34 }
  0x8a   : > { %3099 = vmatprep.subr.mxu0 %v3915_v6  ;;  %3114 = vmatprep.subr.mxu1 %v3915_v6 }
  0x8b   : > { %3100 = vmatpush3.msra.mxu0 %v4178_v11  ;;  %3115 = vmatpush3.msra.mxu1 %v4231_v35 }
  0x8c   : > { %3101 = vmatprep.subr.mxu0 %v3915_v6  ;;  %3116 = vmatprep.subr.mxu1 %v3915_v6 }
  0x8d   : > { %3102 = vmatpush3.msra.mxu0 %v4182_v12  ;;  %3117 = vmatpush3.msra.mxu1 %v4235_v36 }
  0x8e   : > { %3103 = vmatprep.subr.mxu0 %v3915_v6  ;;  %3118 = vmatprep.subr.mxu1 %v3915_v6 }
  0x8f   : > { %3104 = vmatpush3.msra.mxu0 %v4186_v13  ;;  %3119 = vmatpush3.msra.mxu1 %v4239_v37 }
  0x90   : > { %3105 = vmatprep.subr.mxu0 %v3915_v6  ;;  %3120 = vmatprep.subr.mxu1 %v3915_v6 }
  0x91   : > { %3106 = vmatpush3.msra.mxu0 %v4190_v14  ;;  %3121 = vmatpush3.msra.mxu1 %v4243_v38 }
  0x92   : > { %3129 = vmatprep.subr.mxu0 %v3915_v6  ;;  %3122 = vmatprep.subr.mxu1 %v3915_v6 }
  0x93   : > { %3123 = vmatpush3.msra.mxu1 %v4247_v40 }
  0x94   : > { %3124 = vmatprep.subr.mxu1 %v3915_v6 }
  0x95   : > { %3125 = vmatpush3.msra.mxu1 %v4255_v42 }
  0x96   : > { %3148 = vmatprep.subr.mxu1 %v3915_v6 }
  0xf8   : > { %v424_v16 = vpop.permute.xlu0 %423 }
  0xf9   : > { %v427_v17 = vsel %vm426_vm2, %v420_v15, %v424_v16  ;;  %v527_v29 = vpop.permute.xlu1 %526 }
  0xfa   : > { %3108 = vmatmul.mubr.msk.f32.vlgmr.msra.gmra.mxu0 %vm443_vm3, %v427_v17 }
  0xfb   : > { %3130 = vmatpush3.msra.mxu0 %v4156_v5  ;;  %3145 = vmatprep.mubr.msk.f32.mxu0 %vm3916_vm1, %v3915_v6 }
  0xfc   : > { %3131 = vmatprep.subr.mxu0 %v3915_v6 }
  0xfd   : > { %3132 = vmatpush3.msra.mxu0 %v4160_v7 }
  0xfe   : > { %3133 = vmatprep.subr.mxu0 %v3915_v6 }
  0xff   : > { %3134 = vmatpush3.msra.mxu0 %v4166_v8 }
 0x100   : > { %3135 = vmatprep.subr.mxu0 %v3915_v6 }
 0x101   : > { %3136 = vmatpush3.msra.mxu0 %v4172_v10 }
 0x102   : > { %3137 = vmatprep.subr.mxu0 %v3915_v6 }
 0x103   : > { %3138 = vmatpush3.msra.mxu0 %v4178_v11 }
 0x104   : > { %3139 = vmatprep.subr.mxu0 %v3915_v6 }
 0x105   : > { %3140 = vmatpush3.msra.mxu0 %v4182_v12 }
 0x106   : > { %3141 = vmatprep.subr.mxu0 %v3915_v6 }
 0x107   : > { %3142 = vmatpush3.msra.mxu0 %v4186_v13 }
 0x108   : > { %3143 = vmatprep.subr.mxu0 %v3915_v6 }
 0x109   : > { %3144 = vmatpush3.msra.mxu0 %v4190_v14 }
 0x10a   : > { %3167 = vmatprep.subr.mxu0 %v3915_v6 }
 0x1ba   : > { %v513_v19 = vpop.f32.mrf.mxu0 }
 0x1bb   : > { %v514_v20 = vadd.f32 %v4220_v18, %v513_v19 }
 0x1bc   : > { %v3109_v21 = vpop.f32.mrf.mxu0 }
 0x1bd   : > { %3519 = vtanh.f32 %v514_v20  ;;  %v2866_v23 = vmul.f32 -1.442695, %v514_v20 }
 0x1bf   : > { %3521 = vpow2.f32 %v2866_v23 }
 0x1ca   : > { %v3520_v22 = vpop.eup %3519 }
 0x1cb   : > { %531 = vrot.lane.b32.xlu0 %v3520_v22, %s3917_s26 }
 0x1cc   : > { %v3522_v24 = vpop.eup %3521 }
 0x1cd   : > { %v520_v25 = vadd.f32 1.0, %v3522_v24 }
 0x1cf   : > { %3523 = vrcp.f32 %v520_v25 }
 0x1dc   : > { %v3524_v26 = vpop.eup %3523 }
 0x1dd   : > { %v529_v30 = vmul.f32 %v3524_v26, %v527_v29 }
 0x23d   : > { %v532_v27 = vpop.permute.xlu0 %531 }
 0x23e   : > { %v534_v28 = vmul.f32 %v3524_v26, %v532_v27 }
 0x240   : > { %536 = vrot.lane.b32.xlu1 %v534_v28, %s3914_s15 }
 0x2b2   : > { %v537_v31 = vpop.permute.xlu1 %536 }
 0x2b3   : > { %v539_v32 = vadd.f32 %v537_v31, %v529_v30 }
 0x2b5   : > { %3525 = vtanh.f32 %v539_v32 }
 0x2c2   : > { %v3526_v39 = vpop.eup %3525 }
 0x2c3   : > { %542 = vrot.lane.b32.xlu0 %v3526_v39, %s3917_s26 }
 0x2c7   : > { %560 = vrot.lane.b32.xlu0 %v558_v41, %s3914_s15 }
 0x335   : > { %v543_v43 = vpop.permute.xlu0 %542 }
 0x336   : > { %v545_v44 = vmul.f32 %v3524_v26, %v543_v43 }
 0x338   : > { %553 = vrot.lane.b32.xlu1 %v545_v44, %s3914_s15 }
 0x339   : > { %v561_v45 = vpop.permute.xlu0 %560 }
 0x3aa   : > { %v554_v46 = vpop.permute.xlu1 %553 }
 0x3ab   : > { %556 = vst.msk [vmem:[#allocation13] sm:$0x3] %vm550_vm4, %v554_v46  ;;  %v563_v47 = vsel %vm426_vm2, %v554_v46, %v561_v45 }
 0x3ac   : > { %3127 = vmatmul.mubr.msk.f32.vlgmr.msra.gmra.mxu1 %vm443_vm3, %v563_v47 }
 0x3ad   : > { %3149 = vmatpush3.msra.mxu1 %v4225_v33  ;;  %3164 = vmatprep.mubr.msk.f32.mxu1 %vm3916_vm1, %v3915_v6 }
 0x3ae   : > { %3150 = vmatprep.subr.mxu1 %v3915_v6 }
 0x3af   : > { %3151 = vmatpush3.msra.mxu1 %v4227_v34 }
 0x3b0   : > { %3152 = vmatprep.subr.mxu1 %v3915_v6 }
 0x3b1   : > { %3153 = vmatpush3.msra.mxu1 %v4231_v35 }
 0x3b2   : > { %v697_v48 = vld [vmem:[#allocation13] sm:$0x3]  ;;  %3154 = vmatprep.subr.mxu1 %v3915_v6 }
 0x3b3   : > { %699 = vrot.lane.b32.xlu1 %v697_v48, %s3914_s15  ;;  %3155 = vmatpush3.msra.mxu1 %v4235_v36 }
 0x3b4   : > { %3156 = vmatprep.subr.mxu1 %v3915_v6 }
 0x3b5   : > { %3157 = vmatpush3.msra.mxu1 %v4239_v37 }
 0x3b6   : > { %3158 = vmatprep.subr.mxu1 %v3915_v6 }
 0x3b7   : > { %547 = vrot.lane.b32.xlu1 %v539_v32, %s3918_s28  ;;  %3159 = vmatpush3.msra.mxu1 %v4243_v38 }
 0x3b8   : > { %3160 = vmatprep.subr.mxu1 %v3915_v6 }
 0x3b9   : > { %3161 = vmatpush3.msra.mxu1 %v4247_v40 }
 0x3ba   : > { %3162 = vmatprep.subr.mxu1 %v3915_v6 }
 0x3bb   : > { %3163 = vmatpush3.msra.mxu1 %v4255_v42 }
 0x3bc   : > { %3186 = vmatprep.subr.mxu1 %v3915_v6 }
 0x425   : > { %v700_v50 = vpop.permute.xlu1 %699 }
 0x426   : > { %v702_v51 = vsel %vm426_vm2, %v2871_v49, %v700_v50 }
 0x427   : > { %3146 = vmatmul.mubr.msk.f32.vlgmr.msra.gmra.mxu0 %vm443_vm3, %v702_v51 }
 0x428   : > { %3168 = vmatpush3.msra.mxu0 %v4156_v5  ;;  %3183 = vmatprep.mubr.msk.f32.mxu0 %vm3916_vm1, %v3915_v6 }
 0x429   : > { %v548_v52 = vpop.permute.xlu1 %547  ;;  %3169 = vmatprep.subr.mxu0 %v3915_v6 }
 0x42a   : > { %551 = vst.msk [vmem:[#allocation15] sm:$0x3] %vm550_vm4, %v548_v52  ;;  %3170 = vmatpush3.msra.mxu0 %v4160_v7  ;;  %v2879_v52 = vld [vmem:[%s4138_s27 + $0x4] sm:$0x3] }
 0x42b   : > { %3171 = vmatprep.subr.mxu0 %v3915_v6 }
 0x42c   : > { %3172 = vmatpush3.msra.mxu0 %v4166_v8 }
 0x42d   : > { %3173 = vmatprep.subr.mxu0 %v3915_v6 }
 0x42e   : > { %3174 = vmatpush3.msra.mxu0 %v4172_v10 }
 0x42f   : > { %3175 = vmatprep.subr.mxu0 %v3915_v6 }
 0x430   : > { %3176 = vmatpush3.msra.mxu0 %v4178_v11 }
 0x431   : > { %3177 = vmatprep.subr.mxu0 %v3915_v6  ;;  %v798_v4 = vld [vmem:[#allocation15] sm:$0x3] }
 0x432   : > { %3178 = vmatpush3.msra.mxu0 %v4182_v12 }
 0x433   : > { %3179 = vmatprep.subr.mxu0 %v3915_v6 }
 0x434   : > { %3180 = vmatpush3.msra.mxu0 %v4186_v13 }
 0x435   : > { %3181 = vmatprep.subr.mxu0 %v3915_v6 }
 0x436   : > { %3182 = vmatpush3.msra.mxu0 %v4190_v14 }
 0x437   : > { %3205 = vmatprep.subr.mxu0 %v3915_v6 }
 0x46c   : > { %v650_v54 = vpop.f32.mrf.mxu1 }
 0x46d   : > { %v651_v55 = vadd.f32 %v4308_v53, %v650_v54 }
 0x46e   : > { %v3128_v56 = vpop.f32.mrf.mxu1 }
 0x46f   : > { %3527 = vtanh.f32 %v651_v55  ;;  %v2870_v59 = vmul.f32 -1.442695, %v651_v55 }
 0x471   : > { %3529 = vpow2.f32 %v2870_v59 }
 0x47c   : > { %v3528_v57 = vpop.eup %3527 }
 0x47d   : > { %669 = vrot.lane.b32.xlu0 %v3528_v57, %s3917_s26 }
 0x47e   : > { %v3530_v60 = vpop.eup %3529 }
 0x47f   : > { %v657_v61 = vadd.f32 1.0, %v3530_v60 }
 0x481   : > { %664 = vrot.lane.b32.xlu0 %v662_v58, %s3914_s15  ;;  %3531 = vrcp.f32 %v657_v61 }
 0x48e   : > { %v3532_v1 = vpop.eup %3531 }
 0x4e7   : > { %v787_v62 = vpop.f32.mrf.mxu0 }
 0x4e8   : > { %v788_v63 = vadd.f32 %v4220_v18, %v787_v62 }
 0x4e9   : > { %v3147_v0 = vpop.f32.mrf.mxu0 }
 0x4ea   : > { %3533 = vtanh.f32 %v788_v63  ;;  %v2874_v15 = vmul.f32 -1.442695, %v788_v63 }
 0x4ec   : > { %3535 = vpow2.f32 %v2874_v15 }
 0x4ef   : > { %v670_v2 = vpop.permute.xlu0 %669 }
 0x4f0   : > { %v672_v3 = vmul.f32 %v3532_v1, %v670_v2 }
 0x4f2   : > { %674 = vrot.lane.b32.xlu1 %v672_v3, %s3914_s15 }
 0x4f3   : > { %v665_v19 = vpop.permute.xlu0 %664 }
 0x4f4   : > { %v667_v20 = vmul.f32 %v3532_v1, %v665_v19 }
 0x4f6   : > { %800 = vrot.lane.b32.xlu1 %v798_v4, %s3914_s15 }
 0x4f7   : > { %v3534_v9 = vpop.eup %3533 }
 0x4f8   : > { %805 = vrot.lane.b32.xlu0 %v3534_v9, %s3917_s26 }
 0x4f9   : > { %v3536_v16 = vpop.eup %3535 }
 0x4fa   : > { %v794_v17 = vadd.f32 1.0, %v3536_v16 }
 0x4fc   : > { %3537 = vrcp.f32 %v794_v17 }
 0x509   : > { %v3538_v23 = vpop.eup %3537 }
 0x564   : > { %v675_v21 = vpop.permute.xlu1 %674 }
 0x565   : > { %v677_v22 = vadd.f32 %v675_v21, %v667_v20 }
 0x567   : > { %3539 = vtanh.f32 %v677_v22 }
 0x568   : > { %v801_v27 = vpop.permute.xlu1 %800 }
 0x569   : > { %v803_v28 = vmul.f32 %v3538_v23, %v801_v27 }
 0x56a   : > { %v806_v24 = vpop.permute.xlu0 %805 }
 0x56b   : > { %v808_v25 = vmul.f32 %v3538_v23, %v806_v24 }
 0x56d   : > { %810 = vrot.lane.b32.xlu0 %v808_v25, %s3914_s15 }
 0x574   : > { %v3540_v26 = vpop.eup %3539 }
 0x575   : > { %680 = vrot.lane.b32.xlu1 %v3540_v26, %s3917_s26 }
 0x5df   : > { %v811_v29 = vpop.permute.xlu0 %810 }
 0x5e0   : > { %v813_v30 = vadd.f32 %v811_v29, %v803_v28 }
 0x5e2   : > { %3541 = vtanh.f32 %v813_v30 }
 0x5e7   : > { %v681_v31 = vpop.permute.xlu1 %680 }
 0x5e8   : > { %v683_v32 = vmul.f32 %v3532_v1, %v681_v31 }
 0x5ea   : > { %690 = vrot.lane.b32.xlu0 %v683_v32, %s3914_s15 }
 0x5ef   : > { %v3542_v39 = vpop.eup %3541 }
 0x5f0   : > { %816 = vrot.lane.b32.xlu1 %v3542_v39, %s3917_s26 }
 0x65c   : > { %v691_v41 = vpop.permute.xlu0 %690 }
 0x65d   : > { %693 = vst.msk [vmem:[#allocation13 + $0x2] sm:$0x3] %vm550_vm4, %v691_v41  ;;  %694 = vst.msk [vmem:[#allocation2] sm:$0x3] %vm550_vm4, %v691_v41 }
 0x662   : > { %v817_v43 = vpop.permute.xlu1 %816 }
 0x663   : > { %v819_v44 = vmul.f32 %v3538_v23, %v817_v43 }
 0x664   : > { %v830_v45 = vld [vmem:[#allocation13 + $0x2] sm:$0x3] }
 0x665   : > { %832 = vrot.lane.b32.xlu1 %v830_v45, %s3914_s15  ;;  %826 = vrot.lane.b32.xlu0 %v819_v44, %s3914_s15 }
 0x669   : > { %685 = vrot.lane.b32.xlu1 %v677_v22, %s3918_s28 }
 0x66d   : > { %821 = vrot.lane.b32.xlu1 %v813_v30, %s3918_s28 }
 0x6d7   : > { %v827_v46 = vpop.permute.xlu0 %826  ;;  %v833_v47 = vpop.permute.xlu1 %832 }
 0x6d8   : > { %829 = vst.msk [vmem:[#allocation13] sm:$0x3] %vm550_vm4, %v827_v46  ;;  %v835_v48 = vsel %vm426_vm2, %v827_v46, %v833_v47 }
 0x6d9   : > { %3165 = vmatmul.mubr.msk.f32.vlgmr.msra.gmra.mxu1 %vm443_vm3, %v835_v48 }
 0x6da   : > { %3187 = vmatpush3.msra.mxu1 %v4225_v33  ;;  %3202 = vmatprep.mubr.msk.f32.mxu1 %vm3916_vm1, %v3915_v6 }
 0x6db   : > { %v686_v49 = vpop.permute.xlu1 %685  ;;  %3188 = vmatprep.subr.mxu1 %v3915_v6 }
 0x6dc   : > { %688 = vst.msk [vmem:[#allocation15 + $0x2] sm:$0x3] %vm550_vm4, %v686_v49  ;;  %3189 = vmatpush3.msra.mxu1 %v4227_v34 }
 0x6dd   : > { %3190 = vmatprep.subr.mxu1 %v3915_v6 }
 0x6de   : > { %3191 = vmatpush3.msra.mxu1 %v4231_v35 }
 0x6df   : > { %v822_v50 = vpop.permute.xlu1 %821  ;;  %v966_v51 = vld [vmem:[#allocation13] sm:$0x3]  ;;  %3192 = vmatprep.subr.mxu1 %v3915_v6 }
 0x6e0   : > { %824 = vst.msk [vmem:[#allocation15] sm:$0x3] %vm550_vm4, %v822_v50  ;;  %968 = vrot.lane.b32.xlu0 %v966_v51, %s3914_s15  ;;  %3193 = vmatpush3.msra.mxu1 %v4235_v36 }
 0x6e1   : > { %3194 = vmatprep.subr.mxu1 %v3915_v6 }
 0x6e2   : > { %3195 = vmatpush3.msra.mxu1 %v4239_v37 }
 0x6e3   : > { %3196 = vmatprep.subr.mxu1 %v3915_v6  ;;  %v931_v60 = vld [vmem:[#allocation15 + $0x2] sm:$0x3] }
 0x6e4   : > { %3197 = vmatpush3.msra.mxu1 %v4243_v38 }
 0x6e5   : > { %3198 = vmatprep.subr.mxu1 %v3915_v6 }
 0x6e6   : > { %3199 = vmatpush3.msra.mxu1 %v4247_v40 }
 0x6e7   : > { %3200 = vmatprep.subr.mxu1 %v3915_v6  ;;  %v1067_v15 = vld [vmem:[#allocation15] sm:$0x3] }
 0x6e8   : > { %3201 = vmatpush3.msra.mxu1 %v4255_v42 }
 0x6e9   : > { %3224 = vmatprep.subr.mxu1 %v3915_v6 }
 0x752   : > { %v969_v54 = vpop.permute.xlu0 %968 }
 0x753   : > { %v971_v55 = vsel %vm426_vm2, %v2879_v52, %v969_v54 }
 0x754   : > { %3184 = vmatmul.mubr.msk.f32.vlgmr.msra.gmra.mxu0 %vm443_vm3, %v971_v55  ;;  %v2887_v55 = vld [vmem:[%s4138_s27 + $0x6] sm:$0x3] }
 0x755   : > { %3206 = vmatpush3.msra.mxu0 %v4156_v5  ;;  %3221 = vmatprep.mubr.msk.f32.mxu0 %vm3916_vm1, %v3915_v6 }
 0x756   : > { %3207 = vmatprep.subr.mxu0 %v3915_v6 }
 0x757   : > { %3208 = vmatpush3.msra.mxu0 %v4160_v7 }
 0x758   : > { %3209 = vmatprep.subr.mxu0 %v3915_v6 }
 0x759   : > { %3210 = vmatpush3.msra.mxu0 %v4166_v8 }
 0x75a   : > { %3211 = vmatprep.subr.mxu0 %v3915_v6 }
 0x75b   : > { %3212 = vmatpush3.msra.mxu0 %v4172_v10 }
 0x75c   : > { %3213 = vmatprep.subr.mxu0 %v3915_v6 }
 0x75d   : > { %3214 = vmatpush3.msra.mxu0 %v4178_v11 }
 0x75e   : > { %3215 = vmatprep.subr.mxu0 %v3915_v6 }
 0x75f   : > { %3216 = vmatpush3.msra.mxu0 %v4182_v12 }
 0x760   : > { %3217 = vmatprep.subr.mxu0 %v3915_v6 }
 0x761   : > { %3218 = vmatpush3.msra.mxu0 %v4186_v13 }
 0x762   : > { %3219 = vmatprep.subr.mxu0 %v3915_v6 }
 0x763   : > { %3220 = vmatpush3.msra.mxu0 %v4190_v14 }
 0x764   : > { %3243 = vmatprep.subr.mxu0 %v3915_v6 }
 0x799   : > { %v920_v56 = vpop.f32.mrf.mxu1 }
 0x79a   : > { %v921_v57 = vadd.f32 %v4308_v53, %v920_v56 }
 0x79b   : > { %v3166_v58 = vpop.f32.mrf.mxu1 }
 0x79c   : > { %3543 = vtanh.f32 %v921_v57  ;;  %v2878_v61 = vmul.f32 -1.442695, %v921_v57 }
 0x79e   : > { %3545 = vpow2.f32 %v2878_v61 }
 0x7a9   : > { %v3544_v59 = vpop.eup %3543 }
 0x7aa   : > { %938 = vrot.lane.b32.xlu0 %v3544_v59, %s3917_s26 }
 0x7ab   : > { %v3546_v62 = vpop.eup %3545 }
 0x7ac   : > { %v927_v63 = vadd.f32 1.0, %v3546_v62 }
 0x7ae   : > { %933 = vrot.lane.b32.xlu0 %v931_v60, %s3914_s15  ;;  %3547 = vrcp.f32 %v927_v63 }
 0x7bb   : > { %v3548_v3 = vpop.eup %3547 }
 0x814   : > { %v1056_v0 = vpop.f32.mrf.mxu0 }
 0x815   : > { %v1057_v1 = vadd.f32 %v4220_v18, %v1056_v0 }
 0x816   : > { %v3185_v2 = vpop.f32.mrf.mxu0 }
 0x817   : > { %3549 = vtanh.f32 %v1057_v1  ;;  %v2882_v17 = vmul.f32 -1.442695, %v1057_v1 }
 0x819   : > { %3551 = vpow2.f32 %v2882_v17 }
 0x81c   : > { %v939_v4 = vpop.permute.xlu0 %938 }
 0x81d   : > { %v941_v9 = vmul.f32 %v3548_v3, %v939_v4 }
 0x81f   : > { %943 = vrot.lane.b32.xlu1 %v941_v9, %s3914_s15 }
 0x820   : > { %v934_v21 = vpop.permute.xlu0 %933 }
 0x821   : > { %v936_v22 = vmul.f32 %v3548_v3, %v934_v21 }
 0x823   : > { %1069 = vrot.lane.b32.xlu1 %v1067_v15, %s3914_s15 }
 0x824   : > { %v3550_v16 = vpop.eup %3549 }
 0x825   : > { %1074 = vrot.lane.b32.xlu0 %v3550_v16, %s3917_s26 }
 0x826   : > { %v3552_v19 = vpop.eup %3551 }
 0x827   : > { %v1063_v20 = vadd.f32 1.0, %v3552_v19 }
 0x829   : > { %3553 = vrcp.f32 %v1063_v20 }
 0x836   : > { %v3554_v25 = vpop.eup %3553 }
 0x891   : > { %v944_v23 = vpop.permute.xlu1 %943 }
 0x892   : > { %v946_v24 = vadd.f32 %v944_v23, %v936_v22 }
 0x894   : > { %3555 = vtanh.f32 %v946_v24 }
 0x895   : > { %v1070_v29 = vpop.permute.xlu1 %1069 }
 0x896   : > { %v1072_v30 = vmul.f32 %v3554_v25, %v1070_v29 }
 0x897   : > { %v1075_v26 = vpop.permute.xlu0 %1074 }
 0x898   : > { %v1077_v27 = vmul.f32 %v3554_v25, %v1075_v26 }
 0x89a   : > { %1079 = vrot.lane.b32.xlu0 %v1077_v27, %s3914_s15 }
 0x8a1   : > { %v3556_v28 = vpop.eup %3555 }
 0x8a2   : > { %949 = vrot.lane.b32.xlu1 %v3556_v28, %s3917_s26 }
 0x90c   : > { %v1080_v31 = vpop.permute.xlu0 %1079 }
 0x90d   : > { %v1082_v32 = vadd.f32 %v1080_v31, %v1072_v30 }
 0x90f   : > { %3557 = vtanh.f32 %v1082_v32 }
 0x914   : > { %v950_v39 = vpop.permute.xlu1 %949 }
 0x915   : > { %v952_v41 = vmul.f32 %v3548_v3, %v950_v39 }
 0x917   : > { %959 = vrot.lane.b32.xlu0 %v952_v41, %s3914_s15 }
 0x91c   : > { %v3558_v43 = vpop.eup %3557 }
 0x91d   : > { %1085 = vrot.lane.b32.xlu1 %v3558_v43, %s3917_s26 }
 0x989   : > { %v960_v44 = vpop.permute.xlu0 %959 }
 0x98a   : > { %962 = vst.msk [vmem:[#allocation13 + $0x2] sm:$0x3] %vm550_vm4, %v960_v44  ;;  %963 = vst.msk [vmem:[#allocation2 + $0x2] sm:$0x3] %vm550_vm4, %v960_v44 }
 0x98f   : > { %v1086_v45 = vpop.permute.xlu1 %1085 }
 0x990   : > { %v1088_v46 = vmul.f32 %v3554_v25, %v1086_v45 }
 0x991   : > { %v1099_v47 = vld [vmem:[#allocation13 + $0x2] sm:$0x3] }
 0x992   : > { %1101 = vrot.lane.b32.xlu1 %v1099_v47, %s3914_s15  ;;  %1095 = vrot.lane.b32.xlu0 %v1088_v46, %s3914_s15 }
 0x996   : > { %954 = vrot.lane.b32.xlu1 %v946_v24, %s3918_s28 }
 0x99a   : > { %1090 = vrot.lane.b32.xlu1 %v1082_v32, %s3918_s28 }
 0xa04   : > { %v1096_v48 = vpop.permute.xlu0 %1095  ;;  %v1102_v49 = vpop.permute.xlu1 %1101 }
 0xa05   : > { %1098 = vst.msk [vmem:[#allocation13] sm:$0x3] %vm550_vm4, %v1096_v48  ;;  %v1104_v50 = vsel %vm426_vm2, %v1096_v48, %v1102_v49 }
 0xa06   : > { %3203 = vmatmul.mubr.msk.f32.vlgmr.msra.gmra.mxu1 %vm443_vm3, %v1104_v50 }
 0xa07   : > { %3225 = vmatpush3.msra.mxu1 %v4225_v33  ;;  %3240 = vmatprep.mubr.msk.f32.mxu1 %vm3916_vm1, %v3915_v6 }
 0xa08   : > { %v955_v51 = vpop.permute.xlu1 %954  ;;  %3226 = vmatprep.subr.mxu1 %v3915_v6 }
 0xa09   : > { %957 = vst.msk [vmem:[#allocation15 + $0x2] sm:$0x3] %vm550_vm4, %v955_v51  ;;  %3227 = vmatpush3.msra.mxu1 %v4227_v34 }
 0xa0a   : > { %3228 = vmatprep.subr.mxu1 %v3915_v6 }
 0xa0b   : > { %3229 = vmatpush3.msra.mxu1 %v4231_v35 }
 0xa0c   : > { %v1091_v52 = vpop.permute.xlu1 %1090  ;;  %v1235_v54 = vld [vmem:[#allocation13] sm:$0x3]  ;;  %3230 = vmatprep.subr.mxu1 %v3915_v6 }
 0xa0d   : > { %1093 = vst.msk [vmem:[#allocation15] sm:$0x3] %vm550_vm4, %v1091_v52  ;;  %1237 = vrot.lane.b32.xlu0 %v1235_v54, %s3914_s15  ;;  %3231 = vmatpush3.msra.mxu1 %v4235_v36 }
 0xa0e   : > { %3232 = vmatprep.subr.mxu1 %v3915_v6 }
 0xa0f   : > { %3233 = vmatpush3.msra.mxu1 %v4239_v37 }
 0xa10   : > { %3234 = vmatprep.subr.mxu1 %v3915_v6 }
 0xa11   : > { %3235 = vmatpush3.msra.mxu1 %v4243_v38 }
 0xa12   : > { %3236 = vmatprep.subr.mxu1 %v3915_v6 }
 0xa13   : > { %3237 = vmatpush3.msra.mxu1 %v4247_v40 }
 0xa14   : > { %3238 = vmatprep.subr.mxu1 %v3915_v6  ;;  %v1336_v0 = vld [vmem:[#allocation15] sm:$0x3] }
 0xa15   : > { %3239 = vmatpush3.msra.mxu1 %v4255_v42 }
 0xa16   : > { %3262 = vmatprep.subr.mxu1 %v3915_v6 }
 0xa7f   : > { %v1238_v56 = vpop.permute.xlu0 %1237 }
 0xa80   : > { %v1240_v57 = vsel %vm426_vm2, %v2887_v55, %v1238_v56 }
 0xa81   : > { %3222 = vmatmul.mubr.msk.f32.vlgmr.msra.gmra.mxu0 %vm443_vm3, %v1240_v57 }
 0xa82   : > { %3244 = vmatpush3.msra.mxu0 %v4156_v5  ;;  %3259 = vmatprep.mubr.msk.f32.mxu0 %vm3916_vm1, %v3915_v6 }
 0xa83   : > { %3245 = vmatprep.subr.mxu0 %v3915_v6 }
 0xa84   : > { %3246 = vmatpush3.msra.mxu0 %v4160_v7 }
 0xa85   : > { %3247 = vmatprep.subr.mxu0 %v3915_v6 }
 0xa86   : > { %3248 = vmatpush3.msra.mxu0 %v4166_v8 }
 0xa87   : > { %3249 = vmatprep.subr.mxu0 %v3915_v6 }
 0xa88   : > { %3250 = vmatpush3.msra.mxu0 %v4172_v10 }
 0xa89   : > { %3251 = vmatprep.subr.mxu0 %v3915_v6 }
 0xa8a   : > { %3252 = vmatpush3.msra.mxu0 %v4178_v11  ;;  %v1200_v11 = vld [vmem:[#allocation15 + $0x2] sm:$0x3] }
 0xa8b   : > { %3253 = vmatprep.subr.mxu0 %v3915_v6 }
 0xa8c   : > { %3254 = vmatpush3.msra.mxu0 %v4182_v12 }
 0xa8d   : > { %3255 = vmatprep.subr.mxu0 %v3915_v6 }
 0xa8e   : > { %3256 = vmatpush3.msra.mxu0 %v4186_v13 }
 0xa8f   : > { %3257 = vmatprep.subr.mxu0 %v3915_v6 }
 0xa90   : > { %3258 = vmatpush3.msra.mxu0 %v4190_v14 }
 0xa91   : > { %3281 = vmatprep.subr.mxu0 %v3915_v6 }
 0xac6   : > { %v1189_v5 = vpop.f32.mrf.mxu1 }
 0xac7   : > { %v1190_v7 = vadd.f32 %v4308_v53, %v1189_v5 }
 0xac8   : > { %v3204_v8 = vpop.f32.mrf.mxu1 }
 0xac9   : > { %3559 = vtanh.f32 %v1190_v7  ;;  %v2886_v12 = vmul.f32 -1.442695, %v1190_v7 }
 0xacb   : > { %3561 = vpow2.f32 %v2886_v12 }
 0xad6   : > { %v3560_v10 = vpop.eup %3559 }
 0xad7   : > { %1207 = vrot.lane.b32.xlu0 %v3560_v10, %s3917_s26 }
 0xad8   : > { %v3562_v13 = vpop.eup %3561 }
 0xad9   : > { %v1196_v58 = vadd.f32 1.0, %v3562_v13 }
 0xadb   : > { %1202 = vrot.lane.b32.xlu0 %v1200_v11, %s3914_s15  ;;  %3563 = vrcp.f32 %v1196_v58 }
 0xae8   : > { %v3564_v61 = vpop.eup %3563 }
 0xb41   : > { %v1325_v59 = vpop.f32.mrf.mxu0 }
 0xb42   : > { %v1326_v14 = vadd.f32 %v4220_v18, %v1325_v59 }
 0xb43   : > { %v3223_v60 = vpop.f32.mrf.mxu0 }
 0xb44   : > { %3565 = vtanh.f32 %v1326_v14  ;;  %v2890_v2 = vmul.f32 -1.442695, %v1326_v14 }
 0xb46   : > { %3567 = vpow2.f32 %v2890_v2 }
 0xb49   : > { %v1208_v62 = vpop.permute.xlu0 %1207 }
 0xb4a   : > { %v1210_v63 = vmul.f32 %v3564_v61, %v1208_v62 }
 0xb4c   : > { %1212 = vrot.lane.b32.xlu1 %v1210_v63, %s3914_s15 }
 0xb4d   : > { %v1203_v9 = vpop.permute.xlu0 %1202 }
 0xb4e   : > { %v1205_v15 = vmul.f32 %v3564_v61, %v1203_v9 }
 0xb50   : > { %1338 = vrot.lane.b32.xlu1 %v1336_v0, %s3914_s15 }
 0xb51   : > { %v3566_v1 = vpop.eup %3565 }
 0xb52   : > { %1343 = vrot.lane.b32.xlu0 %v3566_v1, %s3917_s26 }
 0xb53   : > { %v3568_v3 = vpop.eup %3567 }
 0xb54   : > { %v1332_v4 = vadd.f32 1.0, %v3568_v3 }
 0xb56   : > { %3569 = vrcp.f32 %v1332_v4 }
 0xb63   : > { %v3570_v19 = vpop.eup %3569 }
 0xbbe   : > { %v1213_v16 = vpop.permute.xlu1 %1212 }
 0xbbf   : > { %v1215_v17 = vadd.f32 %v1213_v16, %v1205_v15  ;;  %v4493_v15 = vld [vmem:[#allocation9 + $0x38] sm:$0xff]  ;;  %v4495_v16 = vld [vmem:[#allocation9 + $0x30] sm:$0xff] }
 0xbc1   : > { %3571 = vtanh.f32 %v1215_v17 }
 0xbc2   : > { %v1339_v23 = vpop.permute.xlu1 %1338 }
 0xbc3   : > { %v1341_v24 = vmul.f32 %v3570_v19, %v1339_v23  ;;  %v4509_v23 = vld [vmem:[#allocation9 + $0x18] sm:$0xff] }
 0xbc4   : > { %v1344_v20 = vpop.permute.xlu0 %1343 }
 0xbc5   : > { %v1346_v21 = vmul.f32 %v3570_v19, %v1344_v20  ;;  %v4500_v20 = vld [vmem:[#allocation9 + $0x28] sm:$0xff] }
 0xbc7   : > { %1348 = vrot.lane.b32.xlu0 %v1346_v21, %s3914_s15 }
 0xbce   : > { %v3572_v22 = vpop.eup %3571 }
 0xbcf   : > { %1218 = vrot.lane.b32.xlu1 %v3572_v22, %s3917_s26  ;;  %v4505_v22 = vld [vmem:[#allocation9 + $0x20] sm:$0xff] }
 0xc39   : > { %v1349_v25 = vpop.permute.xlu0 %1348 }
 0xc3a   : > { %v1351_v26 = vadd.f32 %v1349_v25, %v1341_v24  ;;  %v4514_v24 = vld [vmem:[#allocation9 + $0x10] sm:$0xff]  ;;  %v4518_v25 = vld [vmem:[#allocation9 + $0x8] sm:$0xff] }
 0xc3c   : > { %3573 = vtanh.f32 %v1351_v26 }
 0xc41   : > { %v1219_v27 = vpop.permute.xlu1 %1218 }
 0xc42   : > { %v1221_v28 = vmul.f32 %v3564_v61, %v1219_v27 }
 0xc44   : > { %1228 = vrot.lane.b32.xlu0 %v1221_v28, %s3914_s15 }
 0xc49   : > { %v3574_v29 = vpop.eup %3573 }
 0xc4a   : > { %1354 = vrot.lane.b32.xlu1 %v3574_v29, %s3917_s26 }
 0xcb6   : > { %v1229_v30 = vpop.permute.xlu0 %1228 }
 0xcb7   : > { %1231 = vst.msk [vmem:[#allocation13 + $0x2] sm:$0x3] %vm550_vm4, %v1229_v30  ;;  %1232 = vst.msk [vmem:[#allocation2 + $0x4] sm:$0x3] %vm550_vm4, %v1229_v30 }
 0xcbc   : > { %v1355_v31 = vpop.permute.xlu1 %1354 }
 0xcbd   : > { %v1357_v32 = vmul.f32 %v3570_v19, %v1355_v31 }
 0xcbe   : > { %v1368_v39 = vld [vmem:[#allocation13 + $0x2] sm:$0x3] }
 0xcbf   : > { %1370 = vrot.lane.b32.xlu1 %v1368_v39, %s3914_s15  ;;  %1364 = vrot.lane.b32.xlu0 %v1357_v32, %s3914_s15  ;;  %v2903_v39 = vld [vmem:[%s4138_s27 + $0xa] sm:$0x3] }
 0xcc3   : > { %1223 = vrot.lane.b32.xlu1 %v1215_v17, %s3918_s28 }
 0xcc7   : > { %1359 = vrot.lane.b32.xlu1 %v1351_v26, %s3918_s28  ;;  %v4525_v26 = vld [vmem:[#allocation9] sm:$0xff] }
 0xd31   : > { %v1365_v41 = vpop.permute.xlu0 %1364  ;;  %v1371_v43 = vpop.permute.xlu1 %1370 }
 0xd32   : > { %1367 = vst.msk [vmem:[#allocation13] sm:$0x3] %vm550_vm4, %v1365_v41  ;;  %v1373_v44 = vsel %vm426_vm2, %v1365_v41, %v1371_v43 }
 0xd33   : > { %3241 = vmatmul.mubr.msk.f32.vlgmr.msra.gmra.mxu1 %vm443_vm3, %v1373_v44 }
 0xd34   : > { %3263 = vmatpush3.msra.mxu1 %v4225_v33  ;;  %3278 = vmatprep.mubr.msk.f32.mxu1 %vm3916_vm1, %v3915_v6  ;;  %v2895_v33 = vld [vmem:[%s4138_s27 + $0x8] sm:$0x3] }
 0xd35   : > { %v1224_v45 = vpop.permute.xlu1 %1223  ;;  %3264 = vmatprep.subr.mxu1 %v3915_v6 }
 0xd36   : > { %1226 = vst.msk [vmem:[#allocation15 + $0x2] sm:$0x3] %vm550_vm4, %v1224_v45  ;;  %3265 = vmatpush3.msra.mxu1 %v4227_v34 }
 0xd37   : > { %3266 = vmatprep.subr.mxu1 %v3915_v6 }
 0xd38   : > { %3267 = vmatpush3.msra.mxu1 %v4231_v35 }
 0xd39   : > { %v1360_v46 = vpop.permute.xlu1 %1359  ;;  %v1504_v47 = vld [vmem:[#allocation13] sm:$0x3]  ;;  %3268 = vmatprep.subr.mxu1 %v3915_v6 }
 0xd3a   : > { %1362 = vst.msk [vmem:[#allocation15] sm:$0x3] %vm550_vm4, %v1360_v46  ;;  %1506 = vrot.lane.b32.xlu0 %v1504_v47, %s3914_s15  ;;  %3269 = vmatpush3.msra.mxu1 %v4235_v36 }
 0xd3b   : > { %3270 = vmatprep.subr.mxu1 %v3915_v6 }
 0xd3c   : > { %3271 = vmatpush3.msra.mxu1 %v4239_v37 }
 0xd3d   : > { %3272 = vmatprep.subr.mxu1 %v3915_v6 }
 0xd3e   : > { %3273 = vmatpush3.msra.mxu1 %v4243_v38 }
 0xd3f   : > { %3274 = vmatprep.subr.mxu1 %v3915_v6 }
 0xd40   : > { %3275 = vmatpush3.msra.mxu1 %v4247_v40 }
 0xd41   : > { %3276 = vmatprep.subr.mxu1 %v3915_v6  ;;  %v1605_v5 = vld [vmem:[#allocation15] sm:$0x3] }
 0xd42   : > { %3277 = vmatpush3.msra.mxu1 %v4255_v42  ;;  %v1469_v42 = vld [vmem:[#allocation15 + $0x2] sm:$0x3] }
 0xd43   : > { %3300 = vmatprep.subr.mxu1 %v3915_v6 }
 0xdac   : > { %v1507_v34 = vpop.permute.xlu0 %1506 }
 0xdad   : > { %v1509_v35 = vsel %vm426_vm2, %v2895_v33, %v1507_v34 }
 0xdae   : > { %3260 = vmatmul.mubr.msk.f32.vlgmr.msra.gmra.mxu0 %vm443_vm3, %v1509_v35 }
 0xdaf   : > { %3297 = vmatprep.mubr.msk.f32.mxu0 %vm3916_vm1, %v3915_v6  ;;  %3282 = vmatpush3.msra.mxu0 %v4493_v15 }
 0xdb0   : > { %3283 = vmatprep.subr.mxu0 %v3915_v6 }
 0xdb1   : > { %3284 = vmatpush3.msra.mxu0 %v4495_v16 }
 0xdb2   : > { %3285 = vmatprep.subr.mxu0 %v3915_v6 }
 0xdb3   : > { %3286 = vmatpush3.msra.mxu0 %v4500_v20 }
 0xdb4   : > { %3287 = vmatprep.subr.mxu0 %v3915_v6 }
 0xdb5   : > { %3288 = vmatpush3.msra.mxu0 %v4505_v22 }
 0xdb6   : > { %3289 = vmatprep.subr.mxu0 %v3915_v6 }
 0xdb7   : > { %3290 = vmatpush3.msra.mxu0 %v4509_v23 }
 0xdb8   : > { %3291 = vmatprep.subr.mxu0 %v3915_v6 }
 0xdb9   : > { %3292 = vmatpush3.msra.mxu0 %v4514_v24 }
 0xdba   : > { %3293 = vmatprep.subr.mxu0 %v3915_v6 }
 0xdbb   : > { %3294 = vmatpush3.msra.mxu0 %v4518_v25 }
 0xdbc   : > { %3295 = vmatprep.subr.mxu0 %v3915_v6 }
 0xdbd   : > { %3296 = vmatpush3.msra.mxu0 %v4525_v26 }
 0xdbe   : > { %3319 = vmatprep.subr.mxu0 %v3915_v6 }
 0xdf3   : > { %v1458_v36 = vpop.f32.mrf.mxu1 }
 0xdf4   : > { %v1459_v37 = vadd.f32 %v4308_v53, %v1458_v36 }
 0xdf5   : > { %v3242_v38 = vpop.f32.mrf.mxu1 }
 0xdf6   : > { %3575 = vtanh.f32 %v1459_v37  ;;  %v2894_v48 = vmul.f32 -1.442695, %v1459_v37  ;;  %v4564_v37 = vld [vmem:[%s4819_s4] ss:$0 sm:$0xff] }
 0xdf8   : > { %3577 = vpow2.f32 %v2894_v48 }
 0xe03   : > { %v3576_v40 = vpop.eup %3575 }
 0xe04   : > { %1476 = vrot.lane.b32.xlu0 %v3576_v40, %s3917_s26 }
 0xe05   : > { %v3578_v49 = vpop.eup %3577 }
 0xe06   : > { %v1465_v50 = vadd.f32 1.0, %v3578_v49 }
 0xe08   : > { %1471 = vrot.lane.b32.xlu0 %v1469_v42, %s3914_s15  ;;  %3579 = vrcp.f32 %v1465_v50 }
 0xe15   : > { %v3580_v55 = vpop.eup %3579 }
 0xe6e   : > { %v1594_v51 = vpop.f32.mrf.mxu0 }
 0xe6f   : > { %v1595_v52 = vadd.f32 %v4220_v18, %v1594_v51 }
 0xe70   : > { %v3261_v54 = vpop.f32.mrf.mxu0 }
 0xe71   : > { %3581 = vtanh.f32 %v1595_v52  ;;  %v2898_v8 = vmul.f32 -1.442695, %v1595_v52 }
 0xe73   : > { %3583 = vpow2.f32 %v2898_v8 }
 0xe76   : > { %v1477_v56 = vpop.permute.xlu0 %1476 }
 0xe77   : > { %v1479_v57 = vmul.f32 %v3580_v55, %v1477_v56 }
 0xe79   : > { %1481 = vrot.lane.b32.xlu1 %v1479_v57, %s3914_s15 }
 0xe7a   : > { %v1472_v12 = vpop.permute.xlu0 %1471 }
 0xe7b   : > { %v1474_v18 = vmul.f32 %v3580_v55, %v1472_v12 }
 0xe7d   : > { %1607 = vrot.lane.b32.xlu1 %v1605_v5, %s3914_s15 }
 0xe7e   : > { %v3582_v7 = vpop.eup %3581 }
 0xe7f   : > { %1612 = vrot.lane.b32.xlu0 %v3582_v7, %s3917_s26 }
 0xe80   : > { %v3584_v10 = vpop.eup %3583 }
 0xe81   : > { %v1601_v11 = vadd.f32 1.0, %v3584_v10 }
 0xe83   : > { %3585 = vrcp.f32 %v1601_v11 }
 0xe90   : > { %v3586_v59 = vpop.eup %3585 }
 0xeeb   : > { %v1482_v13 = vpop.permute.xlu1 %1481 }
 0xeec   : > { %v1484_v58 = vadd.f32 %v1482_v13, %v1474_v18 }
 0xeee   : > { %3587 = vtanh.f32 %v1484_v58 }
 0xeef   : > { %v1608_v62 = vpop.permute.xlu1 %1607 }
 0xef0   : > { %v1610_v63 = vmul.f32 %v3586_v59, %v1608_v62  ;;  %v4575_v62 = vld [vmem:[#allocation9 + $0x70] sm:$0xff] }
 0xef1   : > { %v1613_v14 = vpop.permute.xlu0 %1612 }
 0xef2   : > { %v1615_v60 = vmul.f32 %v3586_v59, %v1613_v14 }
 0xef4   : > { %1617 = vrot.lane.b32.xlu0 %v1615_v60, %s3914_s15 }
 0xefb   : > { %v3588_v61 = vpop.eup %3587 }
 0xefc   : > { %1487 = vrot.lane.b32.xlu1 %v3588_v61, %s3917_s26  ;;  %v4573_v61 = vld [vmem:[#allocation9 + $0x78] sm:$0xff] }
 0xf66   : > { %v1618_v0 = vpop.permute.xlu0 %1617 }
 0xf67   : > { %v1620_v1 = vadd.f32 %v1618_v0, %v1610_v63  ;;  %v4579_v0 = vld [vmem:[#allocation9 + $0x68] sm:$0xff] }
 0xf69   : > { %3589 = vtanh.f32 %v1620_v1 }
 0xf6e   : > { %v1488_v2 = vpop.permute.xlu1 %1487 }
 0xf6f   : > { %v1490_v3 = vmul.f32 %v3580_v55, %v1488_v2  ;;  %v4588_v2 = vld [vmem:[#allocation9 + $0x58] sm:$0xff] }
 0xf71   : > { %1497 = vrot.lane.b32.xlu0 %v1490_v3, %s3914_s15  ;;  %v4592_v3 = vld [vmem:[#allocation9 + $0x50] sm:$0xff] }
 0xf76   : > { %v3590_v4 = vpop.eup %3589 }
 0xf77   : > { %1623 = vrot.lane.b32.xlu1 %v3590_v4, %s3917_s26  ;;  %v4596_v4 = vld [vmem:[#allocation9 + $0x48] sm:$0xff] }
 0xfe3   : > { %v1498_v9 = vpop.permute.xlu0 %1497 }
 0xfe4   : > { %1500 = vst.msk [vmem:[#allocation13 + $0x2] sm:$0x3] %vm550_vm4, %v1498_v9  ;;  %1501 = vst.msk [vmem:[#allocation2 + $0x6] sm:$0x3] %vm550_vm4, %v1498_v9  ;;  %v4602_v9 = vld [vmem:[#allocation9 + $0x40] sm:$0xff] }
 0xfe9   : > { %v1624_v17 = vpop.permute.xlu1 %1623 }
 0xfea   : > { %v1626_v19 = vmul.f32 %v3586_v59, %v1624_v17 }
 0xfeb   : > { %v1637_v21 = vld [vmem:[#allocation13 + $0x2] sm:$0x3] }
 0xfec   : > { %1639 = vrot.lane.b32.xlu1 %v1637_v21, %s3914_s15  ;;  %1633 = vrot.lane.b32.xlu0 %v1626_v19, %s3914_s15 }
 0xff0   : > { %1492 = vrot.lane.b32.xlu1 %v1484_v58, %s3918_s28 }
 0xff4   : > { %1628 = vrot.lane.b32.xlu1 %v1620_v1, %s3918_s28  ;;  %v4584_v1 = vld [vmem:[#allocation9 + $0x60] sm:$0xff] }
0x105e   : > { %v1634_v27 = vpop.permute.xlu0 %1633  ;;  %v1640_v28 = vpop.permute.xlu1 %1639 }
0x105f   : > { %1636 = vst.msk [vmem:[#allocation13] sm:$0x3] %vm550_vm4, %v1634_v27  ;;  %v1642_v29 = vsel %vm426_vm2, %v1634_v27, %v1640_v28 }
0x1060   : > { %3279 = vmatmul.mubr.msk.f32.vlgmr.msra.gmra.mxu1 %vm443_vm3, %v1642_v29 }
0x1061   : > { %3316 = vmatprep.mubr.msk.f32.mxu1 %vm3916_vm1, %v3915_v6  ;;  %3301 = vmatpush3.msra.mxu1 %v4573_v61 }
0x1062   : > { %v1493_v30 = vpop.permute.xlu1 %1492  ;;  %3302 = vmatprep.subr.mxu1 %v3915_v6 }
0x1063   : > { %1495 = vst.msk [vmem:[#allocation15 + $0x2] sm:$0x3] %vm550_vm4, %v1493_v30  ;;  %3303 = vmatpush3.msra.mxu1 %v4575_v62 }
0x1064   : > { %3304 = vmatprep.subr.mxu1 %v3915_v6 }
0x1065   : > { %3305 = vmatpush3.msra.mxu1 %v4579_v0 }
0x1066   : > { %v1629_v31 = vpop.permute.xlu1 %1628  ;;  %v1773_v32 = vld [vmem:[#allocation13] sm:$0x3]  ;;  %3306 = vmatprep.subr.mxu1 %v3915_v6 }
0x1067   : > { %1631 = vst.msk [vmem:[#allocation15] sm:$0x3] %vm550_vm4, %v1629_v31  ;;  %1775 = vrot.lane.b32.xlu0 %v1773_v32, %s3914_s15  ;;  %3307 = vmatpush3.msra.mxu1 %v4584_v1 }
0x1068   : > { %3308 = vmatprep.subr.mxu1 %v3915_v6 }
0x1069   : > { %3309 = vmatpush3.msra.mxu1 %v4588_v2 }
0x106a   : > { %v1738_v33 = vld [vmem:[#allocation15 + $0x2] sm:$0x3]  ;;  %3310 = vmatprep.subr.mxu1 %v3915_v6 }
0x106b   : > { %3311 = vmatpush3.msra.mxu1 %v4592_v3 }
0x106c   : > { %3312 = vmatprep.subr.mxu1 %v3915_v6 }
0x106d   : > { %3313 = vmatpush3.msra.mxu1 %v4596_v4 }
0x106e   : > { %v1874_v50 = vld [vmem:[#allocation15] sm:$0x3]  ;;  %3314 = vmatprep.subr.mxu1 %v3915_v6 }
0x106f   : > { %3315 = vmatpush3.msra.mxu1 %v4602_v9 }
0x1070   : > { %3338 = vmatprep.subr.mxu1 %v3915_v6 }
0x10d9   : > { %v1776_v41 = vpop.permute.xlu0 %1775 }
0x10da   : > { %v1778_v43 = vsel %vm426_vm2, %v2903_v39, %v1776_v41  ;;  %v2911_v41 = vld [vmem:[%s4138_s27 + $0xc] sm:$0x3] }
0x10db   : > { %3298 = vmatmul.mubr.msk.f32.vlgmr.msra.gmra.mxu0 %vm443_vm3, %v1778_v43 }
0x10dc   : > { %3320 = vmatpush3.msra.mxu0 %v4493_v15  ;;  %3335 = vmatprep.mubr.msk.f32.mxu0 %vm3916_vm1, %v3915_v6 }
0x10dd   : > { %3321 = vmatprep.subr.mxu0 %v3915_v6 }
0x10de   : > { %3322 = vmatpush3.msra.mxu0 %v4495_v16 }
0x10df   : > { %3323 = vmatprep.subr.mxu0 %v3915_v6 }
0x10e0   : > { %3324 = vmatpush3.msra.mxu0 %v4500_v20 }
0x10e1   : > { %3325 = vmatprep.subr.mxu0 %v3915_v6 }
0x10e2   : > { %3326 = vmatpush3.msra.mxu0 %v4505_v22 }
0x10e3   : > { %3327 = vmatprep.subr.mxu0 %v3915_v6 }
0x10e4   : > { %3328 = vmatpush3.msra.mxu0 %v4509_v23 }
0x10e5   : > { %3329 = vmatprep.subr.mxu0 %v3915_v6 }
0x10e6   : > { %3330 = vmatpush3.msra.mxu0 %v4514_v24 }
0x10e7   : > { %3331 = vmatprep.subr.mxu0 %v3915_v6 }
0x10e8   : > { %3332 = vmatpush3.msra.mxu0 %v4518_v25 }
0x10e9   : > { %3333 = vmatprep.subr.mxu0 %v3915_v6 }
0x10ea   : > { %3334 = vmatpush3.msra.mxu0 %v4525_v26 }
0x10eb   : > { %3357 = vmatprep.subr.mxu0 %v3915_v6 }
0x1120   : > { %v1727_v44 = vpop.f32.mrf.mxu1 }
0x1121   : > { %v1728_v45 = vadd.f32 %v4308_v53, %v1727_v44 }
0x1122   : > { %v3280_v46 = vpop.f32.mrf.mxu1 }
0x1123   : > { %3591 = vtanh.f32 %v1728_v45  ;;  %v2902_v34 = vmul.f32 -1.442695, %v1728_v45 }
0x1125   : > { %3593 = vpow2.f32 %v2902_v34 }
0x1130   : > { %v3592_v47 = vpop.eup %3591 }
0x1131   : > { %1745 = vrot.lane.b32.xlu0 %v3592_v47, %s3917_s26 }
0x1132   : > { %v3594_v35 = vpop.eup %3593 }
0x1133   : > { %v1734_v36 = vadd.f32 1.0, %v3594_v35 }
0x1135   : > { %1740 = vrot.lane.b32.xlu0 %v1738_v33, %s3914_s15  ;;  %3595 = vrcp.f32 %v1734_v36 }
0x1142   : > { %v3596_v42 = vpop.eup %3595 }
0x119b   : > { %v1863_v38 = vpop.f32.mrf.mxu0 }
0x119c   : > { %v1864_v53 = vadd.f32 %v4564_v37, %v1863_v38 }
0x119d   : > { %v3299_v40 = vpop.f32.mrf.mxu0 }
0x119e   : > { %3597 = vtanh.f32 %v1864_v53  ;;  %v2906_v52 = vmul.f32 -1.442695, %v1864_v53 }
0x11a0   : > { %3599 = vpow2.f32 %v2906_v52 }
0x11a3   : > { %v1746_v48 = vpop.permute.xlu0 %1745 }
0x11a4   : > { %v1748_v49 = vmul.f32 %v3596_v42, %v1746_v48 }
0x11a6   : > { %1750 = vrot.lane.b32.xlu1 %v1748_v49, %s3914_s15 }
0x11a7   : > { %v1741_v56 = vpop.permute.xlu0 %1740 }
0x11a8   : > { %v1743_v57 = vmul.f32 %v3596_v42, %v1741_v56 }
0x11aa   : > { %1876 = vrot.lane.b32.xlu1 %v1874_v50, %s3914_s15 }
0x11ab   : > { %v3598_v51 = vpop.eup %3597 }
0x11ac   : > { %1881 = vrot.lane.b32.xlu0 %v3598_v51, %s3917_s26 }
0x11ad   : > { %v3600_v54 = vpop.eup %3599 }
0x11ae   : > { %v1870_v55 = vadd.f32 1.0, %v3600_v54 }
0x11b0   : > { %3601 = vrcp.f32 %v1870_v55 }
0x11bd   : > { %v3602_v8 = vpop.eup %3601 }
0x1218   : > { %v1751_v5 = vpop.permute.xlu1 %1750 }
0x1219   : > { %v1753_v7 = vadd.f32 %v1751_v5, %v1743_v57 }
0x121b   : > { %3603 = vtanh.f32 %v1753_v7 }
0x121c   : > { %v1877_v18 = vpop.permute.xlu1 %1876 }
0x121d   : > { %v1879_v13 = vmul.f32 %v3602_v8, %v1877_v18 }
0x121e   : > { %v1882_v10 = vpop.permute.xlu0 %1881 }
0x121f   : > { %v1884_v11 = vmul.f32 %v3602_v8, %v1882_v10 }
0x1221   : > { %1886 = vrot.lane.b32.xlu0 %v1884_v11, %s3914_s15 }
0x1228   : > { %v3604_v12 = vpop.eup %3603 }
0x1229   : > { %1756 = vrot.lane.b32.xlu1 %v3604_v12, %s3917_s26 }
0x1293   : > { %v1887_v58 = vpop.permute.xlu0 %1886 }
0x1294   : > { %v1889_v59 = vadd.f32 %v1887_v58, %v1879_v13 }
0x1296   : > { %3605 = vtanh.f32 %v1889_v59 }
0x129b   : > { %v1757_v14 = vpop.permute.xlu1 %1756 }
0x129c   : > { %v1759_v60 = vmul.f32 %v3596_v42, %v1757_v14 }
0x129e   : > { %1766 = vrot.lane.b32.xlu0 %v1759_v60, %s3914_s15 }
0x12a3   : > { %v3606_v63 = vpop.eup %3605 }
0x12a4   : > { %1892 = vrot.lane.b32.xlu1 %v3606_v63, %s3917_s26 }
0x1310   : > { %v1767_v17 = vpop.permute.xlu0 %1766 }
0x1311   : > { %1769 = vst.msk [vmem:[#allocation13 + $0x2] sm:$0x3] %vm550_vm4, %v1767_v17  ;;  %1770 = vst.msk [vmem:[#allocation2 + $0x8] sm:$0x3] %vm550_vm4, %v1767_v17 }
0x1316   : > { %v1893_v19 = vpop.permute.xlu1 %1892 }
0x1317   : > { %v1895_v21 = vmul.f32 %v3602_v8, %v1893_v19 }
0x1318   : > { %v1906_v27 = vld [vmem:[#allocation13 + $0x2] sm:$0x3] }
0x1319   : > { %1908 = vrot.lane.b32.xlu1 %v1906_v27, %s3914_s15  ;;  %1902 = vrot.lane.b32.xlu0 %v1895_v21, %s3914_s15 }
0x131d   : > { %1761 = vrot.lane.b32.xlu1 %v1753_v7, %s3918_s28 }
0x1321   : > { %1897 = vrot.lane.b32.xlu1 %v1889_v59, %s3918_s28 }
0x138b   : > { %v1903_v28 = vpop.permute.xlu0 %1902  ;;  %v1909_v29 = vpop.permute.xlu1 %1908 }
0x138c   : > { %1905 = vst.msk [vmem:[#allocation13] sm:$0x3] %vm550_vm4, %v1903_v28  ;;  %v1911_v30 = vsel %vm426_vm2, %v1903_v28, %v1909_v29 }
0x138d   : > { %3317 = vmatmul.mubr.msk.f32.vlgmr.msra.gmra.mxu1 %vm443_vm3, %v1911_v30 }
0x138e   : > { %3339 = vmatpush3.msra.mxu1 %v4573_v61  ;;  %3354 = vmatprep.mubr.msk.f32.mxu1 %vm3916_vm1, %v3915_v6 }
0x138f   : > { %v1762_v31 = vpop.permute.xlu1 %1761  ;;  %3340 = vmatprep.subr.mxu1 %v3915_v6 }
0x1390   : > { %1764 = vst.msk [vmem:[#allocation15 + $0x2] sm:$0x3] %vm550_vm4, %v1762_v31  ;;  %3341 = vmatpush3.msra.mxu1 %v4575_v62 }
0x1391   : > { %3342 = vmatprep.subr.mxu1 %v3915_v6 }
0x1392   : > { %3343 = vmatpush3.msra.mxu1 %v4579_v0 }
0x1393   : > { %v1898_v32 = vpop.permute.xlu1 %1897  ;;  %v2042_v39 = vld [vmem:[#allocation13] sm:$0x3]  ;;  %3344 = vmatprep.subr.mxu1 %v3915_v6 }
0x1394   : > { %1900 = vst.msk [vmem:[#allocation15] sm:$0x3] %vm550_vm4, %v1898_v32  ;;  %2044 = vrot.lane.b32.xlu0 %v2042_v39, %s3914_s15  ;;  %3345 = vmatpush3.msra.mxu1 %v4584_v1 }
0x1395   : > { %3346 = vmatprep.subr.mxu1 %v3915_v6 }
0x1396   : > { %3347 = vmatpush3.msra.mxu1 %v4588_v2 }
0x1397   : > { %3348 = vmatprep.subr.mxu1 %v3915_v6 }
0x1398   : > { %3349 = vmatpush3.msra.mxu1 %v4592_v3 }
0x1399   : > { %3350 = vmatprep.subr.mxu1 %v3915_v6 }
0x139a   : > { %3351 = vmatpush3.msra.mxu1 %v4596_v4 }
0x139b   : > { %3352 = vmatprep.subr.mxu1 %v3915_v6  ;;  %v2143_v38 = vld [vmem:[#allocation15] sm:$0x3] }
0x139c   : > { %3353 = vmatpush3.msra.mxu1 %v4602_v9 }
0x139d   : > { %3376 = vmatprep.subr.mxu1 %v3915_v6 }
0x1406   : > { %v2045_v43 = vpop.permute.xlu0 %2044 }
0x1407   : > { %v2047_v44 = vsel %vm426_vm2, %v2911_v41, %v2045_v43 }
0x1408   : > { %3336 = vmatmul.mubr.msk.f32.vlgmr.msra.gmra.mxu0 %vm443_vm3, %v2047_v44 }
0x1409   : > { %3358 = vmatpush3.msra.mxu0 %v4493_v15  ;;  %3373 = vmatprep.mubr.msk.f32.mxu0 %vm3916_vm1, %v3915_v6  ;;  %v4659_v15 = vld [vmem:[%s4819_s4 + $0x1] ss:$0 sm:$0xff] }
0x140a   : > { %3359 = vmatprep.subr.mxu0 %v3915_v6 }
0x140b   : > { %3360 = vmatpush3.msra.mxu0 %v4495_v16 }
0x140c   : > { %3361 = vmatprep.subr.mxu0 %v3915_v6 }
0x140d   : > { %3362 = vmatpush3.msra.mxu0 %v4500_v20 }
0x140e   : > { %3363 = vmatprep.subr.mxu0 %v3915_v6 }
0x140f   : > { %3364 = vmatpush3.msra.mxu0 %v4505_v22 }
0x1410   : > { %3365 = vmatprep.subr.mxu0 %v3915_v6 }
0x1411   : > { %3366 = vmatpush3.msra.mxu0 %v4509_v23 }
0x1412   : > { %3367 = vmatprep.subr.mxu0 %v3915_v6 }
0x1413   : > { %3368 = vmatpush3.msra.mxu0 %v4514_v24  ;;  %v2007_v24 = vld [vmem:[#allocation15 + $0x2] sm:$0x3] }
0x1414   : > { %3369 = vmatprep.subr.mxu0 %v3915_v6 }
0x1415   : > { %3370 = vmatpush3.msra.mxu0 %v4518_v25 }
0x1416   : > { %3371 = vmatprep.subr.mxu0 %v3915_v6 }
0x1417   : > { %3372 = vmatpush3.msra.mxu0 %v4525_v26 }
0x144d   : > { %v1996_v16 = vpop.f32.mrf.mxu1 }
0x144e   : > { %v1997_v20 = vadd.f32 %v4659_v15, %v1996_v16 }
0x144f   : > { %v3318_v22 = vpop.f32.mrf.mxu1 }
0x1450   : > { %3607 = vtanh.f32 %v1997_v20  ;;  %v2910_v25 = vmul.f32 -1.442695, %v1997_v20 }
0x1452   : > { %3609 = vpow2.f32 %v2910_v25 }
0x145d   : > { %v3608_v23 = vpop.eup %3607 }
0x145e   : > { %2014 = vrot.lane.b32.xlu0 %v3608_v23, %s3917_s26 }
0x145f   : > { %v3610_v45 = vpop.eup %3609 }
0x1460   : > { %v2003_v26 = vadd.f32 1.0, %v3610_v45 }
0x1462   : > { %2009 = vrot.lane.b32.xlu0 %v2007_v24, %s3914_s15  ;;  %3611 = vrcp.f32 %v2003_v26 }
0x146f   : > { %v3612_v34 = vpop.eup %3611 }
0x14c8   : > { %v2132_v46 = vpop.f32.mrf.mxu0 }
0x14c9   : > { %v2133_v47 = vadd.f32 %v4564_v37, %v2132_v46 }
0x14ca   : > { %v3337_v33 = vpop.f32.mrf.mxu0 }
0x14cb   : > { %3613 = vtanh.f32 %v2133_v47  ;;  %v2914_v40 = vmul.f32 -1.442695, %v2133_v47 }
0x14cd   : > { %3615 = vpow2.f32 %v2914_v40 }
0x14d0   : > { %v2015_v35 = vpop.permute.xlu0 %2014 }
0x14d1   : > { %v2017_v36 = vmul.f32 %v3612_v34, %v2015_v35 }
0x14d3   : > { %2019 = vrot.lane.b32.xlu1 %v2017_v36, %s3914_s15 }
0x14d4   : > { %v2010_v49 = vpop.permute.xlu0 %2009 }
0x14d5   : > { %v2012_v50 = vmul.f32 %v3612_v34, %v2010_v49 }
0x14d7   : > { %2145 = vrot.lane.b32.xlu1 %v2143_v38, %s3914_s15 }
0x14d8   : > { %v3614_v53 = vpop.eup %3613 }
0x14d9   : > { %2150 = vrot.lane.b32.xlu0 %v3614_v53, %s3917_s26 }
0x14da   : > { %v3616_v42 = vpop.eup %3615 }
0x14db   : > { %v2139_v48 = vadd.f32 1.0, %v3616_v42 }
0x14dd   : > { %3617 = vrcp.f32 %v2139_v48 }
0x14ea   : > { %v3618_v54 = vpop.eup %3617 }
0x1545   : > { %v2020_v51 = vpop.permute.xlu1 %2019 }
0x1546   : > { %v2022_v52 = vadd.f32 %v2020_v51, %v2012_v50 }
0x1548   : > { %3619 = vtanh.f32 %v2022_v52 }
0x1549   : > { %v2146_v5 = vpop.permute.xlu1 %2145 }
0x154a   : > { %v2148_v7 = vmul.f32 %v3618_v54, %v2146_v5 }
0x154b   : > { %v2151_v55 = vpop.permute.xlu0 %2150 }
0x154c   : > { %v2153_v56 = vmul.f32 %v3618_v54, %v2151_v55 }
0x154e   : > { %2155 = vrot.lane.b32.xlu0 %v2153_v56, %s3914_s15 }
0x1555   : > { %v3620_v57 = vpop.eup %3619 }
0x1556   : > { %2025 = vrot.lane.b32.xlu1 %v3620_v57, %s3917_s26 }
0x15c0   : > { %v2156_v8 = vpop.permute.xlu0 %2155 }
0x15c1   : > { %v2158_v10 = vadd.f32 %v2156_v8, %v2148_v7 }
0x15c3   : > { %3621 = vtanh.f32 %v2158_v10 }
0x15c8   : > { %v2026_v11 = vpop.permute.xlu1 %2025 }
0x15c9   : > { %v2028_v12 = vmul.f32 %v3612_v34, %v2026_v11 }
0x15cb   : > { %2035 = vrot.lane.b32.xlu0 %v2028_v12, %s3914_s15 }
0x15d0   : > { %v3622_v18 = vpop.eup %3621 }
0x15d1   : > { %2161 = vrot.lane.b32.xlu1 %v3622_v18, %s3917_s26 }
0x163d   : > { %v2036_v13 = vpop.permute.xlu0 %2035 }
0x163e   : > { %2038 = vst.msk [vmem:[#allocation13 + $0x2] sm:$0x3] %vm550_vm4, %v2036_v13  ;;  %2039 = vst.msk [vmem:[#allocation2 + $0xa] sm:$0x3] %vm550_vm4, %v2036_v13 }
0x1643   : > { %v2162_v58 = vpop.permute.xlu1 %2161 }
0x1644   : > { %v2164_v59 = vmul.f32 %v3618_v54, %v2162_v58 }
0x1645   : > { %v2175_v14 = vld [vmem:[#allocation13 + $0x2] sm:$0x3] }
0x1646   : > { %2177 = vrot.lane.b32.xlu1 %v2175_v14, %s3914_s15  ;;  %2171 = vrot.lane.b32.xlu0 %v2164_v59, %s3914_s15 }
0x164a   : > { %2030 = vrot.lane.b32.xlu1 %v2022_v52, %s3918_s28 }
0x164e   : > { %2166 = vrot.lane.b32.xlu1 %v2158_v10, %s3918_s28 }
0x16b8   : > { %v2172_v60 = vpop.permute.xlu0 %2171  ;;  %v2178_v63 = vpop.permute.xlu1 %2177 }
0x16b9   : > { %2174 = vst.msk [vmem:[#allocation13] sm:$0x3] %vm550_vm4, %v2172_v60  ;;  %v2180_v17 = vsel %vm426_vm2, %v2172_v60, %v2178_v63 }
0x16ba   : > { %3355 = vmatmul.mubr.msk.f32.vlgmr.msra.gmra.mxu1 %vm443_vm3, %v2180_v17 }
0x16bb   : > { %3377 = vmatpush3.msra.mxu1 %v4573_v61  ;;  %3392 = vmatprep.mubr.msk.f32.mxu1 %vm3916_vm1, %v3915_v6  ;;  %v2919_v61 = vld [vmem:[%s4138_s27 + $0xe] sm:$0x3]  ;;  %s2701_s27 = sshll.u32 %s3919_s21, 4  ;;  %s2702_s27 = int_to_ptr.vmem [resolvable:$true] %s2701_s27 }
0x16bc   : > { %v2031_v19 = vpop.permute.xlu1 %2030  ;;  %3378 = vmatprep.subr.mxu1 %v3915_v6  ;;  %s3779_s24 = scalar_lea.vmem %s2702_s27, 64  ;;  %p3786_p3 = scmp.lt.s32.totalorder %s2702_s27, %s2702_s27 }
0x16bd   : > { %2033 = vst.msk [vmem:[#allocation15 + $0x2] sm:$0x3] %vm550_vm4, %v2031_v19  ;;  %3379 = vmatpush3.msra.mxu1 %v4575_v62  ;;  %p3780_p2 = scmp.ne.s32.totalorder %s2702_s27, %s3779_s24  ;;  %p3787_p8 = scmp.lt.s32.totalorder %s3779_s24, %s3779_s24 }
0x16be   : > { %3380 = vmatprep.subr.mxu1 %v3915_v6 }
0x16bf   : > { %3381 = vmatpush3.msra.mxu1 %v4579_v0  ;;  %p3781_p7 = pnand %p3780_p2, %p4853_p13  ;;  %p3788_p5 = por %p3787_p8, %p3786_p3 }
0x16c0   : > { %v2167_v21 = vpop.permute.xlu1 %2166  ;;  %v2311_v27 = vld [vmem:[#allocation13] sm:$0x3]  ;;  %3382 = vmatprep.subr.mxu1 %v3915_v6 }
0x16c1   : > { %2169 = vst.msk [vmem:[#allocation15] sm:$0x3] %vm550_vm4, %v2167_v21  ;;  %2313 = vrot.lane.b32.xlu0 %v2311_v27, %s3914_s15  ;;  %3383 = vmatpush3.msra.mxu1 %v4584_v1  ;;  %v2578_v1 = vld [vmem:[#allocation2] sm:$0xff]  ;;  %v2583_v21 = vld [vmem:[#allocation11 + $0x18] sm:$0xff]  ;;  %v2582_v27 = vld [vmem:[#allocation11 + $0x10] sm:$0xff]  ;;  %p3782_p10 = pneg %p3781_p7 }
0x16c2   : > { %3384 = vmatprep.subr.mxu1 %v3915_v6  ;;  %3395 = vmatprep.subr.mxu0 %v2583_v21 }
0x16c3   : > { %3385 = vmatpush3.msra.mxu1 %v4588_v2  ;;  %p3789_p6 = pnand %p3788_p5, %p3782_p10 }
0x16c4   : > { %3386 = vmatprep.subr.mxu1 %v3915_v6 }
0x16c5   : > { %3387 = vmatpush3.msra.mxu1 %v4592_v3 }
0x16c6   : > { %3388 = vmatprep.subr.mxu1 %v3915_v6 }
0x16c7   : > { %3389 = vmatpush3.msra.mxu1 %v4596_v4 }
0x16c8   : > { %3390 = vmatprep.subr.mxu1 %v3915_v6  ;;  %v2276_v6 = vld [vmem:[#allocation15 + $0x2] sm:$0x3]  ;;  %v2412_v16 = vld [vmem:[#allocation15] sm:$0x3] }
0x16c9   : > { %3391 = vmatpush3.msra.mxu1 %v4602_v9 }
0x1733   : > { %v2314_v62 = vpop.permute.xlu0 %2313 }
0x1734   : > { %v2316_v0 = vsel %vm426_vm2, %v2919_v61, %v2314_v62  ;;  %v2581_v61 = vld [vmem:[#allocation11 + $0x8] sm:$0xff]  ;;  %v2580_v62 = vld [vmem:[#allocation11] sm:$0xff] }
0x1735   : > { %3374 = vmatmul.mubr.msk.f32.vlgmr.msra.gmra.mxu0 %vm443_vm3, %v2316_v0 }
0x1736   : > { %3403 = vmatprep.mubr.msk.f32.mxu0 %vm426_vm2, %v2578_v1  ;;  %3396 = vmatpush3.msra.mxu0 %v2583_v21 }
0x1737   : > { %3397 = vmatprep.subr.mxu0 %v2582_v27 }
0x1738   : > { %3398 = vmatpush3.msra.mxu0 %v2582_v27 }
0x1739   : > { %3399 = vmatprep.subr.mxu0 %v2581_v61 }
0x173a   : > { %3400 = vmatpush3.msra.mxu0 %v2581_v61 }
0x173b   : > { %3401 = vmatprep.subr.mxu0 %v2580_v62 }
0x173c   : > { %3402 = vmatpush3.msra.mxu0 %v2580_v62 }
0x177a   : > { %v2265_v2 = vpop.f32.mrf.mxu1 }
0x177b   : > { %v2266_v3 = vadd.f32 %v4659_v15, %v2265_v2 }
0x177c   : > { %v3356_v28 = vpop.f32.mrf.mxu1 }
0x177d   : > { %3623 = vtanh.f32 %v2266_v3  ;;  %v2918_v4 = vmul.f32 -1.442695, %v2266_v3 }
0x177f   : > { %3625 = vpow2.f32 %v2918_v4 }
0x178a   : > { %v3624_v29 = vpop.eup %3623 }
0x178b   : > { %2283 = vrot.lane.b32.xlu0 %v3624_v29, %s3917_s26 }
0x178c   : > { %v3626_v9 = vpop.eup %3625 }
0x178d   : > { %v2272_v30 = vadd.f32 1.0, %v3626_v9 }
0x178f   : > { %2278 = vrot.lane.b32.xlu0 %v2276_v6, %s3914_s15  ;;  %3627 = vrcp.f32 %v2272_v30 }
0x179c   : > { %v3628_v41 = vpop.eup %3627 }
0x17f5   : > { %v2401_v31 = vpop.f32.mrf.mxu0 }
0x17f6   : > { %v2402_v32 = vadd.f32 %v4564_v37, %v2401_v31 }
0x17f7   : > { %v3375_v39 = vpop.f32.mrf.mxu0 }
0x17f8   : > { %3629 = vtanh.f32 %v2402_v32  ;;  %v2922_v22 = vmul.f32 -1.442695, %v2402_v32 }
0x17fa   : > { %3631 = vpow2.f32 %v2922_v22 }
0x17fd   : > { %v2284_v43 = vpop.permute.xlu0 %2283 }
0x17fe   : > { %v2286_v44 = vmul.f32 %v3628_v41, %v2284_v43 }
0x1800   : > { %2288 = vrot.lane.b32.xlu1 %v2286_v44, %s3914_s15 }
0x1801   : > { %v2279_v25 = vpop.permute.xlu0 %2278 }
0x1802   : > { %v2281_v37 = vmul.f32 %v3628_v41, %v2279_v25 }
0x1804   : > { %2414 = vrot.lane.b32.xlu1 %v2412_v16, %s3914_s15 }
0x1805   : > { %v3630_v20 = vpop.eup %3629 }
0x1806   : > { %2419 = vrot.lane.b32.xlu0 %v3630_v20, %s3917_s26 }
0x1807   : > { %v3632_v23 = vpop.eup %3631 }
0x1808   : > { %v2408_v24 = vadd.f32 1.0, %v3632_v23 }
0x180a   : > { %3633 = vrcp.f32 %v2408_v24 }
0x1817   : > { %v3634_v46 = vpop.eup %3633 }
0x1872   : > { %v2289_v45 = vpop.permute.xlu1 %2288 }
0x1873   : > { %v2291_v26 = vadd.f32 %v2289_v45, %v2281_v37 }
0x1875   : > { %3635 = vtanh.f32 %v2291_v26 }
0x1876   : > { %v2415_v35 = vpop.permute.xlu1 %2414 }
0x1877   : > { %v2417_v36 = vmul.f32 %v3634_v46, %v2415_v35 }
0x1878   : > { %v2420_v47 = vpop.permute.xlu0 %2419 }
0x1879   : > { %v2422_v33 = vmul.f32 %v3634_v46, %v2420_v47 }
0x187b   : > { %2424 = vrot.lane.b32.xlu0 %v2422_v33, %s3914_s15 }
0x1882   : > { %v3636_v34 = vpop.eup %3635 }
0x1883   : > { %2294 = vrot.lane.b32.xlu1 %v3636_v34, %s3917_s26 }
0x18ed   : > { %v2425_v38 = vpop.permute.xlu0 %2424 }
0x18ee   : > { %v2427_v53 = vadd.f32 %v2425_v38, %v2417_v36 }
0x18f0   : > { %3637 = vtanh.f32 %v2427_v53 }
0x18f5   : > { %v2295_v40 = vpop.permute.xlu1 %2294 }
0x18f6   : > { %v2297_v42 = vmul.f32 %v3628_v41, %v2295_v40 }
0x18f8   : > { %2304 = vrot.lane.b32.xlu0 %v2297_v42, %s3914_s15 }
0x18fd   : > { %v3638_v48 = vpop.eup %3637 }
0x18fe   : > { %2430 = vrot.lane.b32.xlu1 %v3638_v48, %s3917_s26 }
0x196a   : > { %v2305_v49 = vpop.permute.xlu0 %2304 }
0x196b   : > { %2307 = vst.msk [vmem:[#allocation13 + $0x2] sm:$0x3] %vm550_vm4, %v2305_v49  ;;  %2308 = vst.msk [vmem:[#allocation2 + $0xc] sm:$0x3] %vm550_vm4, %v2305_v49 }
0x1970   : > { %v2431_v50 = vpop.permute.xlu1 %2430 }
0x1971   : > { %v2433_v51 = vmul.f32 %v3634_v46, %v2431_v50 }
0x1972   : > { %v2444_v52 = vld [vmem:[#allocation13 + $0x2] sm:$0x3] }
0x1973   : > { %2446 = vrot.lane.b32.xlu1 %v2444_v52, %s3914_s15  ;;  %2440 = vrot.lane.b32.xlu0 %v2433_v51, %s3914_s15 }
0x1977   : > { %2299 = vrot.lane.b32.xlu0 %v2291_v26, %s3918_s28 }
0x19e5   : > { %v2441_v54 = vpop.permute.xlu0 %2440  ;;  %v2447_v55 = vpop.permute.xlu1 %2446 }
0x19e6   : > { %2443 = vst.msk [vmem:[#allocation13] sm:$0x3] %vm550_vm4, %v2441_v54  ;;  %v2449_v56 = vsel %vm426_vm2, %v2441_v54, %v2447_v55 }
0x19e7   : > { %3393 = vmatmul.mubr.msk.f32.vlgmr.msra.gmra.mxu1 %vm443_vm3, %v2449_v56 }
0x19e9   : > { %v2300_v57 = vpop.permute.xlu0 %2299 }
0x19ea   : > { %2302 = vst.msk [vmem:[#allocation15 + $0x2] sm:$0x3] %vm550_vm4, %v2300_v57 }
0x19f1   : > { %v2545_v5 = vld [vmem:[#allocation15 + $0x2] sm:$0x3] }
0x19f2   : > { %2547 = vrot.lane.b32.xlu0 %v2545_v5, %s3914_s15 }
0x1a64   : > { %v2548_v60 = vpop.permute.xlu0 %2547 }
0x1aa7   : > { %v2534_v7 = vpop.f32.mrf.mxu1 }
0x1aa8   : > { %v2535_v8 = vadd.f32 %v4659_v15, %v2534_v7 }
0x1aa9   : > { %v3394_v10 = vpop.f32.mrf.mxu1 }
0x1aaa   : > { %3639 = vtanh.f32 %v2535_v8  ;;  %v2926_v12 = vmul.f32 -1.442695, %v2535_v8 }
0x1aac   : > { %3641 = vpow2.f32 %v2926_v12 }
0x1ab7   : > { %v3640_v11 = vpop.eup %3639 }
0x1ab8   : > { %2552 = vrot.lane.b32.xlu1 %v3640_v11, %s3917_s26 }
0x1ab9   : > { %v3642_v18 = vpop.eup %3641 }
0x1aba   : > { %v2541_v13 = vadd.f32 1.0, %v3642_v18 }
0x1abc   : > { %3643 = vrcp.f32 %v2541_v13 }
0x1ac9   : > { %v3644_v58 = vpop.eup %3643 }
0x1aca   : > { %v2550_v63 = vmul.f32 %v3644_v58, %v2548_v60 }
0x1b2a   : > { %v2553_v59 = vpop.permute.xlu1 %2552 }
0x1b2b   : > { %v2555_v14 = vmul.f32 %v3644_v58, %v2553_v59 }
0x1b2d   : > { %2557 = vrot.lane.b32.xlu1 %v2555_v14, %s3914_s15 }
0x1b9f   : > { %v2558_v17 = vpop.permute.xlu1 %2557 }
0x1ba0   : > { %v2560_v19 = vadd.f32 %v2558_v17, %v2550_v63 }
0x1ba2   : > { %3645 = vtanh.f32 %v2560_v19 }
0x1baf   : > { %v3646_v15 = vpop.eup %3645 }
0x1bb0   : > { %2563 = vrot.lane.b32.xlu0 %v3646_v15, %s3917_s26 }
0x1bb4   : > { %2435 = vrot.lane.b32.xlu0 %v2427_v53, %s3918_s28 }
0x1c22   : > { %v2564_v0 = vpop.permute.xlu0 %2563 }
0x1c23   : > { %v2566_v1 = vmul.f32 %v3644_v58, %v2564_v0 }
0x1c25   : > { %2573 = vrot.lane.b32.xlu1 %v2566_v1, %s3914_s15 }
0x1c26   : > { %v2436_v2 = vpop.permute.xlu0 %2435 }
0x1c27   : > { %2438 = vst.msk [vmem:[#allocation15] sm:$0x3] %vm550_vm4, %v2436_v2 }
0x1c29   : > { %2568 = vrot.lane.b32.xlu1 %v2560_v19, %s3918_s28 }
0x1c97   : > { %v2574_v3 = vpop.permute.xlu1 %2573 }
0x1c98   : > { %2577 = vst.msk [vmem:[#allocation2 + $0xe] sm:$0x3] %vm550_vm4, %v2574_v3  ;;  %2576 = vst.msk [vmem:[#allocation13 + $0x2] sm:$0x3] %vm550_vm4, %v2574_v3 }
0x1c9b   : > { %v2569_v28 = vpop.permute.xlu1 %2568 }
0x1c9c   : > { %2571 = vst.msk [vmem:[#allocation15 + $0x2] sm:$0x3] %vm550_vm4, %v2569_v28 }
0x1c9f   : > { %v2579_v29 = vld [vmem:[#allocation2 + $0x8] sm:$0xff] }
0x1ca0   : > { %3404 = vmatmul.mubr.msk.f32.vlgmr.msra.gmra.mxu0 %vm426_vm2, %v2579_v29 }
0x1ca1   : > { %3792 = shalt.err (!%p3789_p6)
}
0x1ca2   : > { %s3920_s25 = smov 2   ;;  %p4854_p4 = pmov %p4853_p13 }
0x1ca3   : > { %s3921_s20 = smov [#allocation15]  }
0x1ca4   : > { %3426 = dma.vmem_to_hbm [thread:$0]  (%p4854_p4), %s2702_s27, 64, %s4823_s8, [#allocation14], %s3914_s15, %s3914_s15, %s3920_s25  }
0x1ca5   : > { %s2714_s19 = sshll.u32 %s3921_s20, 4  ;;  %p4855_p0 = pmov %p4854_p4  ;;  %s2715_s19 = int_to_ptr.vmem [resolvable:$true] %s2714_s19 }
0x1ca6   : > { %s3803_s29 = scalar_lea.vmem %s2715_s19, 64  ;;  %p3810_p1 = scmp.lt.s32.totalorder %s2715_s19, %s2715_s19 }
0x1ca7   : > { %p3804_p9 = scmp.ne.s32.totalorder %s2715_s19, %s3803_s29  ;;  %p3811_p2 = scmp.lt.s32.totalorder %s3803_s29, %s3803_s29 }
0x1ca9   : > { %p3805_p12 = pnand %p3804_p9, %p4855_p0  ;;  %p3812_p13 = por %p3811_p2, %p3810_p1 }
0x1cab   : > { %p3806_p11 = pneg %p3805_p12 }
0x1cad   : > { %p3813_p7 = pnand %p3812_p13, %p3806_p11 }
0x1caf   : > { %3816 = shalt.err (!%p3813_p7)
}
0x1cb0   : > { %p4856_p10 = pmov %p4855_p0  ;;  %v2927_v6 = vld [vmem:[%s4821_s6] ss:$0 sm:$0xff]  ;;  %s2940_s27 = sshll.u32 %s3996_s13, 8 }
0x1cb1   : > { %s2688_s24 = sshll.u32 %s4152_s17, 4  ;;  %s4764_s20 = scalar_lea.hbm %s4822_s7, %s2940_s27  ;;  %s4766_s24 = int_to_ptr.vmem [resolvable:$true] %s2688_s24 }
0x1cb2   : > { %3428 = dma.vmem_to_hbm [thread:$0]  (%p4856_p10), %s2715_s19, 64, %s4824_s9, [#allocation14], %s3914_s15, %s3914_s15, %s3920_s25  }
0x1cb3   : > { %s2675_s15 = scalar_lea.sflag [#allocation5], %s4134_s2  ;;  %s3827_s25 = scalar_lea.vmem %s4766_s24, 256 }
0x1cb4   : > { %p3828_p3 = scmp.ne.s32.totalorder %s4766_s24, %s3827_s25  ;;  %p4857_p8 = scmp.ne.s32.totalorder %s4842_s18, 0 }
0x1cb5   : > { %s3922_s19 = smov [#allocation12]  }
0x1cb6   : > { %p3829_p5 = pnand %p3828_p3, %p4857_p8  ;;  %s3831_s29 = sshll.u32 %s3922_s19, 4  ;;  %s3832_s29 = int_to_ptr.vmem [resolvable:$false] %s3831_s29 }
0x1cb7   : > { %s3833_s1 = scalar_lea.vmem %s3832_s29, 512  ;;  %p3834_p4 = scmp.lt.s32.totalorder %s4766_s24, %s3832_s29 }
0x1cb8   : > { %p3830_p6 = pneg %p3829_p5  ;;  %p3835_p9 = scmp.lt.s32.totalorder %s3833_s1, %s3827_s25 }
0x1cba   : > { %p3836_p0 = por %p3835_p9, %p3834_p4 }
0x1cbc   : > { %p3837_p12 = pnand %p3836_p0, %p3830_p6 }
0x1d60   : > { %v3405_v4 = vpop.f32.mrf.mxu0 }
0x1d61   : > { %v2669_v9 = vadd.f32 %v3405_v4, %v2927_v6 }
0x1d62   : > { %v2663_v30 = vpop.f32.mrf.mxu0 }
0x1d63   : > { %2673 = vst [vmem:[%s4152_s17 + $0x8] sm:$0xff] %v2669_v9  ;;  %v2664_v31 = vadd.f32 %v2927_v6, %v2663_v30 }
0x1d65   : > { %2672 = vst [vmem:[%s4152_s17] sm:$0xff] %v2664_v31 }
0x1d66   : > { %3840 = shalt.err (!%p3837_p12)
}
0x1d67   : > { %s3841_s17 = scalar_lea.hbm %s4764_s20, 256  ;;  %s3845_s21 = scalar_lea.hbm %s4822_s7, 512 }
0x1d68   : > { %p3842_p11 = scmp.ne.s32.totalorder %s4764_s20, %s3841_s17  ;;  %p3846_p13 = scmp.lt.s32.totalorder %s4764_s20, %s4822_s7 }
0x1d69   : > { %p3847_p7 = scmp.lt.s32.totalorder %s3845_s21, %s3841_s17 }
0x1d6a   : > { %p3843_p1 = pnand %p3842_p11, %p4857_p8 }
0x1d6b   : > { %p3848_p10 = por %p3847_p7, %p3846_p13 }
0x1d6c   : > { %p3844_p2 = pneg %p3843_p1 }
0x1d6e   : > { %p3849_p3 = pnand %p3848_p10, %p3844_p2 }
0x1d70   : > { %3852 = shalt.err (!%p3849_p3)
}
0x1d71   : > { %s3923_s28 = smov 128   ;;  %s3924_s25 = smov 8  }
0x1d72   : > { %3424 = dma.vmem_to_hbm [thread:$0]  (%p4857_p8), %s4766_s24, 256, %s4764_s20, %s2675_s15, %s3923_s28, %s3923_s28, %s3924_s25  }
0x1d73   : > { %p4858_p5 = scmp.eq.s32.totalorder %s3996_s13, 1 }
0x1d75   : > { %3882 = dma.done.wait (%p4858_p5), [#allocation14], 128   ;;  %p4859_p6 = pmov %p4858_p5 }
0x1d77   : > { %3884 = vsyncadd (%p4859_p6), [#allocation14], 4294967168 }
0x1d78 PF: > { %s2737_s19 = sand.u32 1, %s3891_s30   ;;  %p4860_p4 = scmp.ne.s32.totalorder %s4835_s16, 0 }
0x1d79   : > { %p4861_p9 = scmp.ge.s32.totalorder %s3903_s12, 2  ;;  %s2738_s29 = scalar_lea.sflag [#allocation5], %s2737_s19 }
0x1d7b   : > { %p3452_p0 = pnand %p4861_p9, %p4860_p4 }
0x1d7d   : > { %p3453_p12 = pneg %p3452_p0 }
0x1d7f   : > { %3886 = dma.done.wait (%p3453_p12), %s2738_s29, 256  }
0x1d80   : > { %3888 = vsyncadd (%p3453_p12), %s2738_s29, 4294967040  ;;  %p26_p8 = scmp.ge.s32.totalorder %s4076_s23, 4   ;;  %s4862_s30 = smov %s3895_s10 }
0x1d81   : > { %s4863_s10 = smov %s3899_s11  ;;  %s4864_s11 = smov %s4085_s22 }
0x1d82   : > { %s4865_s12 = smov %s4076_s23  ;;  %28 = sbr.rel (!%p26_p8) target bundleno = 12 (0xc), region = 140 }
0x1d87   :  { %2743 = vsyncpa [#allocation4], 1 }
0x1d88   :  { %2745 = vsyncpa [#allocation4 + $0x1], 1 }
0x1d89   :  { %2746 = vsyncpa [#allocation7], 1 }
0x1d8a   :  { %2747 = vsyncpa [#allocation10], 1 }
0x1d8b   :  { %2748 = vsyncpa [#allocation5], 1 }
0x1d8c   :  { %2750 = vsyncpa [#allocation5 + $0x1], 1 }
0x1d8d   :  { %2751 = vsyncpa [#allocation14], 1 }

</bundles_post_ra>
